<compile_context>
chip_gen: v5e
topology: v5e:2x2
jax: 0.10.0
libtpu: 0.0.40
codegen_flags: <defaults>
</compile_context>

<pallas_src>
import functools

import jax
import jax.numpy as jnp
from jax.experimental import pallas as pl
from jax.experimental.pallas import tpu as pltpu


def _linear_kernel(x_ref, w_ref, b_ref, o_ref):
    # Single-shot MXU matmul over the full K dimension; bias added in f32
    # before the output cast.  Output tile is lane-dense (tn multiple of 128).
    acc = jnp.dot(x_ref[...], w_ref[...], preferred_element_type=jnp.float32)
    o_ref[...] = (acc + b_ref[...]).astype(o_ref.dtype)


@functools.partial(jax.jit, static_argnames=("tm",))
def _linear_head_2d(x2d, w_blocked, b_blocked, *, tm):
    M, K = x2d.shape
    nb, _, tn = w_blocked.shape
    N = nb * tn
    itemsize = jnp.dtype(x2d.dtype).itemsize
    cost = pl.CostEstimate(
        flops=2 * M * K * N,
        transcendentals=0,
        bytes_accessed=(M * K + K * N + M * N) * itemsize
        + N * jnp.dtype(b_blocked.dtype).itemsize,
    )
    return pl.pallas_call(
        _linear_kernel,
        out_shape=jax.ShapeDtypeStruct((M, N), x2d.dtype),
        # Outer axis = N (weight slabs), inner axis = M: the weight / bias block
        # indices only change on the outer axis, so each contiguous slab is
        # DMA'd once and stays resident while the small x / out tiles stream.
        grid=(nb, M // tm),
        in_specs=[
            pl.BlockSpec((tm, K), lambda j, i: (i, 0)),            # x tile (full K)
            pl.BlockSpec((None, K, tn), lambda j, i: (j, 0, 0)),   # contiguous weight slab
            pl.BlockSpec((None, 1, tn), lambda j, i: (j, 0, 0)),   # bias slab (resident per j)
        ],
        out_specs=pl.BlockSpec((tm, tn), lambda j, i: (i, j)),
        compiler_params=pltpu.CompilerParams(
            dimension_semantics=("parallel", "parallel"),
        ),
        cost_estimate=cost,
    )(x2d, w_blocked, b_blocked)


def prepare_linear_head_params(weight, bias, *, tn=2048):
    """One-time parameter prep (do this at model-build time, not per call).

    weight: (out_features, in_features)  -- torch.nn.Linear layout
    bias:   (out_features,)

    Returns:
      w_blocked: (N//tn, K, tn)  W^T pre-blocked into contiguous per-tile slabs
      b_blocked: (N//tn, 1, tn)
    """
    N, K = weight.shape
    tn = min(tn, N)
    if N % tn != 0:
        tn = N  # TODO(synk): pad N to a tile multiple instead of one big block.
    nb = N // tn
    w_t = jnp.transpose(weight, (1, 0))                             # (K, N)
    w_blocked = jnp.transpose(w_t.reshape(K, nb, tn), (1, 0, 2))    # (nb, K, tn)
    b_blocked = bias.reshape(nb, 1, tn)
    return jnp.asarray(w_blocked), jnp.asarray(b_blocked)


def linear_head(x, w_blocked, b_blocked, *, tm=None):
    """y = x @ W^T + b  (same semantics as torch.nn.Linear).

    x:         (..., in_features)
    w_blocked: (N//tn, in_features, tn)  from prepare_linear_head_params
    b_blocked: (N//tn, 1, tn)
    """
    nb, K, tn = w_blocked.shape
    N = nb * tn
    assert x.shape[-1] == K, (x.shape, K)
    lead_shape = x.shape[:-1]

    x2d = x.reshape(-1, K)                      # (M, K)
    M = x2d.shape[0]

    if tm is None:
        # Full-M tile for small M (mem-bound case); 256-row tiles otherwise
        # (keeps worst-case VMEM ~13 MiB, inside v5e's 16 MiB default).
        tm = M if M <= 256 else 256
    assert M % tm == 0, (M, tm)
    # TODO(synk): pad M to a tile multiple instead of asserting for ragged shapes.

    out = _linear_head_2d(x2d, w_blocked, b_blocked, tm=tm)
    return out.reshape(*lead_shape, N)


if __name__ == "__main__":
    # Shapes consistent with LinearHead's forward: x is (..., in_features).
    in_features = 512
    out_features = 4096
    batch, seq = 2, 8

    key = jax.random.PRNGKey(0)
    kx, kw, kb = jax.random.split(key, 3)

    # Deterministic, torch.nn.Linear-style init: U(-1/sqrt(in), 1/sqrt(in)).
    bound = 1.0 / (in_features ** 0.5)
    x = jax.random.normal(kx, (batch, seq, in_features), dtype=jnp.float32)
    weight = jax.random.uniform(
        kw, (out_features, in_features), minval=-bound, maxval=bound,
        dtype=jnp.float32)
    bias = jax.random.uniform(
        kb, (out_features,), minval=-bound, maxval=bound, dtype=jnp.float32)

    # Parameter-setup-time transpose + blocking: each weight tile becomes one
    # contiguous HBM slab so the kernel streams it with a single DMA.
    w_blocked, b_blocked = prepare_linear_head_params(weight, bias, tn=2048)

    y = linear_head(x, w_blocked, b_blocked)
    y = jax.block_until_ready(y)

    # Sanity check against plain-JAX reference (original nn.Linear semantics).
    y_ref = x @ weight.T + bias
    assert y.shape == (batch, seq, out_features)
    assert jnp.allclose(y, y_ref, atol=1e-4, rtol=1e-4)

    print("KERNEL_OK")
</pallas_src>

<mosaic_0001>
module attributes {stable_mosaic.version = 11 : i64} {
  func.func @_linear_kernel(%arg0: i32, %arg1: i32, %arg2: memref<16x512xf32, #tpu.memory_space<vmem>>, %arg3: memref<1x512x2048xf32, #tpu.memory_space<vmem>>, %arg4: memref<1x1x2048xf32, #tpu.memory_space<vmem>>, %arg5: memref<16x2048xf32, #tpu.memory_space<vmem>>) attributes {dimension_semantics = [#tpu.dimension_semantics<parallel>, #tpu.dimension_semantics<parallel>], iteration_bounds = array<i64: 2, 1>, scalar_prefetch = 0 : i64, scratch_operands = 0 : i64, tpu.core_type = #tpu.core_type<tc>, window_params = [{transform_indices = @transform_0, window_bounds = array<i64: 16, 512>}, {transform_indices = @transform_1, window_bounds = array<i64: 1, 512, 2048>}, {transform_indices = @transform_2, window_bounds = array<i64: 1, 1, 2048>}, {transform_indices = @transform_3, window_bounds = array<i64: 16, 2048>}]} {
    %c0 = arith.constant 0 : index
    %c0_0 = arith.constant 0 : index
    %0 = vector.load %arg2[%c0, %c0_0] : memref<16x512xf32, #tpu.memory_space<vmem>>, vector<16x512xf32>
    %c0_1 = arith.constant 0 : index
    %c0_2 = arith.constant 0 : index
    %c0_3 = arith.constant 0 : index
    %1 = vector.load %arg3[%c0_1, %c0_2, %c0_3] : memref<1x512x2048xf32, #tpu.memory_space<vmem>>, vector<1x512x2048xf32>
    %2 = vector.shape_cast %1 : vector<1x512x2048xf32> to vector<512x2048xf32>
    %cst = arith.constant dense<0.000000e+00> : vector<16x2048xf32>
    %3 = tpu.matmul %0, %2, %cst {dimension_numbers = #tpu.dot_dimension_numbers<[1], [0], [0], [1], [0, 0, 1, 1], [], []>} : vector<16x512xf32>, vector<512x2048xf32>, vector<16x2048xf32> -> vector<16x2048xf32>
    %c0_4 = arith.constant 0 : index
    %c0_5 = arith.constant 0 : index
    %c0_6 = arith.constant 0 : index
    %4 = vector.load %arg4[%c0_4, %c0_5, %c0_6] : memref<1x1x2048xf32, #tpu.memory_space<vmem>>, vector<1x1x2048xf32>
    %5 = vector.shape_cast %4 : vector<1x1x2048xf32> to vector<1x2048xf32>
    %6 = vector.broadcast %5 : vector<1x2048xf32> to vector<16x2048xf32>
    %7 = arith.addf %3, %6 : vector<16x2048xf32>
    %c0_7 = arith.constant 0 : index
    %c0_8 = arith.constant 0 : index
    %8 = vector.load %arg5[%c0_7, %c0_8] : memref<16x2048xf32, #tpu.memory_space<vmem>>, vector<16x2048xf32>
    tpu.vector_store %arg5[%c0_7, %c0_8], %7 {strides = array<i32>} : memref<16x2048xf32, #tpu.memory_space<vmem>>, vector<16x2048xf32>,
    return
  }
  func.func @transform_0(%arg0: i32, %arg1: i32) -> (i32, i32) {
    %c0_i32 = arith.constant 0 : i32
    %c0_i32_0 = arith.constant 0 : i32
    return %arg1, %c0_i32 : i32, i32
  }
  func.func @transform_1(%arg0: i32, %arg1: i32) -> (i32, i32, i32) {
    %c0_i32 = arith.constant 0 : i32
    %c0_i32_0 = arith.constant 0 : i32
    %c0_i32_1 = arith.constant 0 : i32
    return %arg0, %c0_i32, %c0_i32_0 : i32, i32, i32
  }
  func.func @transform_2(%arg0: i32, %arg1: i32) -> (i32, i32, i32) {
    %c0_i32 = arith.constant 0 : i32
    %c0_i32_0 = arith.constant 0 : i32
    %c0_i32_1 = arith.constant 0 : i32
    return %arg0, %c0_i32, %c0_i32_0 : i32, i32, i32
  }
  func.func @transform_3(%arg0: i32, %arg1: i32) -> (i32, i32) {
    %c0_i32 = arith.constant 0 : i32
    return %arg1, %arg0 : i32, i32
  }
}

</mosaic_0001>

<bundles_post_ra>
// kernel: _linear_head_2d.1
= control target key start
LH: loop header
LB: loop body
LE: loop exit
PB: predicated region body
PF: predicated region fallthrough
CT: control target
= control target key end

     0   :  { %s4815_s0 = inlined_call_operand.hbm [shape: f32[16,512], index: 0, kind: input, shape index: {}]   ;;  %s4816_s1 = inlined_call_operand.hbm [shape: f32[2,512,2048], index: 1, kind: input, shape index: {}]   ;;  %s4817_s2 = inlined_call_operand.hbm [shape: f32[2,1,2048], index: 2, kind: input, shape index: {}]   ;;  %s4818_s3 = inlined_call_operand.hbm [shape: f32[16,4096], index: 3, kind: output, shape index: {}]  }
   0x1   :  { %4819 = sst [smem:[#allocation12_spill]] %s4815_s0 }
   0x2   :  { %4820 = sst [smem:[#allocation13_spill]] %s4816_s1 }
   0x3   :  { %8 = vsyncpa [#allocation3], 0 }
   0x4   :  { %9 = vsyncpa [#allocation6], 0 }
   0x5   :  { %11 = vsyncpa [#allocation6 + $0x1], 0 }
   0x6   :  { %12 = vsyncpa [#allocation4], 0 }
   0x7   :  { %14 = vsyncpa [#allocation4 + $0x1], 0  ;;  %s3317_s12 = smov 0   ;;  %s3319_s13 = smov 0  }
   0x8   :  { %s3321_s14 = smov 0   ;;  %s3323_s15 = smov 0  }
   0x9   :  { %s3325_s16 = smov 0   ;;  %s3327_s17 = smov 0  }
   0xa LB: > { %s32_s18 = sadd.s32 1, %s3283_s16  ;;  %s65_s19 = sadd.s32 1, %s3275_s14  ;;  %s3287_s17 = sphi %s3327_s17, %s20_s17   ;;  %s3283_s16 = sphi %s3325_s16, %s4833_s16   ;;  %s3279_s15 = sphi %s3323_s15, %s4832_s15   ;;  %s3275_s14 = sphi %s3321_s14, %s4831_s14   ;;  %s3271_s13 = sphi %s3319_s13, %s4830_s13   ;;  %s3267_s12 = sphi %s3317_s12, %s4829_s12  }
   0xb   : > { %p34_p0 = scmp.ge.s32.totalorder %s32_s18, 2  ;;  %p72_p1 = scmp.ne.s32.totalorder %s3275_s14, %s3271_s13 }
   0xc   : > { %p73_p2 = scmp.eq.s32.totalorder %s3287_s17, 0  ;;  %p2983_p3 = scmp.ge.s32.totalorder %s3287_s17, 2 }
   0xd   : > { %s4835_s18 = smov (%p34_p0, %s32_s18), 0  ;;  %p3027_p5 = scmp.lt.s32.totalorder %s3287_s17, 2 }
   0xe   : > { %p3358_p4 = por %p73_p2, %p72_p1  ;;  %s62_s21 = ssub.s32 %s3283_s16, %s4835_s18 }
   0xf   : > { %s174_s22 = sand.u32 1, %s3287_s17   ;;  %p63_p6 = scmp.eq.s32.totalorder %s62_s21, 0 }
  0x10   : > { %s176_s23 = sand.u32 1, %s3275_s14   ;;  %s2999_s24 = sshll.u32 %s3283_s16, 13 }
  0x11   : > { %s3369_s25 = scalar_select %p63_p6, %s3275_s14, %s65_s19  }
  0x12   : > { %s2984_s26 = sshll.u32 %s176_s23, 13  ;;  %s4822_s1 = sld [smem:[#allocation13_spill]] }
  0x13   : > { %s178_s4 = scalar_lea.vmem [#allocation5], %s2984_s26  ;;  %p3380_p7 = pnand %p3027_p5, %p3358_p4 }
  0x14   : > { %s186_s5 = sshll.u32 %s178_s4, 4  ;;  %s3384_s7 = scalar_lea.sflag [#allocation6], %s174_s22  ;;  %s187_s5 = int_to_ptr.vmem [resolvable:$true] %s186_s5 }
  0x15   : > { %s3289_s8 = smov 2048   ;;  %s3290_s9 = smov 128  }
  0x16   : > { %s3390_s10 = sadd.s32 4294967295, %s3287_s17   ;;  %s2980_s11 = sadd.s32 4294967294, %s3287_s17  }
  0x17   : > { %p78_p8 = scmp.ne.s32.totalorder %s3271_s13, %s3267_s12  ;;  %p79_p9 = scmp.eq.s32.totalorder %s3390_s10, 0 }
  0x18   : > { %s183_s29 = scalar_lea.hbm %s4822_s1, %s2999_s24  ;;  %p130_p10 = scmp.eq.s32.totalorder %s3390_s10, 1 }
  0x19   : > { %s184_s30 = sshll.u32 %s183_s29, 4  ;;  %p136_p11 = scmp.eq.s32.totalorder %s2980_s11, 1  ;;  %s185_s30 = int_to_ptr.hbm [resolvable:$true] %s184_s30 }
  0x1a   : > { %3018 = dma.hbm_to_vmem [thread:$0]  (!%p3380_p7), %s185_s30, 131072, %s187_s5, %s3384_s7, %s3289_s8, %s3289_s8, %s3290_s9  }
  0x1b   : > { %p2981_p12 = scmp.ge.s32.totalorder %s3287_s17, 1  ;;  %p3400_p13 = por %p79_p9, %p78_p8 }
  0x1c   : > { %p3407_p0 = por %p130_p10, %p72_p1  ;;  %p3411_p2 = por %p136_p11, %p78_p8 }
  0x1d   : > { %p143_p4 = scmp.lt.s32.totalorder %s3287_s17, 3  ;;  %s4827_s0 = sld [smem:[#allocation12_spill]] }
  0x1e   : > { %s3291_s28 = smov [#allocation2]   ;;  %s2987_s30 = sshll.u32 %s176_s23, 4 }
  0x1f   : > { %p3419_p5 = pnand %p2981_p12, %p143_p4  ;;  %s160_s29 = sshll.u32 %s3291_s28, 4  ;;  %s161_s29 = int_to_ptr.vmem [resolvable:$true] %s160_s29 }
  0x20   : > { %s2988_s4 = sshll.u32 %s3283_s16, 4  ;;  %s3292_s11 = smov 512  }
  0x21   : > { %p3011_p1 = pneg %p3419_p5  ;;  %s204_s9 = scalar_lea.hbm %s4817_s2, %s2988_s4 }
  0x22   : > { %s3293_s22 = smov 32   ;;  %s206_s24 = sshll.u32 %s204_s9, 4  ;;  %s207_s24 = int_to_ptr.hbm [resolvable:$true] %s206_s24 }
  0x23   : > { %s158_s26 = sshll.u32 %s4827_s0, 4  ;;  %p3012_p6 = pnand %p3011_p1, %p79_p9  ;;  %s159_s26 = int_to_ptr.hbm [resolvable:$true] %s158_s26 }
  0x24   : > { %s200_s0 = scalar_lea.vmem [#allocation7], %s2987_s30  ;;  %217 = sbr.rel (%p3419_p5) target bundleno = 800 (0x320), region = 32 }
  0x25   : > { %3014 = dma.hbm_to_vmem [thread:$0]  (!%p3012_p6), %s159_s26, 1024, %s161_s29, [#allocation3], %s3292_s11, %s3292_s11, %s3293_s22  }
  0x26   : > { %s208_s1 = sshll.u32 %s200_s0, 4  ;;  %s209_s1 = int_to_ptr.vmem [resolvable:$true] %s208_s1 }
  0x27   : > { %3021 = dma.hbm_to_vmem [thread:$0]  (!%p3380_p7), %s207_s24, 256, %s209_s1, %s3384_s7  }
  0x29   : > { %3254 = dma.done.wait (%p79_p9), [#allocation3], 1024  }
  0x2a   : > { %3256 = vsyncadd (%p79_p9), [#allocation3], 4294966272  ;;  %s224_s23 = sand.u32 1, %s3390_s10   ;;  %s3444_s26 = sand.u32 1, %s3271_s13  }
  0x2b   : > { %s2991_s0 = sshll.u32 %s3444_s26, 13  ;;  %s225_s28 = scalar_lea.sflag [#allocation6], %s224_s23 }
  0x2c   : > { %s3447_s6 = scalar_lea.vmem [#allocation5], %s2991_s0 }
  0x2d   : > { %3258 = dma.done.wait (%p3400_p13), %s225_s28, 131328  }
  0x2e   : > { %3260 = vsyncadd (%p3400_p13), %s225_s28, 4294835968  ;;  %v1030_v0 = vld [vmem:[%s3447_s6 + $0x1780] sm:$0xff]  ;;  %v1031_v62 = vld [vmem:[%s3447_s6 + $0x1788] sm:$0xff]  ;;  %s2992_s1 = sshll.u32 %s3444_s26, 4  ;;  %s2993_s10 = sshll.u32 %s3444_s26, 8 }
  0x2f   : > { %v518_v1 = vld [vmem:[%s3447_s6 + $0x780] sm:$0xff]  ;;  %1384 = vmatpush.msra.mxu2 %v1030_v0  ;;  %v519_v0 = vld [vmem:[%s3447_s6 + $0x788] sm:$0xff]  ;;  %s3844_s7 = scalar_lea.vmem [#allocation7], %s2992_s1  ;;  %s3886_s19 = scalar_lea.vmem [#allocation8], %s2993_s10 }
  0x30   : > { %v1014_v2 = vld [vmem:[%s3447_s6 + $0x1700] sm:$0xff]  ;;  %1338 = vmatpush.msra.mxu0 %v518_v1  ;;  %v1287_v1 = vld [vmem:[%s3447_s6 + $0x1f88] sm:$0xff]  ;;  %s3000_s27 = sshll.u32 %s3279_s15, 7  ;;  %s2858_s5 = sshll.u32 %s3886_s19, 4  ;;  %s2859_s5 = int_to_ptr.vmem [resolvable:$true] %s2858_s5 }
  0x31   : > { %v1286_v3 = vld [vmem:[%s3447_s6 + $0x1f80] sm:$0xff]  ;;  %1385 = vmatpush.msra.mxu2 %v1014_v2  ;;  %v1015_v2 = vld [vmem:[%s3447_s6 + $0x1708] sm:$0xff]  ;;  %s2857_s4 = scalar_lea.hbm %s4818_s3, %s3000_s27  ;;  %s2843_s15 = scalar_lea.sflag [#allocation4], %s3444_s26 }
  0x32   : > { %v502_v4 = vld [vmem:[%s3447_s6 + $0x700] sm:$0xff]  ;;  %1407 = vmatpush.msra.mxu3 %v1286_v3  ;;  %s2860_s8 = sshll.u32 %s2857_s4, 4  ;;  %s3221_s23 = scalar_lea.hbm %s4818_s3, 512  ;;  %s2861_s8 = int_to_ptr.hbm [resolvable:$true] %s2860_s8 }
  0x33   : > { %v774_v5 = vld [vmem:[%s3447_s6 + $0xf80] sm:$0xff]  ;;  %1339 = vmatpush.msra.mxu0 %v502_v4  ;;  %v503_v4 = vld [vmem:[%s3447_s6 + $0x708] sm:$0xff]  ;;  %s3215_s9 = sshra.s32 %s2861_s8, 4  ;;  %s3216_s9 = int_to_ptr.hbm [resolvable:$true] %s3215_s9 }
  0x34   : > { %1361 = vmatpush.msra.mxu1 %v774_v5  ;;  %v998_v6 = vld [vmem:[%s3447_s6 + $0x1680] sm:$0xff]  ;;  %v775_v5 = vld [vmem:[%s3447_s6 + $0xf88] sm:$0xff]  ;;  %s3217_s11 = scalar_lea.hbm %s3216_s9, 256  ;;  %p3222_p10 = scmp.lt.s32.totalorder %s3216_s9, %s4818_s3 }
  0x35   : > { %v1270_v7 = vld [vmem:[%s3447_s6 + $0x1f00] sm:$0xff]  ;;  %1386 = vmatpush.msra.mxu2 %v998_v6  ;;  %v999_v6 = vld [vmem:[%s3447_s6 + $0x1688] sm:$0xff]  ;;  %p3218_p7 = scmp.ne.s32.totalorder %s3216_s9, %s3217_s11  ;;  %p3223_p11 = scmp.lt.s32.totalorder %s3221_s23, %s3217_s11 }
  0x36   : > { %v486_v8 = vld [vmem:[%s3447_s6 + $0x680] sm:$0xff]  ;;  %1408 = vmatpush.msra.mxu3 %v1270_v7  ;;  %v1271_v7 = vld [vmem:[%s3447_s6 + $0x1f08] sm:$0xff] }
  0x37   : > { %v758_v9 = vld [vmem:[%s3447_s6 + $0xf00] sm:$0xff]  ;;  %1340 = vmatpush.msra.mxu0 %v486_v8  ;;  %v487_v8 = vld [vmem:[%s3447_s6 + $0x688] sm:$0xff]  ;;  %p3219_p8 = pnand %p3218_p7, %p3407_p0  ;;  %p3224_p12 = por %p3223_p11, %p3222_p10 }
  0x38   : > { %v1254_v10 = vld [vmem:[%s3447_s6 + $0x1e80] sm:$0xff]  ;;  %1362 = vmatpush.msra.mxu1 %v758_v9  ;;  %v759_v9 = vld [vmem:[%s3447_s6 + $0xf08] sm:$0xff] }
  0x39   : > { %v982_v11 = vld [vmem:[%s3447_s6 + $0x1600] sm:$0xff]  ;;  %1409 = vmatpush.msra.mxu3 %v1254_v10  ;;  %v983_v10 = vld [vmem:[%s3447_s6 + $0x1608] sm:$0xff]  ;;  %p3220_p9 = pneg %p3219_p8 }
  0x3a   : > { %v470_v12 = vld [vmem:[%s3447_s6 + $0x600] sm:$0xff]  ;;  %1387 = vmatpush.msra.mxu2 %v982_v11  ;;  %v1255_v11 = vld [vmem:[%s3447_s6 + $0x1e88] sm:$0xff] }
  0x3b   : > { %v742_v13 = vld [vmem:[%s3447_s6 + $0xe80] sm:$0xff]  ;;  %1341 = vmatpush.msra.mxu0 %v470_v12  ;;  %v471_v12 = vld [vmem:[%s3447_s6 + $0x608] sm:$0xff]  ;;  %p3225_p13 = pnand %p3224_p12, %p3220_p9 }
  0x3c   : > { %v1238_v14 = vld [vmem:[%s3447_s6 + $0x1e00] sm:$0xff]  ;;  %1363 = vmatpush.msra.mxu1 %v742_v13  ;;  %v743_v13 = vld [vmem:[%s3447_s6 + $0xe88] sm:$0xff] }
  0x3d   : > { %v726_v15 = vld [vmem:[%s3447_s6 + $0xe00] sm:$0xff]  ;;  %1410 = vmatpush.msra.mxu3 %v1238_v14  ;;  %v967_v14 = vld [vmem:[%s3447_s6 + $0x1588] sm:$0xff] }
  0x3e   : > { %v966_v16 = vld [vmem:[%s3447_s6 + $0x1580] sm:$0xff]  ;;  %1364 = vmatpush.msra.mxu1 %v726_v15  ;;  %v1239_v15 = vld [vmem:[%s3447_s6 + $0x1e08] sm:$0xff] }
  0x3f   : > { %v454_v17 = vld [vmem:[%s3447_s6 + $0x580] sm:$0xff]  ;;  %1388 = vmatpush.msra.mxu2 %v966_v16  ;;  %v455_v16 = vld [vmem:[%s3447_s6 + $0x588] sm:$0xff] }
  0x40   : > { %v1222_v18 = vld [vmem:[%s3447_s6 + $0x1d80] sm:$0xff]  ;;  %1342 = vmatpush.msra.mxu0 %v454_v17  ;;  %v727_v17 = vld [vmem:[%s3447_s6 + $0xe08] sm:$0xff] }
  0x41   : > { %v710_v19 = vld [vmem:[%s3447_s6 + $0xd80] sm:$0xff]  ;;  %1411 = vmatpush.msra.mxu3 %v1222_v18  ;;  %v951_v18 = vld [vmem:[%s3447_s6 + $0x1508] sm:$0xff] }
  0x42   : > { %v950_v20 = vld [vmem:[%s3447_s6 + $0x1500] sm:$0xff]  ;;  %1365 = vmatpush.msra.mxu1 %v710_v19  ;;  %v1223_v19 = vld [vmem:[%s3447_s6 + $0x1d88] sm:$0xff] }
  0x43   : > { %v438_v21 = vld [vmem:[%s3447_s6 + $0x500] sm:$0xff]  ;;  %1389 = vmatpush.msra.mxu2 %v950_v20  ;;  %v439_v20 = vld [vmem:[%s3447_s6 + $0x508] sm:$0xff] }
  0x44   : > { %v1206_v22 = vld [vmem:[%s3447_s6 + $0x1d00] sm:$0xff]  ;;  %1343 = vmatpush.msra.mxu0 %v438_v21  ;;  %v711_v21 = vld [vmem:[%s3447_s6 + $0xd88] sm:$0xff] }
  0x45   : > { %v694_v23 = vld [vmem:[%s3447_s6 + $0xd00] sm:$0xff]  ;;  %1412 = vmatpush.msra.mxu3 %v1206_v22  ;;  %v935_v22 = vld [vmem:[%s3447_s6 + $0x1488] sm:$0xff] }
  0x46   : > { %v934_v24 = vld [vmem:[%s3447_s6 + $0x1480] sm:$0xff]  ;;  %1366 = vmatpush.msra.mxu1 %v694_v23  ;;  %v1207_v23 = vld [vmem:[%s3447_s6 + $0x1d08] sm:$0xff] }
  0x47   : > { %v422_v25 = vld [vmem:[%s3447_s6 + $0x480] sm:$0xff]  ;;  %1390 = vmatpush.msra.mxu2 %v934_v24  ;;  %v423_v24 = vld [vmem:[%s3447_s6 + $0x488] sm:$0xff] }
  0x48   : > { %v1190_v26 = vld [vmem:[%s3447_s6 + $0x1c80] sm:$0xff]  ;;  %1344 = vmatpush.msra.mxu0 %v422_v25  ;;  %v695_v25 = vld [vmem:[%s3447_s6 + $0xd08] sm:$0xff] }
  0x49   : > { %v678_v27 = vld [vmem:[%s3447_s6 + $0xc80] sm:$0xff]  ;;  %1413 = vmatpush.msra.mxu3 %v1190_v26  ;;  %v919_v26 = vld [vmem:[%s3447_s6 + $0x1408] sm:$0xff] }
  0x4a   : > { %v918_v28 = vld [vmem:[%s3447_s6 + $0x1400] sm:$0xff]  ;;  %1367 = vmatpush.msra.mxu1 %v678_v27  ;;  %v1191_v27 = vld [vmem:[%s3447_s6 + $0x1c88] sm:$0xff] }
  0x4b   : > { %v406_v29 = vld [vmem:[%s3447_s6 + $0x400] sm:$0xff]  ;;  %1391 = vmatpush.msra.mxu2 %v918_v28  ;;  %v407_v28 = vld [vmem:[%s3447_s6 + $0x408] sm:$0xff] }
  0x4c   : > { %v1174_v30 = vld [vmem:[%s3447_s6 + $0x1c00] sm:$0xff]  ;;  %1345 = vmatpush.msra.mxu0 %v406_v29  ;;  %v679_v29 = vld [vmem:[%s3447_s6 + $0xc88] sm:$0xff] }
  0x4d   : > { %v662_v31 = vld [vmem:[%s3447_s6 + $0xc00] sm:$0xff]  ;;  %1414 = vmatpush.msra.mxu3 %v1174_v30  ;;  %v903_v30 = vld [vmem:[%s3447_s6 + $0x1388] sm:$0xff] }
  0x4e   : > { %v902_v32 = vld [vmem:[%s3447_s6 + $0x1380] sm:$0xff]  ;;  %1368 = vmatpush.msra.mxu1 %v662_v31  ;;  %v1175_v31 = vld [vmem:[%s3447_s6 + $0x1c08] sm:$0xff] }
  0x4f   : > { %v390_v33 = vld [vmem:[%s3447_s6 + $0x380] sm:$0xff]  ;;  %1392 = vmatpush.msra.mxu2 %v902_v32  ;;  %v391_v32 = vld [vmem:[%s3447_s6 + $0x388] sm:$0xff] }
  0x50   : > { %v1158_v34 = vld [vmem:[%s3447_s6 + $0x1b80] sm:$0xff]  ;;  %1346 = vmatpush.msra.mxu0 %v390_v33  ;;  %v663_v33 = vld [vmem:[%s3447_s6 + $0xc08] sm:$0xff] }
  0x51   : > { %v646_v35 = vld [vmem:[%s3447_s6 + $0xb80] sm:$0xff]  ;;  %1415 = vmatpush.msra.mxu3 %v1158_v34  ;;  %v887_v34 = vld [vmem:[%s3447_s6 + $0x1308] sm:$0xff] }
  0x52   : > { %v886_v36 = vld [vmem:[%s3447_s6 + $0x1300] sm:$0xff]  ;;  %1369 = vmatpush.msra.mxu1 %v646_v35  ;;  %v1159_v35 = vld [vmem:[%s3447_s6 + $0x1b88] sm:$0xff] }
  0x53   : > { %v374_v37 = vld [vmem:[%s3447_s6 + $0x300] sm:$0xff]  ;;  %1393 = vmatpush.msra.mxu2 %v886_v36  ;;  %v375_v36 = vld [vmem:[%s3447_s6 + $0x308] sm:$0xff] }
  0x54   : > { %v1142_v38 = vld [vmem:[%s3447_s6 + $0x1b00] sm:$0xff]  ;;  %1347 = vmatpush.msra.mxu0 %v374_v37  ;;  %v647_v37 = vld [vmem:[%s3447_s6 + $0xb88] sm:$0xff] }
  0x55   : > { %v630_v39 = vld [vmem:[%s3447_s6 + $0xb00] sm:$0xff]  ;;  %1416 = vmatpush.msra.mxu3 %v1142_v38  ;;  %v871_v38 = vld [vmem:[%s3447_s6 + $0x1288] sm:$0xff] }
  0x56   : > { %v870_v40 = vld [vmem:[%s3447_s6 + $0x1280] sm:$0xff]  ;;  %1370 = vmatpush.msra.mxu1 %v630_v39  ;;  %v1143_v39 = vld [vmem:[%s3447_s6 + $0x1b08] sm:$0xff] }
  0x57   : > { %v358_v41 = vld [vmem:[%s3447_s6 + $0x280] sm:$0xff]  ;;  %1394 = vmatpush.msra.mxu2 %v870_v40  ;;  %v359_v40 = vld [vmem:[%s3447_s6 + $0x288] sm:$0xff] }
  0x58   : > { %v1126_v42 = vld [vmem:[%s3447_s6 + $0x1a80] sm:$0xff]  ;;  %1348 = vmatpush.msra.mxu0 %v358_v41  ;;  %v631_v41 = vld [vmem:[%s3447_s6 + $0xb08] sm:$0xff] }
  0x59   : > { %v614_v43 = vld [vmem:[%s3447_s6 + $0xa80] sm:$0xff]  ;;  %1417 = vmatpush.msra.mxu3 %v1126_v42  ;;  %v855_v42 = vld [vmem:[%s3447_s6 + $0x1208] sm:$0xff] }
  0x5a   : > { %v854_v44 = vld [vmem:[%s3447_s6 + $0x1200] sm:$0xff]  ;;  %1371 = vmatpush.msra.mxu1 %v614_v43  ;;  %v1127_v43 = vld [vmem:[%s3447_s6 + $0x1a88] sm:$0xff] }
  0x5b   : > { %v342_v45 = vld [vmem:[%s3447_s6 + $0x200] sm:$0xff]  ;;  %1395 = vmatpush.msra.mxu2 %v854_v44  ;;  %v343_v44 = vld [vmem:[%s3447_s6 + $0x208] sm:$0xff] }
  0x5c   : > { %v1110_v46 = vld [vmem:[%s3447_s6 + $0x1a00] sm:$0xff]  ;;  %1349 = vmatpush.msra.mxu0 %v342_v45  ;;  %v615_v45 = vld [vmem:[%s3447_s6 + $0xa88] sm:$0xff] }
  0x5d   : > { %v598_v47 = vld [vmem:[%s3447_s6 + $0xa00] sm:$0xff]  ;;  %1418 = vmatpush.msra.mxu3 %v1110_v46  ;;  %v839_v46 = vld [vmem:[%s3447_s6 + $0x1188] sm:$0xff] }
  0x5e   : > { %v838_v48 = vld [vmem:[%s3447_s6 + $0x1180] sm:$0xff]  ;;  %1372 = vmatpush.msra.mxu1 %v598_v47  ;;  %v1111_v47 = vld [vmem:[%s3447_s6 + $0x1a08] sm:$0xff] }
  0x5f   : > { %v326_v49 = vld [vmem:[%s3447_s6 + $0x180] sm:$0xff]  ;;  %1396 = vmatpush.msra.mxu2 %v838_v48  ;;  %v327_v48 = vld [vmem:[%s3447_s6 + $0x188] sm:$0xff] }
  0x60   : > { %v1094_v50 = vld [vmem:[%s3447_s6 + $0x1980] sm:$0xff]  ;;  %1350 = vmatpush.msra.mxu0 %v326_v49  ;;  %v599_v49 = vld [vmem:[%s3447_s6 + $0xa08] sm:$0xff] }
  0x61   : > { %v582_v51 = vld [vmem:[%s3447_s6 + $0x980] sm:$0xff]  ;;  %1419 = vmatpush.msra.mxu3 %v1094_v50  ;;  %v823_v50 = vld [vmem:[%s3447_s6 + $0x1108] sm:$0xff] }
  0x62   : > { %v822_v52 = vld [vmem:[%s3447_s6 + $0x1100] sm:$0xff]  ;;  %1373 = vmatpush.msra.mxu1 %v582_v51  ;;  %v1095_v51 = vld [vmem:[%s3447_s6 + $0x1988] sm:$0xff] }
  0x63   : > { %v310_v53 = vld [vmem:[%s3447_s6 + $0x100] sm:$0xff]  ;;  %1397 = vmatpush.msra.mxu2 %v822_v52  ;;  %v311_v52 = vld [vmem:[%s3447_s6 + $0x108] sm:$0xff] }
  0x64   : > { %v1078_v54 = vld [vmem:[%s3447_s6 + $0x1900] sm:$0xff]  ;;  %1351 = vmatpush.msra.mxu0 %v310_v53  ;;  %v583_v53 = vld [vmem:[%s3447_s6 + $0x988] sm:$0xff] }
  0x65   : > { %v566_v55 = vld [vmem:[%s3447_s6 + $0x900] sm:$0xff]  ;;  %1420 = vmatpush.msra.mxu3 %v1078_v54  ;;  %v807_v54 = vld [vmem:[%s3447_s6 + $0x1088] sm:$0xff] }
  0x66   : > { %v806_v56 = vld [vmem:[%s3447_s6 + $0x1080] sm:$0xff]  ;;  %1374 = vmatpush.msra.mxu1 %v566_v55  ;;  %v1079_v55 = vld [vmem:[%s3447_s6 + $0x1908] sm:$0xff] }
  0x67   : > { %v294_v57 = vld [vmem:[%s3447_s6 + $0x80] sm:$0xff]  ;;  %1398 = vmatpush.msra.mxu2 %v806_v56  ;;  %v295_v56 = vld [vmem:[%s3447_s6 + $0x88] sm:$0xff] }
  0x68   : > { %v1062_v58 = vld [vmem:[%s3447_s6 + $0x1880] sm:$0xff]  ;;  %1352 = vmatpush.msra.mxu0 %v294_v57  ;;  %v567_v57 = vld [vmem:[%s3447_s6 + $0x908] sm:$0xff] }
  0x69   : > { %v550_v59 = vld [vmem:[%s3447_s6 + $0x880] sm:$0xff]  ;;  %1421 = vmatpush.msra.mxu3 %v1062_v58  ;;  %v791_v58 = vld [vmem:[%s3447_s6 + $0x1008] sm:$0xff] }
  0x6a   : > { %v790_v60 = vld [vmem:[%s3447_s6 + $0x1000] sm:$0xff]  ;;  %1375 = vmatpush.msra.mxu1 %v550_v59  ;;  %v1063_v59 = vld [vmem:[%s3447_s6 + $0x1888] sm:$0xff] }
  0x6b   : > { %v278_v61 = vld [vmem:[%s3447_s6] sm:$0xff]  ;;  %1399 = vmatpush.msra.mxu2 %v790_v60  ;;  %v3577_v60 = vld [vmem:[#allocation2 + $0x10] sm:$0xff] }
  0x6c   : > { %v1046_v63 = vld [vmem:[%s3447_s6 + $0x1800] sm:$0xff]  ;;  %1353 = vmatpush.msra.mxu0 %v278_v61  ;;  %v279_v61 = vld [vmem:[%s3447_s6 + $0x8] sm:$0xff]  ;;  %1400 = vmatmul.f32.vlgmr.msra.gmra.mxu2 %v3577_v60 }
  0x6d   : > { %v534_v3 = vld [vmem:[%s3447_s6 + $0x800] sm:$0xff]  ;;  %1476 = vmatpush.msrb.mxu2 %v1031_v62  ;;  %1422 = vmatpush.msra.mxu3 %v1046_v63  ;;  %v1032_v62 = vld [vmem:[%s3447_s6 + $0x1790] sm:$0xff]  ;;  %v551_v63 = vld [vmem:[%s3447_s6 + $0x888] sm:$0xff] }
  0x6e   : > { %1430 = vmatpush.msrb.mxu0 %v519_v0  ;;  %1376 = vmatpush.msra.mxu1 %v534_v3  ;;  %v1047_v0 = vld [vmem:[%s3447_s6 + $0x1808] sm:$0xff]  ;;  %v520_v3 = vld [vmem:[%s3447_s6 + $0x790] sm:$0xff] }
  0x6f   : > { %1499 = vmatpush.msrb.mxu3 %v1287_v1  ;;  %1477 = vmatpush.msrb.mxu2 %v1015_v2  ;;  %v3583_v1 = vld [vmem:[#allocation2] sm:$0xff]  ;;  %v3586_v2 = vld [vmem:[#allocation2 + $0x18] sm:$0xff] }
  0x70   : > { %1431 = vmatpush.msrb.mxu0 %v503_v4  ;;  %1453 = vmatpush.msrb.mxu1 %v775_v5  ;;  %v1016_v4 = vld [vmem:[%s3447_s6 + $0x1710] sm:$0xff] }
  0x71   : > { %1478 = vmatpush.msrb.mxu2 %v999_v6  ;;  %1500 = vmatpush.msrb.mxu3 %v1271_v7  ;;  %v1288_v5 = vld [vmem:[%s3447_s6 + $0x1f90] sm:$0xff]  ;;  %v535_v6 = vld [vmem:[%s3447_s6 + $0x808] sm:$0xff] }
  0x72   : > { %1432 = vmatpush.msrb.mxu0 %v487_v8  ;;  %1454 = vmatpush.msrb.mxu1 %v759_v9  ;;  %v504_v7 = vld [vmem:[%s3447_s6 + $0x710] sm:$0xff]  ;;  %v3595_v8 = vld [vmem:[#allocation2 + $0x8] sm:$0xff] }
  0x73   : > { %1479 = vmatpush.msrb.mxu2 %v983_v10  ;;  %1501 = vmatpush.msrb.mxu3 %v1255_v11  ;;  %v1000_v9 = vld [vmem:[%s3447_s6 + $0x1690] sm:$0xff] }
  0x74   : > { %1433 = vmatpush.msrb.mxu0 %v471_v12  ;;  %1455 = vmatpush.msrb.mxu1 %v743_v13  ;;  %v776_v10 = vld [vmem:[%s3447_s6 + $0xf90] sm:$0xff] }
  0x75   : > { %1480 = vmatpush.msrb.mxu2 %v967_v14  ;;  %1502 = vmatpush.msrb.mxu3 %v1239_v15  ;;  %v1272_v11 = vld [vmem:[%s3447_s6 + $0x1f10] sm:$0xff] }
  0x76   : > { %1434 = vmatpush.msrb.mxu0 %v455_v16  ;;  %1456 = vmatpush.msrb.mxu1 %v727_v17  ;;  %v488_v12 = vld [vmem:[%s3447_s6 + $0x690] sm:$0xff] }
  0x77   : > { %1481 = vmatpush.msrb.mxu2 %v951_v18  ;;  %1503 = vmatpush.msrb.mxu3 %v1223_v19  ;;  %v984_v13 = vld [vmem:[%s3447_s6 + $0x1610] sm:$0xff] }
  0x78   : > { %1435 = vmatpush.msrb.mxu0 %v439_v20  ;;  %1457 = vmatpush.msrb.mxu1 %v711_v21  ;;  %v760_v14 = vld [vmem:[%s3447_s6 + $0xf10] sm:$0xff] }
  0x79   : > { %1482 = vmatpush.msrb.mxu2 %v935_v22  ;;  %1504 = vmatpush.msrb.mxu3 %v1207_v23  ;;  %v1256_v15 = vld [vmem:[%s3447_s6 + $0x1e90] sm:$0xff] }
  0x7a   : > { %1436 = vmatpush.msrb.mxu0 %v423_v24  ;;  %1458 = vmatpush.msrb.mxu1 %v695_v25  ;;  %v472_v16 = vld [vmem:[%s3447_s6 + $0x610] sm:$0xff] }
  0x7b   : > { %1483 = vmatpush.msrb.mxu2 %v919_v26  ;;  %1505 = vmatpush.msrb.mxu3 %v1191_v27  ;;  %v968_v17 = vld [vmem:[%s3447_s6 + $0x1590] sm:$0xff] }
  0x7c   : > { %1437 = vmatpush.msrb.mxu0 %v407_v28  ;;  %1459 = vmatpush.msrb.mxu1 %v679_v29  ;;  %v744_v18 = vld [vmem:[%s3447_s6 + $0xe90] sm:$0xff] }
  0x7d   : > { %1484 = vmatpush.msrb.mxu2 %v903_v30  ;;  %1506 = vmatpush.msrb.mxu3 %v1175_v31  ;;  %v1240_v19 = vld [vmem:[%s3447_s6 + $0x1e10] sm:$0xff] }
  0x7e   : > { %1438 = vmatpush.msrb.mxu0 %v391_v32  ;;  %1460 = vmatpush.msrb.mxu1 %v663_v33  ;;  %v456_v20 = vld [vmem:[%s3447_s6 + $0x590] sm:$0xff] }
  0x7f   : > { %1485 = vmatpush.msrb.mxu2 %v887_v34  ;;  %1507 = vmatpush.msrb.mxu3 %v1159_v35  ;;  %v952_v21 = vld [vmem:[%s3447_s6 + $0x1510] sm:$0xff] }
  0x80   : > { %1439 = vmatpush.msrb.mxu0 %v375_v36  ;;  %1461 = vmatpush.msrb.mxu1 %v647_v37  ;;  %v728_v22 = vld [vmem:[%s3447_s6 + $0xe10] sm:$0xff] }
  0x81   : > { %1486 = vmatpush.msrb.mxu2 %v871_v38  ;;  %1508 = vmatpush.msrb.mxu3 %v1143_v39  ;;  %v1224_v23 = vld [vmem:[%s3447_s6 + $0x1d90] sm:$0xff] }
  0x82   : > { %1440 = vmatpush.msrb.mxu0 %v359_v40  ;;  %1462 = vmatpush.msrb.mxu1 %v631_v41  ;;  %v440_v24 = vld [vmem:[%s3447_s6 + $0x510] sm:$0xff] }
  0x83   : > { %1487 = vmatpush.msrb.mxu2 %v855_v42  ;;  %1509 = vmatpush.msrb.mxu3 %v1127_v43  ;;  %v936_v25 = vld [vmem:[%s3447_s6 + $0x1490] sm:$0xff] }
  0x84   : > { %1441 = vmatpush.msrb.mxu0 %v343_v44  ;;  %1463 = vmatpush.msrb.mxu1 %v615_v45  ;;  %v712_v26 = vld [vmem:[%s3447_s6 + $0xd90] sm:$0xff] }
  0x85   : > { %1488 = vmatpush.msrb.mxu2 %v839_v46  ;;  %1510 = vmatpush.msrb.mxu3 %v1111_v47  ;;  %v1208_v27 = vld [vmem:[%s3447_s6 + $0x1d10] sm:$0xff] }
  0x86   : > { %1442 = vmatpush.msrb.mxu0 %v327_v48  ;;  %1464 = vmatpush.msrb.mxu1 %v599_v49  ;;  %v424_v28 = vld [vmem:[%s3447_s6 + $0x490] sm:$0xff] }
  0x87   : > { %1489 = vmatpush.msrb.mxu2 %v823_v50  ;;  %1511 = vmatpush.msrb.mxu3 %v1095_v51  ;;  %v920_v29 = vld [vmem:[%s3447_s6 + $0x1410] sm:$0xff] }
  0x88   : > { %1443 = vmatpush.msrb.mxu0 %v311_v52  ;;  %1465 = vmatpush.msrb.mxu1 %v583_v53  ;;  %v696_v30 = vld [vmem:[%s3447_s6 + $0xd10] sm:$0xff]  ;;  %v3643_v53 = vld [vmem:[#allocation2 + $0x20] sm:$0xff] }
  0x89   : > { %1490 = vmatpush.msrb.mxu2 %v807_v54  ;;  %1512 = vmatpush.msrb.mxu3 %v1079_v55  ;;  %v1192_v31 = vld [vmem:[%s3447_s6 + $0x1c90] sm:$0xff]  ;;  %v3646_v54 = vld [vmem:[#allocation2 + $0x38] sm:$0xff] }
  0x8a   : > { %1444 = vmatpush.msrb.mxu0 %v295_v56  ;;  %1466 = vmatpush.msrb.mxu1 %v567_v57  ;;  %v408_v32 = vld [vmem:[%s3447_s6 + $0x410] sm:$0xff] }
  0x8b   : > { %1491 = vmatpush.msrb.mxu2 %v791_v58  ;;  %1513 = vmatpush.msrb.mxu3 %v1063_v59  ;;  %v904_v33 = vld [vmem:[%s3447_s6 + $0x1390] sm:$0xff]  ;;  %v3653_v59 = vld [vmem:[#allocation2 + $0x28] sm:$0xff] }
  0x8c   : > { %1445 = vmatpush.msrb.mxu0 %v279_v61  ;;  %1467 = vmatpush.msrb.mxu1 %v551_v63  ;;  %v680_v34 = vld [vmem:[%s3447_s6 + $0xc90] sm:$0xff] }
  0x8d   : > { %1568 = vmatpush.msra.mxu2 %v1032_v62  ;;  %1514 = vmatpush.msrb.mxu3 %v1047_v0  ;;  %v1176_v35 = vld [vmem:[%s3447_s6 + $0x1c10] sm:$0xff] }
  0x8e   : > { %1354 = vmatmul.f32.vlgmr.msra.gmra.mxu0 %v3583_v1  ;;  %1423 = vmatmul.f32.vlgmr.msra.gmra.mxu3 %v3586_v2  ;;  %v392_v36 = vld [vmem:[%s3447_s6 + $0x390] sm:$0xff] }
  0x8f   : > { %1522 = vmatpush.msra.mxu0 %v520_v3  ;;  %1569 = vmatpush.msra.mxu2 %v1016_v4  ;;  %v888_v37 = vld [vmem:[%s3447_s6 + $0x1310] sm:$0xff] }
  0x90   : > { %1591 = vmatpush.msra.mxu3 %v1288_v5  ;;  %1468 = vmatpush.msrb.mxu1 %v535_v6  ;;  %v664_v38 = vld [vmem:[%s3447_s6 + $0xc10] sm:$0xff] }
  0x91   : > { %1523 = vmatpush.msra.mxu0 %v504_v7  ;;  %1377 = vmatmul.f32.vlgmr.msra.gmra.mxu1 %v3595_v8  ;;  %v1160_v39 = vld [vmem:[%s3447_s6 + $0x1b90] sm:$0xff] }
  0x92   : > { %1570 = vmatpush.msra.mxu2 %v1000_v9  ;;  %1545 = vmatpush.msra.mxu1 %v776_v10  ;;  %v376_v40 = vld [vmem:[%s3447_s6 + $0x310] sm:$0xff]  ;;  %v1033_v9 = vld [vmem:[%s3447_s6 + $0x1798] sm:$0xff] }
  0x93   : > { %1592 = vmatpush.msra.mxu3 %v1272_v11  ;;  %1524 = vmatpush.msra.mxu0 %v488_v12  ;;  %v872_v41 = vld [vmem:[%s3447_s6 + $0x1290] sm:$0xff]  ;;  %v521_v12 = vld [vmem:[%s3447_s6 + $0x798] sm:$0xff] }
  0x94   : > { %1571 = vmatpush.msra.mxu2 %v984_v13  ;;  %1546 = vmatpush.msra.mxu1 %v760_v14  ;;  %v648_v42 = vld [vmem:[%s3447_s6 + $0xb90] sm:$0xff]  ;;  %v1017_v13 = vld [vmem:[%s3447_s6 + $0x1718] sm:$0xff] }
  0x95   : > { %1593 = vmatpush.msra.mxu3 %v1256_v15  ;;  %1525 = vmatpush.msra.mxu0 %v472_v16  ;;  %v1144_v43 = vld [vmem:[%s3447_s6 + $0x1b10] sm:$0xff]  ;;  %v1289_v14 = vld [vmem:[%s3447_s6 + $0x1f98] sm:$0xff] }
  0x96   : > { %1572 = vmatpush.msra.mxu2 %v968_v17  ;;  %1547 = vmatpush.msra.mxu1 %v744_v18  ;;  %v360_v44 = vld [vmem:[%s3447_s6 + $0x290] sm:$0xff]  ;;  %v505_v16 = vld [vmem:[%s3447_s6 + $0x718] sm:$0xff] }
  0x97   : > { %1594 = vmatpush.msra.mxu3 %v1240_v19  ;;  %1526 = vmatpush.msra.mxu0 %v456_v20  ;;  %v856_v45 = vld [vmem:[%s3447_s6 + $0x1210] sm:$0xff]  ;;  %v1001_v17 = vld [vmem:[%s3447_s6 + $0x1698] sm:$0xff] }
  0x98   : > { %1573 = vmatpush.msra.mxu2 %v952_v21  ;;  %1548 = vmatpush.msra.mxu1 %v728_v22  ;;  %v632_v46 = vld [vmem:[%s3447_s6 + $0xb10] sm:$0xff]  ;;  %v777_v18 = vld [vmem:[%s3447_s6 + $0xf98] sm:$0xff] }
  0x99   : > { %1595 = vmatpush.msra.mxu3 %v1224_v23  ;;  %1527 = vmatpush.msra.mxu0 %v440_v24  ;;  %v1128_v47 = vld [vmem:[%s3447_s6 + $0x1a90] sm:$0xff]  ;;  %v1273_v19 = vld [vmem:[%s3447_s6 + $0x1f18] sm:$0xff] }
  0x9a   : > { %1574 = vmatpush.msra.mxu2 %v936_v25  ;;  %1549 = vmatpush.msra.mxu1 %v712_v26  ;;  %v3637_v48 = vld [vmem:[#allocation2 + $0x30] sm:$0xff]  ;;  %v489_v20 = vld [vmem:[%s3447_s6 + $0x698] sm:$0xff] }
  0x9b   : > { %1596 = vmatpush.msra.mxu3 %v1208_v27  ;;  %1528 = vmatpush.msra.mxu0 %v424_v28  ;;  %v344_v49 = vld [vmem:[%s3447_s6 + $0x210] sm:$0xff]  ;;  %v985_v21 = vld [vmem:[%s3447_s6 + $0x1618] sm:$0xff] }
  0x9c   : > { %1575 = vmatpush.msra.mxu2 %v920_v29  ;;  %1550 = vmatpush.msra.mxu1 %v696_v30  ;;  %v616_v50 = vld [vmem:[%s3447_s6 + $0xa90] sm:$0xff]  ;;  %v761_v22 = vld [vmem:[%s3447_s6 + $0xf18] sm:$0xff] }
  0x9d   : > { %1597 = vmatpush.msra.mxu3 %v1192_v31  ;;  %1529 = vmatpush.msra.mxu0 %v408_v32  ;;  %v840_v51 = vld [vmem:[%s3447_s6 + $0x1190] sm:$0xff]  ;;  %v1257_v23 = vld [vmem:[%s3447_s6 + $0x1e98] sm:$0xff] }
  0x9e   : > { %1576 = vmatpush.msra.mxu2 %v904_v33  ;;  %1551 = vmatpush.msra.mxu1 %v680_v34  ;;  %v1112_v52 = vld [vmem:[%s3447_s6 + $0x1a10] sm:$0xff]  ;;  %v473_v24 = vld [vmem:[%s3447_s6 + $0x618] sm:$0xff] }
  0x9f   : > { %1598 = vmatpush.msra.mxu3 %v1176_v35  ;;  %1530 = vmatpush.msra.mxu0 %v392_v36  ;;  %v328_v55 = vld [vmem:[%s3447_s6 + $0x190] sm:$0xff]  ;;  %v969_v25 = vld [vmem:[%s3447_s6 + $0x1598] sm:$0xff] }
  0xa0   : > { %1577 = vmatpush.msra.mxu2 %v888_v37  ;;  %1552 = vmatpush.msra.mxu1 %v664_v38  ;;  %v600_v56 = vld [vmem:[%s3447_s6 + $0xa10] sm:$0xff]  ;;  %v745_v26 = vld [vmem:[%s3447_s6 + $0xe98] sm:$0xff] }
  0xa1   : > { %1599 = vmatpush.msra.mxu3 %v1160_v39  ;;  %1531 = vmatpush.msra.mxu0 %v376_v40  ;;  %v824_v57 = vld [vmem:[%s3447_s6 + $0x1110] sm:$0xff]  ;;  %v1241_v27 = vld [vmem:[%s3447_s6 + $0x1e18] sm:$0xff] }
  0xa2   : > { %1578 = vmatpush.msra.mxu2 %v872_v41  ;;  %1553 = vmatpush.msra.mxu1 %v648_v42  ;;  %v1096_v58 = vld [vmem:[%s3447_s6 + $0x1990] sm:$0xff]  ;;  %v457_v28 = vld [vmem:[%s3447_s6 + $0x598] sm:$0xff] }
  0xa3   : > { %1600 = vmatpush.msra.mxu3 %v1144_v43  ;;  %1532 = vmatpush.msra.mxu0 %v360_v44  ;;  %v312_v61 = vld [vmem:[%s3447_s6 + $0x110] sm:$0xff]  ;;  %v953_v29 = vld [vmem:[%s3447_s6 + $0x1518] sm:$0xff] }
  0xa4   : > { %1579 = vmatpush.msra.mxu2 %v856_v45  ;;  %1554 = vmatpush.msra.mxu1 %v632_v46  ;;  %v584_v62 = vld [vmem:[%s3447_s6 + $0x990] sm:$0xff]  ;;  %v729_v30 = vld [vmem:[%s3447_s6 + $0xe18] sm:$0xff] }
  0xa5   : > { %1601 = vmatpush.msra.mxu3 %v1128_v47  ;;  %1403 = vmatmul.f32.gmra.mxu2 %v3637_v48  ;;  %v808_v63 = vld [vmem:[%s3447_s6 + $0x1090] sm:$0xff]  ;;  %v1225_v31 = vld [vmem:[%s3447_s6 + $0x1d98] sm:$0xff] }
  0xa6   : > { %1533 = vmatpush.msra.mxu0 %v344_v49  ;;  %1555 = vmatpush.msra.mxu1 %v616_v50  ;;  %v1080_v0 = vld [vmem:[%s3447_s6 + $0x1910] sm:$0xff]  ;;  %v441_v32 = vld [vmem:[%s3447_s6 + $0x518] sm:$0xff] }
  0xa7   : > { %1580 = vmatpush.msra.mxu2 %v840_v51  ;;  %1602 = vmatpush.msra.mxu3 %v1112_v52  ;;  %v296_v3 = vld [vmem:[%s3447_s6 + $0x90] sm:$0xff]  ;;  %v937_v33 = vld [vmem:[%s3447_s6 + $0x1498] sm:$0xff] }
  0xa8   : > { %1357 = vmatmul.f32.gmra.mxu0 %v3643_v53  ;;  %1426 = vmatmul.f32.gmra.mxu3 %v3646_v54  ;;  %v568_v4 = vld [vmem:[%s3447_s6 + $0x910] sm:$0xff]  ;;  %v713_v34 = vld [vmem:[%s3447_s6 + $0xd98] sm:$0xff] }
  0xa9   : > { %1534 = vmatpush.msra.mxu0 %v328_v55  ;;  %1556 = vmatpush.msra.mxu1 %v600_v56  ;;  %v792_v5 = vld [vmem:[%s3447_s6 + $0x1010] sm:$0xff]  ;;  %v1209_v35 = vld [vmem:[%s3447_s6 + $0x1d18] sm:$0xff] }
  0xaa   : > { %1581 = vmatpush.msra.mxu2 %v824_v57  ;;  %1603 = vmatpush.msra.mxu3 %v1096_v58  ;;  %v1064_v6 = vld [vmem:[%s3447_s6 + $0x1890] sm:$0xff]  ;;  %v425_v36 = vld [vmem:[%s3447_s6 + $0x498] sm:$0xff] }
  0xab   : > { %1380 = vmatmul.f32.gmra.mxu1 %v3653_v59  ;;  %1535 = vmatpush.msra.mxu0 %v312_v61  ;;  %v280_v7 = vld [vmem:[%s3447_s6 + $0x10] sm:$0xff]  ;;  %v921_v37 = vld [vmem:[%s3447_s6 + $0x1418] sm:$0xff] }
  0xac   : > { %1557 = vmatpush.msra.mxu1 %v584_v62  ;;  %1582 = vmatpush.msra.mxu2 %v808_v63  ;;  %v552_v10 = vld [vmem:[%s3447_s6 + $0x890] sm:$0xff]  ;;  %v697_v38 = vld [vmem:[%s3447_s6 + $0xd18] sm:$0xff] }
  0xad   : > { %1604 = vmatpush.msra.mxu3 %v1080_v0  ;;  %1536 = vmatpush.msra.mxu0 %v296_v3  ;;  %v1048_v11 = vld [vmem:[%s3447_s6 + $0x1810] sm:$0xff]  ;;  %v1193_v39 = vld [vmem:[%s3447_s6 + $0x1c98] sm:$0xff] }
  0xae   : > { %1558 = vmatpush.msra.mxu1 %v568_v4  ;;  %1583 = vmatpush.msra.mxu2 %v792_v5  ;;  %v536_v15 = vld [vmem:[%s3447_s6 + $0x810] sm:$0xff]  ;;  %v409_v40 = vld [vmem:[%s3447_s6 + $0x418] sm:$0xff] }
  0xaf   : > { %1605 = vmatpush.msra.mxu3 %v1064_v6  ;;  %1492 = vmatmul.f32.vlgmr.msrb.gmra.mxu2 %v3577_v60  ;;  %v905_v41 = vld [vmem:[%s3447_s6 + $0x1398] sm:$0xff] }
  0xb0   : > { %1537 = vmatpush.msra.mxu0 %v280_v7  ;;  %1660 = vmatpush.msrb.mxu2 %v1033_v9  ;;  %v681_v42 = vld [vmem:[%s3447_s6 + $0xc98] sm:$0xff] }
  0xb1   : > { %1559 = vmatpush.msra.mxu1 %v552_v10  ;;  %1606 = vmatpush.msra.mxu3 %v1048_v11  ;;  %v1177_v43 = vld [vmem:[%s3447_s6 + $0x1c18] sm:$0xff] }
  0xb2   : > { %1446 = vmatmul.f32.vlgmr.msrb.gmra.mxu0 %v3583_v1  ;;  %1515 = vmatmul.f32.vlgmr.msrb.gmra.mxu3 %v3586_v2  ;;  %v393_v44 = vld [vmem:[%s3447_s6 + $0x398] sm:$0xff] }
  0xb3   : > { %1614 = vmatpush.msrb.mxu0 %v521_v12  ;;  %1661 = vmatpush.msrb.mxu2 %v1017_v13  ;;  %v889_v45 = vld [vmem:[%s3447_s6 + $0x1318] sm:$0xff] }
  0xb4   : > { %1683 = vmatpush.msrb.mxu3 %v1289_v14  ;;  %1560 = vmatpush.msra.mxu1 %v536_v15  ;;  %v665_v46 = vld [vmem:[%s3447_s6 + $0xc18] sm:$0xff] }
  0xb5   : > { %1615 = vmatpush.msrb.mxu0 %v505_v16  ;;  %1469 = vmatmul.f32.vlgmr.msrb.gmra.mxu1 %v3595_v8  ;;  %v1161_v47 = vld [vmem:[%s3447_s6 + $0x1b98] sm:$0xff] }
  0xb6   : > { %1662 = vmatpush.msrb.mxu2 %v1001_v17  ;;  %1637 = vmatpush.msrb.mxu1 %v777_v18  ;;  %v377_v49 = vld [vmem:[%s3447_s6 + $0x318] sm:$0xff]  ;;  %v1034_v17 = vld [vmem:[%s3447_s6 + $0x17a0] sm:$0xff] }
  0xb7   : > { %1684 = vmatpush.msrb.mxu3 %v1273_v19  ;;  %1616 = vmatpush.msrb.mxu0 %v489_v20  ;;  %v873_v50 = vld [vmem:[%s3447_s6 + $0x1298] sm:$0xff]  ;;  %v522_v20 = vld [vmem:[%s3447_s6 + $0x7a0] sm:$0xff] }
  0xb8   : > { %1663 = vmatpush.msrb.mxu2 %v985_v21  ;;  %1638 = vmatpush.msrb.mxu1 %v761_v22  ;;  %v649_v51 = vld [vmem:[%s3447_s6 + $0xb98] sm:$0xff]  ;;  %v1018_v21 = vld [vmem:[%s3447_s6 + $0x1720] sm:$0xff] }
  0xb9   : > { %1685 = vmatpush.msrb.mxu3 %v1257_v23  ;;  %1617 = vmatpush.msrb.mxu0 %v473_v24  ;;  %v1145_v52 = vld [vmem:[%s3447_s6 + $0x1b18] sm:$0xff]  ;;  %v1290_v22 = vld [vmem:[%s3447_s6 + $0x1fa0] sm:$0xff] }
  0xba   : > { %1664 = vmatpush.msrb.mxu2 %v969_v25  ;;  %1639 = vmatpush.msrb.mxu1 %v745_v26  ;;  %v361_v55 = vld [vmem:[%s3447_s6 + $0x298] sm:$0xff]  ;;  %v506_v24 = vld [vmem:[%s3447_s6 + $0x720] sm:$0xff] }
  0xbb   : > { %1686 = vmatpush.msrb.mxu3 %v1241_v27  ;;  %1618 = vmatpush.msrb.mxu0 %v457_v28  ;;  %v857_v56 = vld [vmem:[%s3447_s6 + $0x1218] sm:$0xff]  ;;  %v1002_v25 = vld [vmem:[%s3447_s6 + $0x16a0] sm:$0xff] }
  0xbc   : > { %1665 = vmatpush.msrb.mxu2 %v953_v29  ;;  %1640 = vmatpush.msrb.mxu1 %v729_v30  ;;  %v633_v57 = vld [vmem:[%s3447_s6 + $0xb18] sm:$0xff]  ;;  %v778_v26 = vld [vmem:[%s3447_s6 + $0xfa0] sm:$0xff] }
  0xbd   : > { %1687 = vmatpush.msrb.mxu3 %v1225_v31  ;;  %1619 = vmatpush.msrb.mxu0 %v441_v32  ;;  %v1129_v58 = vld [vmem:[%s3447_s6 + $0x1a98] sm:$0xff]  ;;  %v1274_v27 = vld [vmem:[%s3447_s6 + $0x1f20] sm:$0xff] }
  0xbe   : > { %1666 = vmatpush.msrb.mxu2 %v937_v33  ;;  %1641 = vmatpush.msrb.mxu1 %v713_v34  ;;  %v345_v61 = vld [vmem:[%s3447_s6 + $0x218] sm:$0xff]  ;;  %v490_v28 = vld [vmem:[%s3447_s6 + $0x6a0] sm:$0xff] }
  0xbf   : > { %1688 = vmatpush.msrb.mxu3 %v1209_v35  ;;  %1620 = vmatpush.msrb.mxu0 %v425_v36  ;;  %v617_v62 = vld [vmem:[%s3447_s6 + $0xa98] sm:$0xff]  ;;  %v986_v29 = vld [vmem:[%s3447_s6 + $0x1620] sm:$0xff] }
  0xc0   : > { %1667 = vmatpush.msrb.mxu2 %v921_v37  ;;  %1642 = vmatpush.msrb.mxu1 %v697_v38  ;;  %v841_v63 = vld [vmem:[%s3447_s6 + $0x1198] sm:$0xff]  ;;  %v762_v30 = vld [vmem:[%s3447_s6 + $0xf20] sm:$0xff] }
  0xc1   : > { %1689 = vmatpush.msrb.mxu3 %v1193_v39  ;;  %1621 = vmatpush.msrb.mxu0 %v409_v40  ;;  %v1113_v0 = vld [vmem:[%s3447_s6 + $0x1a18] sm:$0xff]  ;;  %v1258_v31 = vld [vmem:[%s3447_s6 + $0x1ea0] sm:$0xff] }
  0xc2   : > { %1668 = vmatpush.msrb.mxu2 %v905_v41  ;;  %1643 = vmatpush.msrb.mxu1 %v681_v42  ;;  %v329_v3 = vld [vmem:[%s3447_s6 + $0x198] sm:$0xff]  ;;  %v474_v32 = vld [vmem:[%s3447_s6 + $0x620] sm:$0xff] }
  0xc3   : > { %1690 = vmatpush.msrb.mxu3 %v1177_v43  ;;  %1622 = vmatpush.msrb.mxu0 %v393_v44  ;;  %v601_v4 = vld [vmem:[%s3447_s6 + $0xa18] sm:$0xff]  ;;  %v970_v33 = vld [vmem:[%s3447_s6 + $0x15a0] sm:$0xff] }
  0xc4   : > { %1669 = vmatpush.msrb.mxu2 %v889_v45  ;;  %1644 = vmatpush.msrb.mxu1 %v665_v46  ;;  %v825_v5 = vld [vmem:[%s3447_s6 + $0x1118] sm:$0xff]  ;;  %v746_v34 = vld [vmem:[%s3447_s6 + $0xea0] sm:$0xff] }
  0xc5   : > { %1691 = vmatpush.msrb.mxu3 %v1161_v47  ;;  %1623 = vmatpush.msrb.mxu0 %v377_v49  ;;  %v1097_v6 = vld [vmem:[%s3447_s6 + $0x1998] sm:$0xff]  ;;  %v1242_v35 = vld [vmem:[%s3447_s6 + $0x1e20] sm:$0xff] }
  0xc6   : > { %1670 = vmatpush.msrb.mxu2 %v873_v50  ;;  %1645 = vmatpush.msrb.mxu1 %v649_v51  ;;  %v313_v7 = vld [vmem:[%s3447_s6 + $0x118] sm:$0xff]  ;;  %v458_v36 = vld [vmem:[%s3447_s6 + $0x5a0] sm:$0xff] }
  0xc7   : > { %1692 = vmatpush.msrb.mxu3 %v1145_v52  ;;  %1624 = vmatpush.msrb.mxu0 %v361_v55  ;;  %v585_v9 = vld [vmem:[%s3447_s6 + $0x998] sm:$0xff]  ;;  %v954_v37 = vld [vmem:[%s3447_s6 + $0x1520] sm:$0xff] }
  0xc8   : > { %1671 = vmatpush.msrb.mxu2 %v857_v56  ;;  %1646 = vmatpush.msrb.mxu1 %v633_v57  ;;  %v809_v10 = vld [vmem:[%s3447_s6 + $0x1098] sm:$0xff]  ;;  %v730_v38 = vld [vmem:[%s3447_s6 + $0xe20] sm:$0xff] }
  0xc9   : > { %1693 = vmatpush.msrb.mxu3 %v1129_v58  ;;  %1495 = vmatmul.f32.gmra.mxu2 %v3637_v48  ;;  %v1081_v11 = vld [vmem:[%s3447_s6 + $0x1918] sm:$0xff]  ;;  %v1226_v39 = vld [vmem:[%s3447_s6 + $0x1da0] sm:$0xff] }
  0xca   : > { %1625 = vmatpush.msrb.mxu0 %v345_v61  ;;  %1647 = vmatpush.msrb.mxu1 %v617_v62  ;;  %v297_v12 = vld [vmem:[%s3447_s6 + $0x98] sm:$0xff]  ;;  %v442_v40 = vld [vmem:[%s3447_s6 + $0x520] sm:$0xff] }
  0xcb   : > { %1672 = vmatpush.msrb.mxu2 %v841_v63  ;;  %1694 = vmatpush.msrb.mxu3 %v1113_v0  ;;  %v569_v13 = vld [vmem:[%s3447_s6 + $0x918] sm:$0xff]  ;;  %v938_v41 = vld [vmem:[%s3447_s6 + $0x14a0] sm:$0xff] }
  0xcc   : > { %1449 = vmatmul.f32.gmra.mxu0 %v3643_v53  ;;  %1518 = vmatmul.f32.gmra.mxu3 %v3646_v54  ;;  %v793_v14 = vld [vmem:[%s3447_s6 + $0x1018] sm:$0xff]  ;;  %v714_v42 = vld [vmem:[%s3447_s6 + $0xda0] sm:$0xff] }
  0xcd   : > { %1626 = vmatpush.msrb.mxu0 %v329_v3  ;;  %1648 = vmatpush.msrb.mxu1 %v601_v4  ;;  %v1065_v15 = vld [vmem:[%s3447_s6 + $0x1898] sm:$0xff]  ;;  %v1210_v43 = vld [vmem:[%s3447_s6 + $0x1d20] sm:$0xff] }
  0xce   : > { %1673 = vmatpush.msrb.mxu2 %v825_v5  ;;  %1695 = vmatpush.msrb.mxu3 %v1097_v6  ;;  %v281_v16 = vld [vmem:[%s3447_s6 + $0x18] sm:$0xff]  ;;  %v426_v44 = vld [vmem:[%s3447_s6 + $0x4a0] sm:$0xff] }
  0xcf   : > { %1472 = vmatmul.f32.gmra.mxu1 %v3653_v59  ;;  %1627 = vmatpush.msrb.mxu0 %v313_v7  ;;  %v553_v18 = vld [vmem:[%s3447_s6 + $0x898] sm:$0xff]  ;;  %v922_v45 = vld [vmem:[%s3447_s6 + $0x1420] sm:$0xff] }
  0xd0   : > { %1649 = vmatpush.msrb.mxu1 %v585_v9  ;;  %1674 = vmatpush.msrb.mxu2 %v809_v10  ;;  %v1049_v19 = vld [vmem:[%s3447_s6 + $0x1818] sm:$0xff]  ;;  %v698_v46 = vld [vmem:[%s3447_s6 + $0xd20] sm:$0xff] }
  0xd1   : > { %1696 = vmatpush.msrb.mxu3 %v1081_v11  ;;  %1628 = vmatpush.msrb.mxu0 %v297_v12  ;;  %v537_v23 = vld [vmem:[%s3447_s6 + $0x818] sm:$0xff]  ;;  %v1194_v47 = vld [vmem:[%s3447_s6 + $0x1ca0] sm:$0xff] }
  0xd2   : > { %1650 = vmatpush.msrb.mxu1 %v569_v13  ;;  %1675 = vmatpush.msrb.mxu2 %v793_v14  ;;  %v410_v49 = vld [vmem:[%s3447_s6 + $0x420] sm:$0xff] }
  0xd3   : > { %1697 = vmatpush.msrb.mxu3 %v1065_v15  ;;  %1584 = vmatmul.f32.vlgmr.msra.gmra.mxu2 %v3577_v60  ;;  %v906_v50 = vld [vmem:[%s3447_s6 + $0x13a0] sm:$0xff] }
  0xd4   : > { %1629 = vmatpush.msrb.mxu0 %v281_v16  ;;  %1752 = vmatpush.msra.mxu2 %v1034_v17  ;;  %v682_v51 = vld [vmem:[%s3447_s6 + $0xca0] sm:$0xff] }
  0xd5   : > { %1651 = vmatpush.msrb.mxu1 %v553_v18  ;;  %1698 = vmatpush.msrb.mxu3 %v1049_v19  ;;  %v1178_v52 = vld [vmem:[%s3447_s6 + $0x1c20] sm:$0xff] }
  0xd6   : > { %1538 = vmatmul.f32.vlgmr.msra.gmra.mxu0 %v3583_v1  ;;  %1607 = vmatmul.f32.vlgmr.msra.gmra.mxu3 %v3586_v2  ;;  %v394_v55 = vld [vmem:[%s3447_s6 + $0x3a0] sm:$0xff] }
  0xd7   : > { %1706 = vmatpush.msra.mxu0 %v522_v20  ;;  %1753 = vmatpush.msra.mxu2 %v1018_v21  ;;  %v890_v56 = vld [vmem:[%s3447_s6 + $0x1320] sm:$0xff] }
  0xd8   : > { %1775 = vmatpush.msra.mxu3 %v1290_v22  ;;  %1652 = vmatpush.msrb.mxu1 %v537_v23  ;;  %v666_v57 = vld [vmem:[%s3447_s6 + $0xc20] sm:$0xff] }
  0xd9   : > { %1707 = vmatpush.msra.mxu0 %v506_v24  ;;  %1561 = vmatmul.f32.vlgmr.msra.gmra.mxu1 %v3595_v8  ;;  %v1162_v58 = vld [vmem:[%s3447_s6 + $0x1ba0] sm:$0xff] }
  0xda   : > { %1754 = vmatpush.msra.mxu2 %v1002_v25  ;;  %1729 = vmatpush.msra.mxu1 %v778_v26  ;;  %v378_v61 = vld [vmem:[%s3447_s6 + $0x320] sm:$0xff]  ;;  %v1035_v25 = vld [vmem:[%s3447_s6 + $0x17a8] sm:$0xff] }
  0xdb   : > { %1776 = vmatpush.msra.mxu3 %v1274_v27  ;;  %1708 = vmatpush.msra.mxu0 %v490_v28  ;;  %v874_v62 = vld [vmem:[%s3447_s6 + $0x12a0] sm:$0xff]  ;;  %v523_v28 = vld [vmem:[%s3447_s6 + $0x7a8] sm:$0xff] }
  0xdc   : > { %1755 = vmatpush.msra.mxu2 %v986_v29  ;;  %1730 = vmatpush.msra.mxu1 %v762_v30  ;;  %v650_v63 = vld [vmem:[%s3447_s6 + $0xba0] sm:$0xff]  ;;  %v1019_v29 = vld [vmem:[%s3447_s6 + $0x1728] sm:$0xff] }
  0xdd   : > { %1777 = vmatpush.msra.mxu3 %v1258_v31  ;;  %1709 = vmatpush.msra.mxu0 %v474_v32  ;;  %v1146_v0 = vld [vmem:[%s3447_s6 + $0x1b20] sm:$0xff]  ;;  %v1291_v30 = vld [vmem:[%s3447_s6 + $0x1fa8] sm:$0xff] }
  0xde   : > { %1756 = vmatpush.msra.mxu2 %v970_v33  ;;  %1731 = vmatpush.msra.mxu1 %v746_v34  ;;  %v362_v3 = vld [vmem:[%s3447_s6 + $0x2a0] sm:$0xff]  ;;  %v507_v32 = vld [vmem:[%s3447_s6 + $0x728] sm:$0xff] }
  0xdf   : > { %1778 = vmatpush.msra.mxu3 %v1242_v35  ;;  %1710 = vmatpush.msra.mxu0 %v458_v36  ;;  %v858_v4 = vld [vmem:[%s3447_s6 + $0x1220] sm:$0xff]  ;;  %v779_v33 = vld [vmem:[%s3447_s6 + $0xfa8] sm:$0xff] }
  0xe0   : > { %1757 = vmatpush.msra.mxu2 %v954_v37  ;;  %1732 = vmatpush.msra.mxu1 %v730_v38  ;;  %v634_v5 = vld [vmem:[%s3447_s6 + $0xb20] sm:$0xff]  ;;  %v1275_v34 = vld [vmem:[%s3447_s6 + $0x1f28] sm:$0xff] }
  0xe1   : > { %1779 = vmatpush.msra.mxu3 %v1226_v39  ;;  %1711 = vmatpush.msra.mxu0 %v442_v40  ;;  %v1130_v6 = vld [vmem:[%s3447_s6 + $0x1aa0] sm:$0xff]  ;;  %v987_v35 = vld [vmem:[%s3447_s6 + $0x1628] sm:$0xff] }
  0xe2   : > { %1758 = vmatpush.msra.mxu2 %v938_v41  ;;  %1733 = vmatpush.msra.mxu1 %v714_v42  ;;  %v346_v7 = vld [vmem:[%s3447_s6 + $0x220] sm:$0xff]  ;;  %v1259_v36 = vld [vmem:[%s3447_s6 + $0x1ea8] sm:$0xff] }
  0xe3   : > { %1780 = vmatpush.msra.mxu3 %v1210_v43  ;;  %1712 = vmatpush.msra.mxu0 %v426_v44  ;;  %v618_v9 = vld [vmem:[%s3447_s6 + $0xaa0] sm:$0xff]  ;;  %v475_v37 = vld [vmem:[%s3447_s6 + $0x628] sm:$0xff] }
  0xe4   : > { %1759 = vmatpush.msra.mxu2 %v922_v45  ;;  %1734 = vmatpush.msra.mxu1 %v698_v46  ;;  %v842_v10 = vld [vmem:[%s3447_s6 + $0x11a0] sm:$0xff]  ;;  %v971_v38 = vld [vmem:[%s3447_s6 + $0x15a8] sm:$0xff] }
  0xe5   : > { %1781 = vmatpush.msra.mxu3 %v1194_v47  ;;  %1713 = vmatpush.msra.mxu0 %v410_v49  ;;  %v1114_v11 = vld [vmem:[%s3447_s6 + $0x1a20] sm:$0xff]  ;;  %v747_v39 = vld [vmem:[%s3447_s6 + $0xea8] sm:$0xff] }
  0xe6   : > { %1760 = vmatpush.msra.mxu2 %v906_v50  ;;  %1735 = vmatpush.msra.mxu1 %v682_v51  ;;  %v330_v12 = vld [vmem:[%s3447_s6 + $0x1a0] sm:$0xff]  ;;  %v1243_v40 = vld [vmem:[%s3447_s6 + $0x1e28] sm:$0xff] }
  0xe7   : > { %1782 = vmatpush.msra.mxu3 %v1178_v52  ;;  %1714 = vmatpush.msra.mxu0 %v394_v55  ;;  %v602_v13 = vld [vmem:[%s3447_s6 + $0xa20] sm:$0xff]  ;;  %v955_v41 = vld [vmem:[%s3447_s6 + $0x1528] sm:$0xff] }
  0xe8   : > { %1761 = vmatpush.msra.mxu2 %v890_v56  ;;  %1736 = vmatpush.msra.mxu1 %v666_v57  ;;  %v826_v14 = vld [vmem:[%s3447_s6 + $0x1120] sm:$0xff]  ;;  %v731_v42 = vld [vmem:[%s3447_s6 + $0xe28] sm:$0xff] }
  0xe9   : > { %1783 = vmatpush.msra.mxu3 %v1162_v58  ;;  %1715 = vmatpush.msra.mxu0 %v378_v61  ;;  %v1098_v15 = vld [vmem:[%s3447_s6 + $0x19a0] sm:$0xff]  ;;  %v1227_v43 = vld [vmem:[%s3447_s6 + $0x1da8] sm:$0xff] }
  0xea   : > { %1762 = vmatpush.msra.mxu2 %v874_v62  ;;  %1737 = vmatpush.msra.mxu1 %v650_v63  ;;  %v314_v16 = vld [vmem:[%s3447_s6 + $0x120] sm:$0xff]  ;;  %v443_v44 = vld [vmem:[%s3447_s6 + $0x528] sm:$0xff] }
  0xeb   : > { %1784 = vmatpush.msra.mxu3 %v1146_v0  ;;  %1716 = vmatpush.msra.mxu0 %v362_v3  ;;  %v586_v17 = vld [vmem:[%s3447_s6 + $0x9a0] sm:$0xff]  ;;  %v939_v45 = vld [vmem:[%s3447_s6 + $0x14a8] sm:$0xff] }
  0xec   : > { %1763 = vmatpush.msra.mxu2 %v858_v4  ;;  %1738 = vmatpush.msra.mxu1 %v634_v5  ;;  %v810_v18 = vld [vmem:[%s3447_s6 + $0x10a0] sm:$0xff]  ;;  %v715_v46 = vld [vmem:[%s3447_s6 + $0xda8] sm:$0xff] }
  0xed   : > { %1785 = vmatpush.msra.mxu3 %v1130_v6  ;;  %1587 = vmatmul.f32.gmra.mxu2 %v3637_v48  ;;  %v1082_v19 = vld [vmem:[%s3447_s6 + $0x1920] sm:$0xff]  ;;  %v1211_v47 = vld [vmem:[%s3447_s6 + $0x1d28] sm:$0xff] }
  0xee   : > { %1717 = vmatpush.msra.mxu0 %v346_v7  ;;  %1739 = vmatpush.msra.mxu1 %v618_v9  ;;  %v298_v20 = vld [vmem:[%s3447_s6 + $0xa0] sm:$0xff]  ;;  %v427_v49 = vld [vmem:[%s3447_s6 + $0x4a8] sm:$0xff] }
  0xef   : > { %1764 = vmatpush.msra.mxu2 %v842_v10  ;;  %1786 = vmatpush.msra.mxu3 %v1114_v11  ;;  %v570_v21 = vld [vmem:[%s3447_s6 + $0x920] sm:$0xff]  ;;  %v923_v50 = vld [vmem:[%s3447_s6 + $0x1428] sm:$0xff] }
  0xf0   : > { %1541 = vmatmul.f32.gmra.mxu0 %v3643_v53  ;;  %1610 = vmatmul.f32.gmra.mxu3 %v3646_v54  ;;  %v794_v22 = vld [vmem:[%s3447_s6 + $0x1020] sm:$0xff]  ;;  %v699_v52 = vld [vmem:[%s3447_s6 + $0xd28] sm:$0xff] }
  0xf1   : > { %1718 = vmatpush.msra.mxu0 %v330_v12  ;;  %1740 = vmatpush.msra.mxu1 %v602_v13  ;;  %v1066_v23 = vld [vmem:[%s3447_s6 + $0x18a0] sm:$0xff]  ;;  %v1195_v55 = vld [vmem:[%s3447_s6 + $0x1ca8] sm:$0xff] }
  0xf2   : > { %1765 = vmatpush.msra.mxu2 %v826_v14  ;;  %1787 = vmatpush.msra.mxu3 %v1098_v15  ;;  %v282_v24 = vld [vmem:[%s3447_s6 + $0x20] sm:$0xff]  ;;  %v411_v56 = vld [vmem:[%s3447_s6 + $0x428] sm:$0xff] }
  0xf3   : > { %1564 = vmatmul.f32.gmra.mxu1 %v3653_v59  ;;  %1719 = vmatpush.msra.mxu0 %v314_v16  ;;  %v554_v26 = vld [vmem:[%s3447_s6 + $0x8a0] sm:$0xff]  ;;  %v907_v57 = vld [vmem:[%s3447_s6 + $0x13a8] sm:$0xff] }
  0xf4   : > { %1741 = vmatpush.msra.mxu1 %v586_v17  ;;  %1766 = vmatpush.msra.mxu2 %v810_v18  ;;  %v1050_v27 = vld [vmem:[%s3447_s6 + $0x1820] sm:$0xff]  ;;  %v683_v58 = vld [vmem:[%s3447_s6 + $0xca8] sm:$0xff]  ;;  %v1401_v18 = vpop.f32.mrf.mxu2 }
  0xf5   : > { %1788 = vmatpush.msra.mxu3 %v1082_v19  ;;  %1720 = vmatpush.msra.mxu0 %v298_v20  ;;  %v538_v31 = vld [vmem:[%s3447_s6 + $0x820] sm:$0xff]  ;;  %v1179_v61 = vld [vmem:[%s3447_s6 + $0x1c28] sm:$0xff] }
  0xf6   : > { %1742 = vmatpush.msra.mxu1 %v570_v21  ;;  %1767 = vmatpush.msra.mxu2 %v794_v22  ;;  %v3847_v51 = vld [vmem:[%s3844_s7] sm:$0xff]  ;;  %v395_v63 = vld [vmem:[%s3447_s6 + $0x3a8] sm:$0xff] }
  0xf7   : > { %1789 = vmatpush.msra.mxu3 %v1066_v23  ;;  %1676 = vmatmul.f32.vlgmr.msrb.gmra.mxu2 %v3577_v60  ;;  %v1003_v60 = vld [vmem:[%s3447_s6 + $0x16a8] sm:$0xff]  ;;  %v1306_v62 = vperm.slane %v3847_v51, 0 }
  0xf8   : > { %1721 = vmatpush.msra.mxu0 %v282_v24  ;;  %1844 = vmatpush.msrb.mxu2 %v1035_v25  ;;  %v891_v0 = vld [vmem:[%s3447_s6 + $0x1328] sm:$0xff] }
  0xf9   : > { %1743 = vmatpush.msra.mxu1 %v554_v26  ;;  %1790 = vmatpush.msra.mxu3 %v1050_v27  ;;  %v667_v3 = vld [vmem:[%s3447_s6 + $0xc28] sm:$0xff] }
  0xfa   : > { %1630 = vmatmul.f32.vlgmr.msrb.gmra.mxu0 %v3583_v1  ;;  %1699 = vmatmul.f32.vlgmr.msrb.gmra.mxu3 %v3586_v2  ;;  %v491_v1 = vld [vmem:[%s3447_s6 + $0x6a8] sm:$0xff] }
  0xfb   : > { %1798 = vmatpush.msrb.mxu0 %v523_v28  ;;  %1845 = vmatpush.msrb.mxu2 %v1019_v29  ;;  %v763_v2 = vld [vmem:[%s3447_s6 + $0xf28] sm:$0xff] }
  0xfc   : > { %1867 = vmatpush.msrb.mxu3 %v1291_v30  ;;  %1744 = vmatpush.msra.mxu1 %v538_v31  ;;  %v1163_v4 = vld [vmem:[%s3447_s6 + $0x1ba8] sm:$0xff] }
  0xfd   : > { %1799 = vmatpush.msrb.mxu0 %v507_v32  ;;  %1653 = vmatmul.f32.vlgmr.msrb.gmra.mxu1 %v3595_v8  ;;  %v459_v8 = vld [vmem:[%s3447_s6 + $0x5a8] sm:$0xff] }
  0xfe   : > { %1846 = vmatpush.msrb.mxu2 %v1003_v60  ;;  %1821 = vmatpush.msrb.mxu1 %v779_v33  ;;  %v379_v5 = vld [vmem:[%s3447_s6 + $0x328] sm:$0xff] }
  0xff   : > { %1868 = vmatpush.msrb.mxu3 %v1275_v34  ;;  %1800 = vmatpush.msrb.mxu0 %v491_v1  ;;  %v875_v6 = vld [vmem:[%s3447_s6 + $0x12a8] sm:$0xff]  ;;  %v1036_v1 = vld [vmem:[%s3447_s6 + $0x17b0] sm:$0xff] }
 0x100   : > { %1847 = vmatpush.msrb.mxu2 %v987_v35  ;;  %1822 = vmatpush.msrb.mxu1 %v763_v2  ;;  %v651_v9 = vld [vmem:[%s3447_s6 + $0xba8] sm:$0xff]  ;;  %v3898_v2 = vld [vmem:[#allocation2 + $0x10] sm:$0xff] }
 0x101   : > { %1869 = vmatpush.msrb.mxu3 %v1259_v36  ;;  %1801 = vmatpush.msrb.mxu0 %v475_v37  ;;  %v1147_v10 = vld [vmem:[%s3447_s6 + $0x1b28] sm:$0xff]  ;;  %v524_v36 = vld [vmem:[%s3447_s6 + $0x7b0] sm:$0xff] }
 0x102   : > { %1848 = vmatpush.msrb.mxu2 %v971_v38  ;;  %1823 = vmatpush.msrb.mxu1 %v747_v39  ;;  %v363_v12 = vld [vmem:[%s3447_s6 + $0x2a8] sm:$0xff]  ;;  %v1020_v37 = vld [vmem:[%s3447_s6 + $0x1730] sm:$0xff]  ;;  %v3904_v39 = vld [vmem:[#allocation2] sm:$0xff] }
 0x103   : > { %1870 = vmatpush.msrb.mxu3 %v1243_v40  ;;  %1802 = vmatpush.msrb.mxu0 %v459_v8  ;;  %v859_v13 = vld [vmem:[%s3447_s6 + $0x1228] sm:$0xff]  ;;  %v1292_v38 = vld [vmem:[%s3447_s6 + $0x1fb0] sm:$0xff] }
 0x104   : > { %1849 = vmatpush.msrb.mxu2 %v955_v41  ;;  %1824 = vmatpush.msrb.mxu1 %v731_v42  ;;  %v635_v14 = vld [vmem:[%s3447_s6 + $0xb28] sm:$0xff]  ;;  %v508_v8 = vld [vmem:[%s3447_s6 + $0x730] sm:$0xff]  ;;  %v3909_v41 = vld [vmem:[#allocation2 + $0x18] sm:$0xff] }
 0x105   : > { %1871 = vmatpush.msrb.mxu3 %v1227_v43  ;;  %1803 = vmatpush.msrb.mxu0 %v443_v44  ;;  %v1131_v15 = vld [vmem:[%s3447_s6 + $0x1aa8] sm:$0xff]  ;;  %v1004_v42 = vld [vmem:[%s3447_s6 + $0x16b0] sm:$0xff] }
 0x106   : > { %1850 = vmatpush.msrb.mxu2 %v939_v45  ;;  %1825 = vmatpush.msrb.mxu1 %v715_v46  ;;  %v347_v16 = vld [vmem:[%s3447_s6 + $0x228] sm:$0xff]  ;;  %v780_v43 = vld [vmem:[%s3447_s6 + $0xfb0] sm:$0xff] }
 0x107   : > { %1872 = vmatpush.msrb.mxu3 %v1211_v47  ;;  %1804 = vmatpush.msrb.mxu0 %v427_v49  ;;  %v619_v19 = vld [vmem:[%s3447_s6 + $0xaa8] sm:$0xff]  ;;  %v1276_v44 = vld [vmem:[%s3447_s6 + $0x1f30] sm:$0xff] }
 0x108   : > { %1851 = vmatpush.msrb.mxu2 %v923_v50  ;;  %1826 = vmatpush.msrb.mxu1 %v699_v52  ;;  %v843_v20 = vld [vmem:[%s3447_s6 + $0x11a8] sm:$0xff]  ;;  %v492_v45 = vld [vmem:[%s3447_s6 + $0x6b0] sm:$0xff] }
 0x109   : > { %1873 = vmatpush.msrb.mxu3 %v1195_v55  ;;  %1805 = vmatpush.msrb.mxu0 %v411_v56  ;;  %v1115_v22 = vld [vmem:[%s3447_s6 + $0x1a28] sm:$0xff]  ;;  %v988_v46 = vld [vmem:[%s3447_s6 + $0x1630] sm:$0xff] }
 0x10a   : > { %1852 = vmatpush.msrb.mxu2 %v907_v57  ;;  %1827 = vmatpush.msrb.mxu1 %v683_v58  ;;  %v331_v23 = vld [vmem:[%s3447_s6 + $0x1a8] sm:$0xff]  ;;  %v764_v49 = vld [vmem:[%s3447_s6 + $0xf30] sm:$0xff] }
 0x10b   : > { %1874 = vmatpush.msrb.mxu3 %v1179_v61  ;;  %v1355_v7 = vpop.f32.mrf.mxu0  ;;  %1806 = vmatpush.msrb.mxu0 %v395_v63  ;;  %v603_v26 = vld [vmem:[%s3447_s6 + $0xa28] sm:$0xff]  ;;  %v1260_v50 = vld [vmem:[%s3447_s6 + $0x1eb0] sm:$0xff] }
 0x10c   : > { %1853 = vmatpush.msrb.mxu2 %v891_v0  ;;  %v1356_v11 = vadd.f32 %v1355_v7, %v1306_v62  ;;  %1828 = vmatpush.msrb.mxu1 %v667_v3  ;;  %v827_v27 = vld [vmem:[%s3447_s6 + $0x1128] sm:$0xff]  ;;  %v476_v52 = vld [vmem:[%s3447_s6 + $0x630] sm:$0xff] }
 0x10d   : > { %1875 = vmatpush.msrb.mxu3 %v1163_v4  ;;  %1807 = vmatpush.msrb.mxu0 %v379_v5  ;;  %v1099_v28 = vld [vmem:[%s3447_s6 + $0x19a8] sm:$0xff]  ;;  %v972_v55 = vld [vmem:[%s3447_s6 + $0x15b0] sm:$0xff] }
 0x10e   : > { %1854 = vmatpush.msrb.mxu2 %v875_v6  ;;  %1829 = vmatpush.msrb.mxu1 %v651_v9  ;;  %v1378_v17 = vpop.f32.mrf.mxu1  ;;  %v587_v30 = vld [vmem:[%s3447_s6 + $0x9a8] sm:$0xff]  ;;  %v748_v56 = vld [vmem:[%s3447_s6 + $0xeb0] sm:$0xff] }
 0x10f   : > { %1876 = vmatpush.msrb.mxu3 %v1147_v10  ;;  %1808 = vmatpush.msrb.mxu0 %v363_v12  ;;  %v1379_v21 = vadd.f32 %v1378_v17, %v1356_v11  ;;  %v811_v31 = vld [vmem:[%s3447_s6 + $0x10a8] sm:$0xff]  ;;  %v1244_v57 = vld [vmem:[%s3447_s6 + $0x1e30] sm:$0xff] }
 0x110   : > { %1855 = vmatpush.msrb.mxu2 %v859_v13  ;;  %1830 = vmatpush.msrb.mxu1 %v635_v14  ;;  %v1083_v32 = vld [vmem:[%s3447_s6 + $0x1928] sm:$0xff]  ;;  %v460_v58 = vld [vmem:[%s3447_s6 + $0x5b0] sm:$0xff] }
 0x111   : > { %1877 = vmatpush.msrb.mxu3 %v1131_v15  ;;  %1679 = vmatmul.f32.gmra.mxu2 %v3637_v48  ;;  %v1402_v24 = vadd.f32 %v1401_v18, %v1379_v21  ;;  %v1424_v25 = vpop.f32.mrf.mxu3  ;;  %v315_v48 = vld [vmem:[%s3447_s6 + $0x128] sm:$0xff]  ;;  %v956_v61 = vld [vmem:[%s3447_s6 + $0x1530] sm:$0xff] }
 0x112   : > { %1809 = vmatpush.msrb.mxu0 %v347_v16  ;;  %1831 = vmatpush.msrb.mxu1 %v619_v19  ;;  %v795_v60 = vld [vmem:[%s3447_s6 + $0x1028] sm:$0xff]  ;;  %v732_v0 = vld [vmem:[%s3447_s6 + $0xe30] sm:$0xff] }
 0x113   : > { %1856 = vmatpush.msrb.mxu2 %v843_v20  ;;  %1878 = vmatpush.msrb.mxu3 %v1115_v22  ;;  %v1425_v29 = vadd.f32 %v1424_v25, %v1402_v24  ;;  %v1067_v33 = vld [vmem:[%s3447_s6 + $0x18a8] sm:$0xff]  ;;  %v1228_v3 = vld [vmem:[%s3447_s6 + $0x1db0] sm:$0xff]  ;;  %v1307_v22 = vperm.slane %v3847_v51, 1 }
 0x114   : > { %1633 = vmatmul.f32.gmra.mxu0 %v3643_v53  ;;  %1702 = vmatmul.f32.gmra.mxu3 %v3646_v54  ;;  %v299_v53 = vld [vmem:[%s3447_s6 + $0xa8] sm:$0xff]  ;;  %v444_v5 = vld [vmem:[%s3447_s6 + $0x530] sm:$0xff] }
 0x115   : > { %1810 = vmatpush.msrb.mxu0 %v331_v23  ;;  %1832 = vmatpush.msrb.mxu1 %v603_v26  ;;  %2810 = vst [vmem:[%s3886_s19] sm:$0xff] %v1425_v29  ;;  %v571_v54 = vld [vmem:[%s3447_s6 + $0x928] sm:$0xff]  ;;  %v940_v6 = vld [vmem:[%s3447_s6 + $0x14b0] sm:$0xff] }
 0x116   : > { %1857 = vmatpush.msrb.mxu2 %v827_v27  ;;  %1879 = vmatpush.msrb.mxu3 %v1099_v28  ;;  %v283_v34 = vld [vmem:[%s3447_s6 + $0x28] sm:$0xff]  ;;  %v716_v7 = vld [vmem:[%s3447_s6 + $0xdb0] sm:$0xff] }
 0x117   : > { %1656 = vmatmul.f32.gmra.mxu1 %v3653_v59  ;;  %1811 = vmatpush.msrb.mxu0 %v315_v48  ;;  %v555_v35 = vld [vmem:[%s3447_s6 + $0x8a8] sm:$0xff]  ;;  %v1212_v9 = vld [vmem:[%s3447_s6 + $0x1d30] sm:$0xff] }
 0x118   : > { %1833 = vmatpush.msrb.mxu1 %v587_v30  ;;  %1858 = vmatpush.msrb.mxu2 %v811_v31  ;;  %v1051_v59 = vld [vmem:[%s3447_s6 + $0x1828] sm:$0xff]  ;;  %v428_v11 = vld [vmem:[%s3447_s6 + $0x4b0] sm:$0xff] }
 0x119   : > { %1880 = vmatpush.msrb.mxu3 %v1083_v32  ;;  %1812 = vmatpush.msrb.mxu0 %v299_v53  ;;  %v539_v40 = vld [vmem:[%s3447_s6 + $0x828] sm:$0xff]  ;;  %v924_v12 = vld [vmem:[%s3447_s6 + $0x1430] sm:$0xff] }
 0x11a   : > { %1834 = vmatpush.msrb.mxu1 %v571_v54  ;;  %1859 = vmatpush.msrb.mxu2 %v795_v60  ;;  %v3917_v47 = vld [vmem:[#allocation2 + $0x8] sm:$0xff]  ;;  %v700_v14 = vld [vmem:[%s3447_s6 + $0xd30] sm:$0xff] }
 0x11b   : > { %1881 = vmatpush.msrb.mxu3 %v1067_v33  ;;  %1768 = vmatmul.f32.vlgmr.msra.gmra.mxu2 %v3898_v2  ;;  %v1196_v15 = vld [vmem:[%s3447_s6 + $0x1cb0] sm:$0xff] }
 0x11c   : > { %1813 = vmatpush.msrb.mxu0 %v283_v34  ;;  %1936 = vmatpush.msra.mxu2 %v1036_v1  ;;  %v412_v16 = vld [vmem:[%s3447_s6 + $0x430] sm:$0xff] }
 0x11d   : > { %1835 = vmatpush.msrb.mxu1 %v555_v35  ;;  %1882 = vmatpush.msrb.mxu3 %v1051_v59  ;;  %v908_v17 = vld [vmem:[%s3447_s6 + $0x13b0] sm:$0xff] }
 0x11e   : > { %1722 = vmatmul.f32.vlgmr.msra.gmra.mxu0 %v3904_v39  ;;  %1791 = vmatmul.f32.vlgmr.msra.gmra.mxu3 %v3909_v41  ;;  %v684_v19 = vld [vmem:[%s3447_s6 + $0xcb0] sm:$0xff] }
 0x11f   : > { %1890 = vmatpush.msra.mxu0 %v524_v36  ;;  %1937 = vmatpush.msra.mxu2 %v1020_v37  ;;  %v1180_v20 = vld [vmem:[%s3447_s6 + $0x1c30] sm:$0xff] }
 0x120   : > { %1959 = vmatpush.msra.mxu3 %v1292_v38  ;;  %1836 = vmatpush.msrb.mxu1 %v539_v40  ;;  %v396_v23 = vld [vmem:[%s3447_s6 + $0x3b0] sm:$0xff] }
 0x121   : > { %1891 = vmatpush.msra.mxu0 %v508_v8  ;;  %1745 = vmatmul.f32.vlgmr.msra.gmra.mxu1 %v3917_v47  ;;  %v892_v24 = vld [vmem:[%s3447_s6 + $0x1330] sm:$0xff] }
 0x122   : > { %1938 = vmatpush.msra.mxu2 %v1004_v42  ;;  %1913 = vmatpush.msra.mxu1 %v780_v43  ;;  %v668_v26 = vld [vmem:[%s3447_s6 + $0xc30] sm:$0xff] }
 0x123   : > { %1960 = vmatpush.msra.mxu3 %v1276_v44  ;;  %1892 = vmatpush.msra.mxu0 %v492_v45  ;;  %v1164_v27 = vld [vmem:[%s3447_s6 + $0x1bb0] sm:$0xff] }
 0x124   : > { %1939 = vmatpush.msra.mxu2 %v988_v46  ;;  %1914 = vmatpush.msra.mxu1 %v764_v49  ;;  %v380_v28 = vld [vmem:[%s3447_s6 + $0x330] sm:$0xff]  ;;  %v3970_v46 = vld [vmem:[#allocation2 + $0x20] sm:$0xff] }
 0x125   : > { %1961 = vmatpush.msra.mxu3 %v1260_v50  ;;  %v1358_v63 = vpop.f32.mrf.mxu0  ;;  %1893 = vmatpush.msra.mxu0 %v476_v52  ;;  %v876_v29 = vld [vmem:[%s3447_s6 + $0x12b0] sm:$0xff]  ;;  %v3974_v52 = vld [vmem:[#allocation2 + $0x38] sm:$0xff] }
 0x126   : > { %1940 = vmatpush.msra.mxu2 %v972_v55  ;;  %v1359_v4 = vadd.f32 %v1358_v63, %v1306_v62  ;;  %1915 = vmatpush.msra.mxu1 %v748_v56  ;;  %v652_v30 = vld [vmem:[%s3447_s6 + $0xbb0] sm:$0xff] }
 0x127   : > { %1962 = vmatpush.msra.mxu3 %v1244_v57  ;;  %1894 = vmatpush.msra.mxu0 %v460_v58  ;;  %v1148_v31 = vld [vmem:[%s3447_s6 + $0x1b30] sm:$0xff] }
 0x128   : > { %1941 = vmatpush.msra.mxu2 %v956_v61  ;;  %v1381_v10 = vpop.f32.mrf.mxu1  ;;  %1916 = vmatpush.msra.mxu1 %v732_v0  ;;  %v1404_v13 = vpop.f32.mrf.mxu2  ;;  %v364_v53 = vld [vmem:[%s3447_s6 + $0x2b0] sm:$0xff]  ;;  %v3982_v61 = vld [vmem:[#allocation2 + $0x28] sm:$0xff] }
 0x129   : > { %1963 = vmatpush.msra.mxu3 %v1228_v3  ;;  %v1382_v62 = vadd.f32 %v1381_v10, %v1359_v4  ;;  %1895 = vmatpush.msra.mxu0 %v444_v5  ;;  %v860_v54 = vld [vmem:[%s3447_s6 + $0x1230] sm:$0xff]  ;;  %v525_v10 = vld [vmem:[%s3447_s6 + $0x7b8] sm:$0xff] }
 0x12a   : > { %1942 = vmatpush.msra.mxu2 %v940_v6  ;;  %1917 = vmatpush.msra.mxu1 %v716_v7  ;;  %v636_v60 = vld [vmem:[%s3447_s6 + $0xb30] sm:$0xff]  ;;  %v1037_v6 = vld [vmem:[%s3447_s6 + $0x17b8] sm:$0xff] }
 0x12b   : > { %1964 = vmatpush.msra.mxu3 %v1212_v9  ;;  %v1405_v18 = vadd.f32 %v1404_v13, %v1382_v62  ;;  %1896 = vmatpush.msra.mxu0 %v428_v11  ;;  %v1427_v21 = vpop.f32.mrf.mxu3  ;;  %v1132_v33 = vld [vmem:[%s3447_s6 + $0x1ab0] sm:$0xff]  ;;  %v1021_v11 = vld [vmem:[%s3447_s6 + $0x1738] sm:$0xff] }
 0x12c   : > { %1943 = vmatpush.msra.mxu2 %v924_v12  ;;  %1918 = vmatpush.msra.mxu1 %v700_v14  ;;  %v348_v34 = vld [vmem:[%s3447_s6 + $0x230] sm:$0xff]  ;;  %v1293_v12 = vld [vmem:[%s3447_s6 + $0x1fb8] sm:$0xff] }
 0x12d   : > { %1965 = vmatpush.msra.mxu3 %v1196_v15  ;;  %v1428_v25 = vadd.f32 %v1427_v21, %v1405_v18  ;;  %1897 = vmatpush.msra.mxu0 %v412_v16  ;;  %v620_v59 = vld [vmem:[%s3447_s6 + $0xab0] sm:$0xff]  ;;  %v509_v13 = vld [vmem:[%s3447_s6 + $0x738] sm:$0xff] }
 0x12e   : > { %1944 = vmatpush.msra.mxu2 %v908_v17  ;;  %1919 = vmatpush.msra.mxu1 %v684_v19  ;;  %v844_v36 = vld [vmem:[%s3447_s6 + $0x11b0] sm:$0xff]  ;;  %v1005_v14 = vld [vmem:[%s3447_s6 + $0x16b8] sm:$0xff] }
 0x12f   : > { %1966 = vmatpush.msra.mxu3 %v1180_v20  ;;  %2826 = vst [vmem:[%s3886_s19 + $0x80] sm:$0xff] %v1428_v25  ;;  %v1447_v48 = vpop.f32.mrf.mxu0  ;;  %1898 = vmatpush.msra.mxu0 %v396_v23  ;;  %v1116_v38 = vld [vmem:[%s3447_s6 + $0x1a30] sm:$0xff]  ;;  %v781_v15 = vld [vmem:[%s3447_s6 + $0xfb8] sm:$0xff] }
 0x130   : > { %1945 = vmatpush.msra.mxu2 %v892_v24  ;;  %v1448_v32 = vadd.f32 %v1447_v48, %v1307_v22  ;;  %1920 = vmatpush.msra.mxu1 %v668_v26  ;;  %v3964_v40 = vld [vmem:[#allocation2 + $0x30] sm:$0xff]  ;;  %v1277_v16 = vld [vmem:[%s3447_s6 + $0x1f38] sm:$0xff] }
 0x131   : > { %1967 = vmatpush.msra.mxu3 %v1164_v27  ;;  %1899 = vmatpush.msra.mxu0 %v380_v28  ;;  %v332_v8 = vld [vmem:[%s3447_s6 + $0x1b0] sm:$0xff]  ;;  %v493_v17 = vld [vmem:[%s3447_s6 + $0x6b8] sm:$0xff] }
 0x132   : > { %1946 = vmatpush.msra.mxu2 %v876_v29  ;;  %1921 = vmatpush.msra.mxu1 %v652_v30  ;;  %v1470_v1 = vpop.f32.mrf.mxu1  ;;  %v1493_v35 = vpop.f32.mrf.mxu2  ;;  %v604_v44 = vld [vmem:[%s3447_s6 + $0xa30] sm:$0xff]  ;;  %v989_v18 = vld [vmem:[%s3447_s6 + $0x1638] sm:$0xff] }
 0x133   : > { %1968 = vmatpush.msra.mxu3 %v1148_v31  ;;  %1900 = vmatpush.msra.mxu0 %v364_v53  ;;  %v1471_v37 = vadd.f32 %v1470_v1, %v1448_v32  ;;  %v828_v45 = vld [vmem:[%s3447_s6 + $0x1130] sm:$0xff]  ;;  %v765_v19 = vld [vmem:[%s3447_s6 + $0xf38] sm:$0xff] }
 0x134   : > { %1947 = vmatpush.msra.mxu2 %v860_v54  ;;  %1922 = vmatpush.msra.mxu1 %v636_v60  ;;  %v1100_v49 = vld [vmem:[%s3447_s6 + $0x19b0] sm:$0xff]  ;;  %v1261_v20 = vld [vmem:[%s3447_s6 + $0x1eb8] sm:$0xff] }
 0x135   : > { %1969 = vmatpush.msra.mxu3 %v1132_v33  ;;  %1771 = vmatmul.f32.gmra.mxu2 %v3964_v40  ;;  %v1494_v42 = vadd.f32 %v1493_v35, %v1471_v37  ;;  %v1516_v43 = vpop.f32.mrf.mxu3  ;;  %v316_v55 = vld [vmem:[%s3447_s6 + $0x130] sm:$0xff]  ;;  %v477_v21 = vld [vmem:[%s3447_s6 + $0x638] sm:$0xff] }
 0x136   : > { %1901 = vmatpush.msra.mxu0 %v348_v34  ;;  %1923 = vmatpush.msra.mxu1 %v620_v59  ;;  %v588_v56 = vld [vmem:[%s3447_s6 + $0x9b0] sm:$0xff]  ;;  %v973_v23 = vld [vmem:[%s3447_s6 + $0x15b8] sm:$0xff] }
 0x137   : > { %1948 = vmatpush.msra.mxu2 %v844_v36  ;;  %1970 = vmatpush.msra.mxu3 %v1116_v38  ;;  %v1517_v50 = vadd.f32 %v1516_v43, %v1494_v42  ;;  %v812_v57 = vld [vmem:[%s3447_s6 + $0x10b0] sm:$0xff]  ;;  %v749_v24 = vld [vmem:[%s3447_s6 + $0xeb8] sm:$0xff] }
 0x138   : > { %1725 = vmatmul.f32.gmra.mxu0 %v3970_v46  ;;  %1794 = vmatmul.f32.gmra.mxu3 %v3974_v52  ;;  %v1084_v58 = vld [vmem:[%s3447_s6 + $0x1930] sm:$0xff]  ;;  %v1245_v25 = vld [vmem:[%s3447_s6 + $0x1e38] sm:$0xff] }
 0x139   : > { %1902 = vmatpush.msra.mxu0 %v332_v8  ;;  %1924 = vmatpush.msra.mxu1 %v604_v44  ;;  %2811 = vst [vmem:[%s3886_s19 + $0x8] sm:$0xff] %v1517_v50  ;;  %v300_v63 = vld [vmem:[%s3447_s6 + $0xb0] sm:$0xff]  ;;  %v461_v26 = vld [vmem:[%s3447_s6 + $0x5b8] sm:$0xff]  ;;  %v1308_v44 = vperm.slane %v3847_v51, 2 }
 0x13a   : > { %1949 = vmatpush.msra.mxu2 %v828_v45  ;;  %1971 = vmatpush.msra.mxu3 %v1100_v49  ;;  %v572_v0 = vld [vmem:[%s3447_s6 + $0x930] sm:$0xff]  ;;  %v957_v27 = vld [vmem:[%s3447_s6 + $0x1538] sm:$0xff] }
 0x13b   : > { %1748 = vmatmul.f32.gmra.mxu1 %v3982_v61  ;;  %1903 = vmatpush.msra.mxu0 %v316_v55  ;;  %v796_v3 = vld [vmem:[%s3447_s6 + $0x1030] sm:$0xff]  ;;  %v733_v29 = vld [vmem:[%s3447_s6 + $0xe38] sm:$0xff] }
 0x13c   : > { %1925 = vmatpush.msra.mxu1 %v588_v56  ;;  %v1068_v4 = vld [vmem:[%s3447_s6 + $0x18b0] sm:$0xff]  ;;  %1950 = vmatpush.msra.mxu2 %v812_v57  ;;  %v1229_v48 = vld [vmem:[%s3447_s6 + $0x1db8] sm:$0xff] }
 0x13d   : > { %1972 = vmatpush.msra.mxu3 %v1084_v58  ;;  %v284_v5 = vld [vmem:[%s3447_s6 + $0x30] sm:$0xff]  ;;  %1904 = vmatpush.msra.mxu0 %v300_v63  ;;  %v445_v31 = vld [vmem:[%s3447_s6 + $0x538] sm:$0xff] }
 0x13e   : > { %1926 = vmatpush.msra.mxu1 %v572_v0  ;;  %v556_v7 = vld [vmem:[%s3447_s6 + $0x8b0] sm:$0xff]  ;;  %1951 = vmatpush.msra.mxu2 %v796_v3  ;;  %v941_v32 = vld [vmem:[%s3447_s6 + $0x14b8] sm:$0xff] }
 0x13f   : > { %1973 = vmatpush.msra.mxu3 %v1068_v4  ;;  %v1052_v9 = vld [vmem:[%s3447_s6 + $0x1830] sm:$0xff]  ;;  %1860 = vmatmul.f32.vlgmr.msrb.gmra.mxu2 %v3898_v2  ;;  %v717_v53 = vld [vmem:[%s3447_s6 + $0xdb8] sm:$0xff] }
 0x140   : > { %1905 = vmatpush.msra.mxu0 %v284_v5  ;;  %2028 = vmatpush.msrb.mxu2 %v1037_v6  ;;  %v540_v62 = vld [vmem:[%s3447_s6 + $0x830] sm:$0xff]  ;;  %v1213_v54 = vld [vmem:[%s3447_s6 + $0x1d38] sm:$0xff] }
 0x141   : > { %1927 = vmatpush.msra.mxu1 %v556_v7  ;;  %1974 = vmatpush.msra.mxu3 %v1052_v9  ;;  %v429_v33 = vld [vmem:[%s3447_s6 + $0x4b8] sm:$0xff] }
 0x142   : > { %1814 = vmatmul.f32.vlgmr.msrb.gmra.mxu0 %v3904_v39  ;;  %1883 = vmatmul.f32.vlgmr.msrb.gmra.mxu3 %v3909_v41  ;;  %v925_v34 = vld [vmem:[%s3447_s6 + $0x1438] sm:$0xff] }
 0x143   : > { %1982 = vmatpush.msrb.mxu0 %v525_v10  ;;  %2029 = vmatpush.msrb.mxu2 %v1021_v11  ;;  %v701_v35 = vld [vmem:[%s3447_s6 + $0xd38] sm:$0xff] }
 0x144   : > { %2051 = vmatpush.msrb.mxu3 %v1293_v12  ;;  %1928 = vmatpush.msra.mxu1 %v540_v62  ;;  %v1197_v59 = vld [vmem:[%s3447_s6 + $0x1cb8] sm:$0xff] }
 0x145   : > { %1983 = vmatpush.msrb.mxu0 %v509_v13  ;;  %1837 = vmatmul.f32.vlgmr.msrb.gmra.mxu1 %v3917_v47  ;;  %v413_v36 = vld [vmem:[%s3447_s6 + $0x438] sm:$0xff] }
 0x146   : > { %2030 = vmatpush.msrb.mxu2 %v1005_v14  ;;  %2005 = vmatpush.msrb.mxu1 %v781_v15  ;;  %v909_v37 = vld [vmem:[%s3447_s6 + $0x13b8] sm:$0xff] }
 0x147   : > { %2052 = vmatpush.msrb.mxu3 %v1277_v16  ;;  %1984 = vmatpush.msrb.mxu0 %v493_v17  ;;  %v685_v8 = vld [vmem:[%s3447_s6 + $0xcb8] sm:$0xff] }
 0x148   : > { %2031 = vmatpush.msrb.mxu2 %v989_v18  ;;  %2006 = vmatpush.msrb.mxu1 %v765_v19  ;;  %v1181_v42 = vld [vmem:[%s3447_s6 + $0x1c38] sm:$0xff] }
 0x149   : > { %2053 = vmatpush.msrb.mxu3 %v1261_v20  ;;  %v1450_v28 = vpop.f32.mrf.mxu0  ;;  %1985 = vmatpush.msrb.mxu0 %v477_v21  ;;  %v397_v45 = vld [vmem:[%s3447_s6 + $0x3b8] sm:$0xff] }
 0x14a   : > { %2032 = vmatpush.msrb.mxu2 %v973_v23  ;;  %v1451_v30 = vadd.f32 %v1450_v28, %v1307_v22  ;;  %2007 = vmatpush.msrb.mxu1 %v749_v24  ;;  %v893_v49 = vld [vmem:[%s3447_s6 + $0x1338] sm:$0xff] }
 0x14b   : > { %2054 = vmatpush.msrb.mxu3 %v1245_v25  ;;  %1986 = vmatpush.msrb.mxu0 %v461_v26  ;;  %v669_v55 = vld [vmem:[%s3447_s6 + $0xc38] sm:$0xff] }
 0x14c   : > { %2033 = vmatpush.msrb.mxu2 %v957_v27  ;;  %v1473_v60 = vpop.f32.mrf.mxu1  ;;  %2008 = vmatpush.msrb.mxu1 %v733_v29  ;;  %v1496_v1 = vpop.f32.mrf.mxu2  ;;  %v1165_v56 = vld [vmem:[%s3447_s6 + $0x1bb8] sm:$0xff] }
 0x14d   : > { %2055 = vmatpush.msrb.mxu3 %v1229_v48  ;;  %v1474_v22 = vadd.f32 %v1473_v60, %v1451_v30  ;;  %1987 = vmatpush.msrb.mxu0 %v445_v31  ;;  %v381_v57 = vld [vmem:[%s3447_s6 + $0x338] sm:$0xff]  ;;  %v526_v60 = vld [vmem:[%s3447_s6 + $0x7c0] sm:$0xff] }
 0x14e   : > { %2034 = vmatpush.msrb.mxu2 %v941_v32  ;;  %2009 = vmatpush.msrb.mxu1 %v717_v53  ;;  %v877_v58 = vld [vmem:[%s3447_s6 + $0x12b8] sm:$0xff]  ;;  %v1038_v32 = vld [vmem:[%s3447_s6 + $0x17c0] sm:$0xff] }
 0x14f   : > { %2056 = vmatpush.msrb.mxu3 %v1213_v54  ;;  %v1497_v38 = vadd.f32 %v1496_v1, %v1474_v22  ;;  %1988 = vmatpush.msrb.mxu0 %v429_v33  ;;  %v1519_v43 = vpop.f32.mrf.mxu3  ;;  %v653_v0 = vld [vmem:[%s3447_s6 + $0xbb8] sm:$0xff]  ;;  %v1022_v33 = vld [vmem:[%s3447_s6 + $0x1740] sm:$0xff] }
 0x150   : > { %2035 = vmatpush.msrb.mxu2 %v925_v34  ;;  %2010 = vmatpush.msrb.mxu1 %v701_v35  ;;  %v1149_v3 = vld [vmem:[%s3447_s6 + $0x1b38] sm:$0xff]  ;;  %v1294_v34 = vld [vmem:[%s3447_s6 + $0x1fc0] sm:$0xff] }
 0x151   : > { %2057 = vmatpush.msrb.mxu3 %v1197_v59  ;;  %v1520_v50 = vadd.f32 %v1519_v43, %v1497_v38  ;;  %1989 = vmatpush.msrb.mxu0 %v413_v36  ;;  %v365_v5 = vld [vmem:[%s3447_s6 + $0x2b8] sm:$0xff]  ;;  %v510_v1 = vld [vmem:[%s3447_s6 + $0x740] sm:$0xff] }
 0x152   : > { %2036 = vmatpush.msrb.mxu2 %v909_v37  ;;  %2011 = vmatpush.msrb.mxu1 %v685_v8  ;;  %v861_v6 = vld [vmem:[%s3447_s6 + $0x1238] sm:$0xff]  ;;  %v1006_v35 = vld [vmem:[%s3447_s6 + $0x16c0] sm:$0xff] }
 0x153   : > { %2058 = vmatpush.msrb.mxu3 %v1181_v42  ;;  %2827 = vst [vmem:[%s3886_s19 + $0x88] sm:$0xff] %v1520_v50  ;;  %v1539_v63 = vpop.f32.mrf.mxu0  ;;  %1990 = vmatpush.msrb.mxu0 %v397_v45  ;;  %v637_v7 = vld [vmem:[%s3447_s6 + $0xb38] sm:$0xff]  ;;  %v782_v59 = vld [vmem:[%s3447_s6 + $0xfc0] sm:$0xff] }
 0x154   : > { %2037 = vmatpush.msrb.mxu2 %v893_v49  ;;  %v1540_v4 = vadd.f32 %v1539_v63, %v1308_v44  ;;  %2012 = vmatpush.msrb.mxu1 %v669_v55  ;;  %v1133_v9 = vld [vmem:[%s3447_s6 + $0x1ab8] sm:$0xff]  ;;  %v1278_v36 = vld [vmem:[%s3447_s6 + $0x1f40] sm:$0xff] }
 0x155   : > { %2059 = vmatpush.msrb.mxu3 %v1165_v56  ;;  %1991 = vmatpush.msrb.mxu0 %v381_v57  ;;  %v349_v10 = vld [vmem:[%s3447_s6 + $0x238] sm:$0xff]  ;;  %v494_v37 = vld [vmem:[%s3447_s6 + $0x6c0] sm:$0xff] }
 0x156   : > { %2038 = vmatpush.msrb.mxu2 %v877_v58  ;;  %2013 = vmatpush.msrb.mxu1 %v653_v0  ;;  %v1562_v11 = vpop.f32.mrf.mxu1  ;;  %v1585_v12 = vpop.f32.mrf.mxu2  ;;  %v621_v62 = vld [vmem:[%s3447_s6 + $0xab8] sm:$0xff]  ;;  %v990_v38 = vld [vmem:[%s3447_s6 + $0x1640] sm:$0xff] }
 0x157   : > { %2060 = vmatpush.msrb.mxu3 %v1149_v3  ;;  %1992 = vmatpush.msrb.mxu0 %v365_v5  ;;  %v845_v13 = vld [vmem:[%s3447_s6 + $0x11b8] sm:$0xff]  ;;  %v1563_v14 = vadd.f32 %v1562_v11, %v1540_v4  ;;  %v766_v8 = vld [vmem:[%s3447_s6 + $0xf40] sm:$0xff] }
 0x158   : > { %2039 = vmatpush.msrb.mxu2 %v861_v6  ;;  %2014 = vmatpush.msrb.mxu1 %v637_v7  ;;  %v1117_v15 = vld [vmem:[%s3447_s6 + $0x1a38] sm:$0xff]  ;;  %v1262_v42 = vld [vmem:[%s3447_s6 + $0x1ec0] sm:$0xff] }
 0x159   : > { %2061 = vmatpush.msrb.mxu3 %v1133_v9  ;;  %1863 = vmatmul.f32.gmra.mxu2 %v3964_v40  ;;  %v333_v16 = vld [vmem:[%s3447_s6 + $0x1b8] sm:$0xff]  ;;  %v1586_v17 = vadd.f32 %v1585_v12, %v1563_v14  ;;  %v1608_v18 = vpop.f32.mrf.mxu3  ;;  %v478_v43 = vld [vmem:[%s3447_s6 + $0x640] sm:$0xff] }
 0x15a   : > { %1993 = vmatpush.msrb.mxu0 %v349_v10  ;;  %2015 = vmatpush.msrb.mxu1 %v621_v62  ;;  %v605_v19 = vld [vmem:[%s3447_s6 + $0xa38] sm:$0xff]  ;;  %v974_v45 = vld [vmem:[%s3447_s6 + $0x15c0] sm:$0xff] }
 0x15b   : > { %2040 = vmatpush.msrb.mxu2 %v845_v13  ;;  %v829_v20 = vld [vmem:[%s3447_s6 + $0x1138] sm:$0xff]  ;;  %2062 = vmatpush.msrb.mxu3 %v1117_v15  ;;  %v1609_v23 = vadd.f32 %v1608_v18, %v1586_v17  ;;  %v750_v49 = vld [vmem:[%s3447_s6 + $0xec0] sm:$0xff] }
 0x15c   : > { %1817 = vmatmul.f32.gmra.mxu0 %v3970_v46  ;;  %v1101_v21 = vld [vmem:[%s3447_s6 + $0x19b8] sm:$0xff]  ;;  %1886 = vmatmul.f32.gmra.mxu3 %v3974_v52  ;;  %v1246_v50 = vld [vmem:[%s3447_s6 + $0x1e40] sm:$0xff] }
 0x15d   : > { %1994 = vmatpush.msrb.mxu0 %v333_v16  ;;  %v317_v24 = vld [vmem:[%s3447_s6 + $0x138] sm:$0xff]  ;;  %2016 = vmatpush.msrb.mxu1 %v605_v19  ;;  %2812 = vst [vmem:[%s3886_s19 + $0x10] sm:$0xff] %v1609_v23  ;;  %v462_v55 = vld [vmem:[%s3447_s6 + $0x5c0] sm:$0xff]  ;;  %v1309_v19 = vperm.slane %v3847_v51, 3  ;;  %v927_v51 = vld [vmem:[%s3447_s6 + $0x1448] sm:$0xff] }
 0x15e   : > { %v589_v25 = vld [vmem:[%s3447_s6 + $0x9b8] sm:$0xff]  ;;  %2041 = vmatpush.msrb.mxu2 %v829_v20  ;;  %2063 = vmatpush.msrb.mxu3 %v1101_v21  ;;  %v958_v56 = vld [vmem:[%s3447_s6 + $0x1540] sm:$0xff] }
 0x15f   : > { %v813_v26 = vld [vmem:[%s3447_s6 + $0x10b8] sm:$0xff]  ;;  %1840 = vmatmul.f32.gmra.mxu1 %v3982_v61  ;;  %1995 = vmatpush.msrb.mxu0 %v317_v24  ;;  %v734_v58 = vld [vmem:[%s3447_s6 + $0xe40] sm:$0xff] }
 0x160   : > { %v1085_v27 = vld [vmem:[%s3447_s6 + $0x1938] sm:$0xff]  ;;  %2017 = vmatpush.msrb.mxu1 %v589_v25  ;;  %2042 = vmatpush.msrb.mxu2 %v813_v26  ;;  %v1230_v63 = vld [vmem:[%s3447_s6 + $0x1dc0] sm:$0xff] }
 0x161   : > { %v301_v28 = vld [vmem:[%s3447_s6 + $0xb8] sm:$0xff]  ;;  %2064 = vmatpush.msrb.mxu3 %v1085_v27  ;;  %1952 = vmatmul.f32.vlgmr.msra.gmra.mxu2 %v3898_v2  ;;  %v446_v3 = vld [vmem:[%s3447_s6 + $0x540] sm:$0xff] }
 0x162   : > { %v573_v29 = vld [vmem:[%s3447_s6 + $0x938] sm:$0xff]  ;;  %1996 = vmatpush.msrb.mxu0 %v301_v28  ;;  %v942_v4 = vld [vmem:[%s3447_s6 + $0x14c0] sm:$0xff] }
 0x163   : > { %v797_v48 = vld [vmem:[%s3447_s6 + $0x1038] sm:$0xff]  ;;  %2018 = vmatpush.msrb.mxu1 %v573_v29  ;;  %v718_v5 = vld [vmem:[%s3447_s6 + $0xdc0] sm:$0xff] }
 0x164   : > { %v1069_v30 = vld [vmem:[%s3447_s6 + $0x18b8] sm:$0xff]  ;;  %2043 = vmatpush.msrb.mxu2 %v797_v48  ;;  %1906 = vmatmul.f32.vlgmr.msra.gmra.mxu0 %v3904_v39  ;;  %v1214_v6 = vld [vmem:[%s3447_s6 + $0x1d40] sm:$0xff] }
 0x165   : > { %v285_v31 = vld [vmem:[%s3447_s6 + $0x38] sm:$0xff]  ;;  %2065 = vmatpush.msrb.mxu3 %v1069_v30  ;;  %v430_v9 = vld [vmem:[%s3447_s6 + $0x4c0] sm:$0xff] }
 0x166   : > { %v557_v53 = vld [vmem:[%s3447_s6 + $0x8b8] sm:$0xff]  ;;  %1997 = vmatpush.msrb.mxu0 %v285_v31  ;;  %2120 = vmatpush.msra.mxu2 %v1038_v32  ;;  %v926_v10 = vld [vmem:[%s3447_s6 + $0x1440] sm:$0xff] }
 0x167   : > { %v1053_v54 = vld [vmem:[%s3447_s6 + $0x1838] sm:$0xff]  ;;  %2019 = vmatpush.msrb.mxu1 %v557_v53  ;;  %1975 = vmatmul.f32.vlgmr.msra.gmra.mxu3 %v3909_v41  ;;  %v702_v12 = vld [vmem:[%s3447_s6 + $0xd40] sm:$0xff] }
 0x168   : > { %2066 = vmatpush.msrb.mxu3 %v1053_v54  ;;  %v541_v22 = vld [vmem:[%s3447_s6 + $0x838] sm:$0xff]  ;;  %2074 = vmatpush.msra.mxu0 %v526_v60  ;;  %v1198_v62 = vld [vmem:[%s3447_s6 + $0x1cc0] sm:$0xff] }
 0x169   : > { %2121 = vmatpush.msra.mxu2 %v1022_v33  ;;  %2020 = vmatpush.msrb.mxu1 %v541_v22  ;;  %v414_v13 = vld [vmem:[%s3447_s6 + $0x440] sm:$0xff] }
 0x16a   : > { %2143 = vmatpush.msra.mxu3 %v1294_v34  ;;  %2075 = vmatpush.msra.mxu0 %v510_v1  ;;  %v910_v14 = vld [vmem:[%s3447_s6 + $0x13c0] sm:$0xff] }
 0x16b   : > { %1929 = vmatmul.f32.vlgmr.msra.gmra.mxu1 %v3917_v47  ;;  %2122 = vmatpush.msra.mxu2 %v1006_v35  ;;  %v686_v16 = vld [vmem:[%s3447_s6 + $0xcc0] sm:$0xff] }
 0x16c   : > { %2097 = vmatpush.msra.mxu1 %v782_v59  ;;  %2144 = vmatpush.msra.mxu3 %v1278_v36  ;;  %v1182_v17 = vld [vmem:[%s3447_s6 + $0x1c40] sm:$0xff] }
 0x16d   : > { %2076 = vmatpush.msra.mxu0 %v494_v37  ;;  %2123 = vmatpush.msra.mxu2 %v990_v38  ;;  %v1542_v57 = vpop.f32.mrf.mxu0  ;;  %v398_v20 = vld [vmem:[%s3447_s6 + $0x3c0] sm:$0xff] }
 0x16e   : > { %2098 = vmatpush.msra.mxu1 %v766_v8  ;;  %2145 = vmatpush.msra.mxu3 %v1262_v42  ;;  %v1543_v0 = vadd.f32 %v1542_v57, %v1308_v44  ;;  %v894_v21 = vld [vmem:[%s3447_s6 + $0x1340] sm:$0xff] }
 0x16f   : > { %2077 = vmatpush.msra.mxu0 %v478_v43  ;;  %2124 = vmatpush.msra.mxu2 %v974_v45  ;;  %v670_v24 = vld [vmem:[%s3447_s6 + $0xc40] sm:$0xff] }
 0x170   : > { %2099 = vmatpush.msra.mxu1 %v750_v49  ;;  %2146 = vmatpush.msra.mxu3 %v1246_v50  ;;  %v1565_v7 = vpop.f32.mrf.mxu1  ;;  %v1588_v11 = vpop.f32.mrf.mxu2  ;;  %v1166_v25 = vld [vmem:[%s3447_s6 + $0x1bc0] sm:$0xff] }
 0x171   : > { %2078 = vmatpush.msra.mxu0 %v462_v55  ;;  %2125 = vmatpush.msra.mxu2 %v958_v56  ;;  %v1566_v44 = vadd.f32 %v1565_v7, %v1543_v0  ;;  %v382_v26 = vld [vmem:[%s3447_s6 + $0x340] sm:$0xff]  ;;  %v527_v7 = vld [vmem:[%s3447_s6 + $0x7c8] sm:$0xff] }
 0x172   : > { %2100 = vmatpush.msra.mxu1 %v734_v58  ;;  %2147 = vmatpush.msra.mxu3 %v1230_v63  ;;  %v878_v27 = vld [vmem:[%s3447_s6 + $0x12c0] sm:$0xff] }
 0x173   : > { %2079 = vmatpush.msra.mxu0 %v446_v3  ;;  %2126 = vmatpush.msra.mxu2 %v942_v4  ;;  %v1589_v15 = vadd.f32 %v1588_v11, %v1566_v44  ;;  %v1611_v18 = vpop.f32.mrf.mxu3  ;;  %v654_v29 = vld [vmem:[%s3447_s6 + $0xbc0] sm:$0xff]  ;;  %v1039_v4 = vld [vmem:[%s3447_s6 + $0x17c8] sm:$0xff] }
 0x174   : > { %2101 = vmatpush.msra.mxu1 %v718_v5  ;;  %2148 = vmatpush.msra.mxu3 %v1214_v6  ;;  %v1150_v48 = vld [vmem:[%s3447_s6 + $0x1b40] sm:$0xff]  ;;  %v511_v11 = vld [vmem:[%s3447_s6 + $0x748] sm:$0xff] }
 0x175   : > { %2080 = vmatpush.msra.mxu0 %v430_v9  ;;  %2127 = vmatpush.msra.mxu2 %v926_v10  ;;  %v1612_v23 = vadd.f32 %v1611_v18, %v1589_v15  ;;  %v366_v31 = vld [vmem:[%s3447_s6 + $0x2c0] sm:$0xff]  ;;  %v1023_v9 = vld [vmem:[%s3447_s6 + $0x1748] sm:$0xff] }
 0x176   : > { %2102 = vmatpush.msra.mxu1 %v702_v12  ;;  %2149 = vmatpush.msra.mxu3 %v1198_v62  ;;  %v862_v32 = vld [vmem:[%s3447_s6 + $0x1240] sm:$0xff]  ;;  %v1295_v10 = vld [vmem:[%s3447_s6 + $0x1fc8] sm:$0xff] }
 0x177   : > { %2081 = vmatpush.msra.mxu0 %v414_v13  ;;  %2128 = vmatpush.msra.mxu2 %v910_v14  ;;  %2828 = vst [vmem:[%s3886_s19 + $0x90] sm:$0xff] %v1612_v23  ;;  %v1631_v28 = vpop.f32.mrf.mxu0  ;;  %v638_v53 = vld [vmem:[%s3447_s6 + $0xb40] sm:$0xff]  ;;  %v783_v12 = vld [vmem:[%s3447_s6 + $0xfc8] sm:$0xff] }
 0x178   : > { %2103 = vmatpush.msra.mxu1 %v686_v16  ;;  %2150 = vmatpush.msra.mxu3 %v1182_v17  ;;  %v1632_v30 = vadd.f32 %v1631_v28, %v1309_v19  ;;  %v1134_v54 = vld [vmem:[%s3447_s6 + $0x1ac0] sm:$0xff]  ;;  %v1279_v62 = vld [vmem:[%s3447_s6 + $0x1f48] sm:$0xff] }
 0x179   : > { %2082 = vmatpush.msra.mxu0 %v398_v20  ;;  %2129 = vmatpush.msra.mxu2 %v894_v21  ;;  %v350_v60 = vld [vmem:[%s3447_s6 + $0x240] sm:$0xff]  ;;  %v495_v13 = vld [vmem:[%s3447_s6 + $0x6c8] sm:$0xff] }
 0x17a   : > { %2104 = vmatpush.msra.mxu1 %v670_v24  ;;  %2151 = vmatpush.msra.mxu3 %v1166_v25  ;;  %v1654_v33 = vpop.f32.mrf.mxu1  ;;  %v1677_v34 = vpop.f32.mrf.mxu2  ;;  %v622_v22 = vld [vmem:[%s3447_s6 + $0xac0] sm:$0xff]  ;;  %v1263_v14 = vld [vmem:[%s3447_s6 + $0x1ec8] sm:$0xff] }
 0x17b   : > { %2083 = vmatpush.msra.mxu0 %v382_v26  ;;  %2130 = vmatpush.msra.mxu2 %v878_v27  ;;  %v846_v1 = vld [vmem:[%s3447_s6 + $0x11c0] sm:$0xff]  ;;  %v1655_v35 = vadd.f32 %v1654_v33, %v1632_v30  ;;  %v479_v15 = vld [vmem:[%s3447_s6 + $0x648] sm:$0xff] }
 0x17c   : > { %2105 = vmatpush.msra.mxu1 %v654_v29  ;;  %2152 = vmatpush.msra.mxu3 %v1150_v48  ;;  %v1118_v59 = vld [vmem:[%s3447_s6 + $0x1a40] sm:$0xff]  ;;  %v975_v16 = vld [vmem:[%s3447_s6 + $0x15c8] sm:$0xff] }
 0x17d   : > { %2084 = vmatpush.msra.mxu0 %v366_v31  ;;  %2131 = vmatpush.msra.mxu2 %v862_v32  ;;  %v334_v36 = vld [vmem:[%s3447_s6 + $0x1c0] sm:$0xff]  ;;  %v1678_v37 = vadd.f32 %v1677_v34, %v1655_v35  ;;  %v1700_v38 = vpop.f32.mrf.mxu3  ;;  %v751_v17 = vld [vmem:[%s3447_s6 + $0xec8] sm:$0xff] }
 0x17e   : > { %2106 = vmatpush.msra.mxu1 %v638_v53  ;;  %2153 = vmatpush.msra.mxu3 %v1134_v54  ;;  %v606_v8 = vld [vmem:[%s3447_s6 + $0xa40] sm:$0xff]  ;;  %v1247_v18 = vld [vmem:[%s3447_s6 + $0x1e48] sm:$0xff] }
 0x17f   : > { %1955 = vmatmul.f32.gmra.mxu2 %v3964_v40  ;;  %2085 = vmatpush.msra.mxu0 %v350_v60  ;;  %v830_v42 = vld [vmem:[%s3447_s6 + $0x1140] sm:$0xff]  ;;  %v1701_v45 = vadd.f32 %v1700_v38, %v1678_v37  ;;  %v959_v20 = vld [vmem:[%s3447_s6 + $0x1548] sm:$0xff] }
 0x180   : > { %2107 = vmatpush.msra.mxu1 %v622_v22  ;;  %2132 = vmatpush.msra.mxu2 %v846_v1  ;;  %v1102_v43 = vld [vmem:[%s3447_s6 + $0x19c0] sm:$0xff]  ;;  %v735_v23 = vld [vmem:[%s3447_s6 + $0xe48] sm:$0xff] }
 0x181   : > { %2154 = vmatpush.msra.mxu3 %v1118_v59  ;;  %1909 = vmatmul.f32.gmra.mxu0 %v3970_v46  ;;  %v318_v49 = vld [vmem:[%s3447_s6 + $0x140] sm:$0xff]  ;;  %2813 = vst [vmem:[%s3886_s19 + $0x18] sm:$0xff] %v1701_v45  ;;  %v1231_v24 = vld [vmem:[%s3447_s6 + $0x1dc8] sm:$0xff] }
 0x182   : > { %1978 = vmatmul.f32.gmra.mxu3 %v3974_v52  ;;  %2086 = vmatpush.msra.mxu0 %v334_v36  ;;  %v590_v50 = vld [vmem:[%s3447_s6 + $0x9c0] sm:$0xff]  ;;  %v447_v26 = vld [vmem:[%s3447_s6 + $0x548] sm:$0xff] }
 0x183   : > { %2108 = vmatpush.msra.mxu1 %v606_v8  ;;  %2133 = vmatpush.msra.mxu2 %v830_v42  ;;  %v814_v55 = vld [vmem:[%s3447_s6 + $0x10c0] sm:$0xff]  ;;  %v943_v27 = vld [vmem:[%s3447_s6 + $0x14c8] sm:$0xff] }
 0x184   : > { %v1086_v56 = vld [vmem:[%s3447_s6 + $0x1940] sm:$0xff]  ;;  %2155 = vmatpush.msra.mxu3 %v1102_v43  ;;  %1932 = vmatmul.f32.gmra.mxu1 %v3982_v61  ;;  %v719_v28 = vld [vmem:[%s3447_s6 + $0xdc8] sm:$0xff] }
 0x185   : > { %v302_v57 = vld [vmem:[%s3447_s6 + $0xc0] sm:$0xff]  ;;  %2087 = vmatpush.msra.mxu0 %v318_v49  ;;  %2109 = vmatpush.msra.mxu1 %v590_v50  ;;  %v1215_v29 = vld [vmem:[%s3447_s6 + $0x1d48] sm:$0xff] }
 0x186   : > { %v574_v58 = vld [vmem:[%s3447_s6 + $0x940] sm:$0xff]  ;;  %2134 = vmatpush.msra.mxu2 %v814_v55  ;;  %2156 = vmatpush.msra.mxu3 %v1086_v56  ;;  %v431_v30 = vld [vmem:[%s3447_s6 + $0x4c8] sm:$0xff] }
 0x187   : > { %v798_v63 = vld [vmem:[%s3447_s6 + $0x1040] sm:$0xff]  ;;  %2088 = vmatpush.msra.mxu0 %v302_v57  ;;  %2110 = vmatpush.msra.mxu1 %v574_v58  ;;  %v703_v32 = vld [vmem:[%s3447_s6 + $0xd48] sm:$0xff] }
 0x188   : > { %v1070_v0 = vld [vmem:[%s3447_s6 + $0x18c0] sm:$0xff]  ;;  %2135 = vmatpush.msra.mxu2 %v798_v63  ;;  %v1199_v53 = vld [vmem:[%s3447_s6 + $0x1cc8] sm:$0xff] }
 0x189   : > { %v286_v3 = vld [vmem:[%s3447_s6 + $0x40] sm:$0xff]  ;;  %2157 = vmatpush.msra.mxu3 %v1070_v0  ;;  %2044 = vmatmul.f32.vlgmr.msrb.gmra.mxu2 %v3898_v2  ;;  %v1007_v2 = vld [vmem:[%s3447_s6 + $0x16c8] sm:$0xff] }
 0x18a   : > { %v558_v5 = vld [vmem:[%s3447_s6 + $0x8c0] sm:$0xff]  ;;  %2089 = vmatpush.msra.mxu0 %v286_v3  ;;  %2212 = vmatpush.msrb.mxu2 %v1039_v4  ;;  %v415_v54 = vld [vmem:[%s3447_s6 + $0x448] sm:$0xff] }
 0x18b   : > { %v1054_v6 = vld [vmem:[%s3447_s6 + $0x1840] sm:$0xff]  ;;  %2111 = vmatpush.msra.mxu1 %v558_v5  ;;  %1998 = vmatmul.f32.vlgmr.msrb.gmra.mxu0 %v3904_v39  ;;  %v991_v39 = vld [vmem:[%s3447_s6 + $0x1648] sm:$0xff] }
 0x18c   : > { %2158 = vmatpush.msra.mxu3 %v1054_v6  ;;  %v542_v44 = vld [vmem:[%s3447_s6 + $0x840] sm:$0xff]  ;;  %2166 = vmatpush.msrb.mxu0 %v527_v7  ;;  %v911_v60 = vld [vmem:[%s3447_s6 + $0x13c8] sm:$0xff] }
 0x18d   : > { %2067 = vmatmul.f32.vlgmr.msrb.gmra.mxu3 %v3909_v41  ;;  %2213 = vmatpush.msrb.mxu2 %v1023_v9  ;;  %v767_v41 = vld [vmem:[%s3447_s6 + $0xf48] sm:$0xff]  ;;  %v4190_v35 = vld [vmem:[%s3844_s7] sm:$0xff] }
 0x18e   : > { %2235 = vmatpush.msrb.mxu3 %v1295_v10  ;;  %2112 = vmatpush.msra.mxu1 %v542_v44  ;;  %v687_v34 = vld [vmem:[%s3447_s6 + $0xcc8] sm:$0xff]  ;;  %v1310_v59 = vperm.slane %v4190_v35, 4 }
 0x18f   : > { %2167 = vmatpush.msrb.mxu0 %v511_v11  ;;  %2021 = vmatmul.f32.vlgmr.msrb.gmra.mxu1 %v3917_v47  ;;  %v463_v47 = vld [vmem:[%s3447_s6 + $0x5c8] sm:$0xff] }
 0x190   : > { %2214 = vmatpush.msrb.mxu2 %v1007_v2  ;;  %2189 = vmatpush.msrb.mxu1 %v783_v12  ;;  %v1183_v22 = vld [vmem:[%s3447_s6 + $0x1c48] sm:$0xff] }
 0x191   : > { %2236 = vmatpush.msrb.mxu3 %v1279_v62  ;;  %2168 = vmatpush.msrb.mxu0 %v495_v13  ;;  %v1634_v21 = vpop.f32.mrf.mxu0  ;;  %v399_v36 = vld [vmem:[%s3447_s6 + $0x3c8] sm:$0xff] }
 0x192   : > { %2215 = vmatpush.msrb.mxu2 %v991_v39  ;;  %2190 = vmatpush.msrb.mxu1 %v767_v41  ;;  %v1635_v25 = vadd.f32 %v1634_v21, %v1309_v19  ;;  %v895_v37 = vld [vmem:[%s3447_s6 + $0x1348] sm:$0xff]  ;;  %v4233_v21 = vld [vmem:[#allocation2 + $0x10] sm:$0xff] }
 0x193   : > { %2237 = vmatpush.msrb.mxu3 %v1263_v14  ;;  %2169 = vmatpush.msrb.mxu0 %v479_v15  ;;  %v671_v8 = vld [vmem:[%s3447_s6 + $0xc48] sm:$0xff] }
 0x194   : > { %2216 = vmatpush.msrb.mxu2 %v975_v16  ;;  %2191 = vmatpush.msrb.mxu1 %v751_v17  ;;  %v1657_v48 = vpop.f32.mrf.mxu1  ;;  %v1680_v31 = vpop.f32.mrf.mxu2  ;;  %v1167_v42 = vld [vmem:[%s3447_s6 + $0x1bc8] sm:$0xff] }
 0x195   : > { %2238 = vmatpush.msrb.mxu3 %v1247_v18  ;;  %2170 = vmatpush.msrb.mxu0 %v463_v47  ;;  %v1658_v19 = vadd.f32 %v1657_v48, %v1635_v25  ;;  %v383_v43 = vld [vmem:[%s3447_s6 + $0x348] sm:$0xff]  ;;  %v1040_v47 = vld [vmem:[%s3447_s6 + $0x17d0] sm:$0xff] }
 0x196   : > { %2217 = vmatpush.msrb.mxu2 %v959_v20  ;;  %2192 = vmatpush.msrb.mxu1 %v735_v23  ;;  %v879_v45 = vld [vmem:[%s3447_s6 + $0x12c8] sm:$0xff]  ;;  %v528_v23 = vld [vmem:[%s3447_s6 + $0x7d0] sm:$0xff] }
 0x197   : > { %2239 = vmatpush.msrb.mxu3 %v1231_v24  ;;  %2171 = vmatpush.msrb.mxu0 %v447_v26  ;;  %v1681_v33 = vadd.f32 %v1680_v31, %v1658_v19  ;;  %v1703_v1 = vpop.f32.mrf.mxu3  ;;  %v655_v50 = vld [vmem:[%s3447_s6 + $0xbc8] sm:$0xff]  ;;  %v1024_v24 = vld [vmem:[%s3447_s6 + $0x1750] sm:$0xff]  ;;  %v4239_v26 = vld [vmem:[#allocation2] sm:$0xff] }
 0x198   : > { %2218 = vmatpush.msrb.mxu2 %v943_v27  ;;  %2193 = vmatpush.msrb.mxu1 %v719_v28  ;;  %v1151_v55 = vld [vmem:[%s3447_s6 + $0x1b48] sm:$0xff]  ;;  %v1296_v25 = vld [vmem:[%s3447_s6 + $0x1fd0] sm:$0xff] }
 0x199   : > { %2240 = vmatpush.msrb.mxu3 %v1215_v29  ;;  %2172 = vmatpush.msrb.mxu0 %v431_v30  ;;  %v1704_v38 = vadd.f32 %v1703_v1, %v1681_v33  ;;  %v367_v57 = vld [vmem:[%s3447_s6 + $0x2c8] sm:$0xff]  ;;  %v512_v28 = vld [vmem:[%s3447_s6 + $0x750] sm:$0xff]  ;;  %v4244_v29 = vld [vmem:[#allocation2 + $0x18] sm:$0xff] }
 0x19a   : > { %2219 = vmatpush.msrb.mxu2 %v927_v51  ;;  %2194 = vmatpush.msrb.mxu1 %v703_v32  ;;  %v863_v58 = vld [vmem:[%s3447_s6 + $0x1248] sm:$0xff]  ;;  %v1008_v48 = vld [vmem:[%s3447_s6 + $0x16d0] sm:$0xff] }
 0x19b   : > { %2241 = vmatpush.msrb.mxu3 %v1199_v53  ;;  %2173 = vmatpush.msrb.mxu0 %v415_v54  ;;  %2829 = vst [vmem:[%s3886_s19 + $0x98] sm:$0xff] %v1704_v38  ;;  %v1723_v49 = vpop.f32.mrf.mxu0  ;;  %v639_v63 = vld [vmem:[%s3447_s6 + $0xb48] sm:$0xff]  ;;  %v784_v30 = vld [vmem:[%s3447_s6 + $0xfd0] sm:$0xff] }
 0x19c   : > { %2220 = vmatpush.msrb.mxu2 %v911_v60  ;;  %2195 = vmatpush.msrb.mxu1 %v687_v34  ;;  %v1724_v56 = vadd.f32 %v1723_v49, %v1310_v59  ;;  %v1135_v0 = vld [vmem:[%s3447_s6 + $0x1ac8] sm:$0xff]  ;;  %v1280_v51 = vld [vmem:[%s3447_s6 + $0x1f50] sm:$0xff] }
 0x19d   : > { %2242 = vmatpush.msrb.mxu3 %v1183_v22  ;;  %2174 = vmatpush.msrb.mxu0 %v399_v36  ;;  %v351_v3 = vld [vmem:[%s3447_s6 + $0x248] sm:$0xff]  ;;  %v496_v19 = vld [vmem:[%s3447_s6 + $0x6d0] sm:$0xff] }
 0x19e   : > { %2221 = vmatpush.msrb.mxu2 %v895_v37  ;;  %2196 = vmatpush.msrb.mxu1 %v671_v8  ;;  %v1746_v4 = vpop.f32.mrf.mxu1  ;;  %v1769_v5 = vpop.f32.mrf.mxu2  ;;  %v623_v6 = vld [vmem:[%s3447_s6 + $0xac8] sm:$0xff]  ;;  %v992_v31 = vld [vmem:[%s3447_s6 + $0x1650] sm:$0xff] }
 0x19f   : > { %2243 = vmatpush.msrb.mxu3 %v1167_v42  ;;  %2175 = vmatpush.msrb.mxu0 %v383_v43  ;;  %v847_v7 = vld [vmem:[%s3447_s6 + $0x11c8] sm:$0xff]  ;;  %v1747_v9 = vadd.f32 %v1746_v4, %v1724_v56  ;;  %v768_v53 = vld [vmem:[%s3447_s6 + $0xf50] sm:$0xff] }
 0x1a0   : > { %2222 = vmatpush.msrb.mxu2 %v879_v45  ;;  %2197 = vmatpush.msrb.mxu1 %v655_v50  ;;  %v1119_v10 = vld [vmem:[%s3447_s6 + $0x1a48] sm:$0xff]  ;;  %v1264_v54 = vld [vmem:[%s3447_s6 + $0x1ed0] sm:$0xff] }
 0x1a1   : > { %2244 = vmatpush.msrb.mxu3 %v1151_v55  ;;  %2176 = vmatpush.msrb.mxu0 %v367_v57  ;;  %v335_v44 = vld [vmem:[%s3447_s6 + $0x1c8] sm:$0xff]  ;;  %v1770_v11 = vadd.f32 %v1769_v5, %v1747_v9  ;;  %v1792_v2 = vpop.f32.mrf.mxu3  ;;  %v480_v60 = vld [vmem:[%s3447_s6 + $0x650] sm:$0xff] }
 0x1a2   : > { %2223 = vmatpush.msrb.mxu2 %v863_v58  ;;  %2198 = vmatpush.msrb.mxu1 %v639_v63  ;;  %v607_v12 = vld [vmem:[%s3447_s6 + $0xa48] sm:$0xff]  ;;  %v976_v33 = vld [vmem:[%s3447_s6 + $0x15d0] sm:$0xff] }
 0x1a3   : > { %2245 = vmatpush.msrb.mxu3 %v1135_v0  ;;  %2047 = vmatmul.f32.gmra.mxu2 %v3964_v40  ;;  %v831_v62 = vld [vmem:[%s3447_s6 + $0x1148] sm:$0xff]  ;;  %v1793_v39 = vadd.f32 %v1792_v2, %v1770_v11  ;;  %v752_v34 = vld [vmem:[%s3447_s6 + $0xed0] sm:$0xff] }
 0x1a4   : > { %2177 = vmatpush.msrb.mxu0 %v351_v3  ;;  %2199 = vmatpush.msrb.mxu1 %v623_v6  ;;  %v1103_v13 = vld [vmem:[%s3447_s6 + $0x19c8] sm:$0xff]  ;;  %v1248_v22 = vld [vmem:[%s3447_s6 + $0x1e50] sm:$0xff] }
 0x1a5   : > { %2224 = vmatpush.msrb.mxu2 %v847_v7  ;;  %2246 = vmatpush.msrb.mxu3 %v1119_v10  ;;  %v319_v40 = vld [vmem:[%s3447_s6 + $0x148] sm:$0xff]  ;;  %2814 = vst [vmem:[%s3886_s19 + $0x20] sm:$0xff] %v1793_v39  ;;  %v464_v1 = vld [vmem:[%s3447_s6 + $0x5d0] sm:$0xff]  ;;  %v1311_v10 = vperm.slane %v4190_v35, 5 }
 0x1a6   : > { %2001 = vmatmul.f32.gmra.mxu0 %v3970_v46  ;;  %2070 = vmatmul.f32.gmra.mxu3 %v3974_v52  ;;  %v591_v41 = vld [vmem:[%s3447_s6 + $0x9c8] sm:$0xff]  ;;  %v960_v36 = vld [vmem:[%s3447_s6 + $0x1550] sm:$0xff] }
 0x1a7   : > { %2178 = vmatpush.msrb.mxu0 %v335_v44  ;;  %2200 = vmatpush.msrb.mxu1 %v607_v12  ;;  %v815_v14 = vld [vmem:[%s3447_s6 + $0x10c8] sm:$0xff]  ;;  %v736_v38 = vld [vmem:[%s3447_s6 + $0xe50] sm:$0xff] }
 0x1a8   : > { %2225 = vmatpush.msrb.mxu2 %v831_v62  ;;  %v1087_v15 = vld [vmem:[%s3447_s6 + $0x1948] sm:$0xff]  ;;  %2247 = vmatpush.msrb.mxu3 %v1103_v13  ;;  %v1232_v8 = vld [vmem:[%s3447_s6 + $0x1dd0] sm:$0xff] }
 0x1a9   : > { %2024 = vmatmul.f32.gmra.mxu1 %v3982_v61  ;;  %v303_v46 = vld [vmem:[%s3447_s6 + $0xc8] sm:$0xff]  ;;  %2179 = vmatpush.msrb.mxu0 %v319_v40  ;;  %v448_v43 = vld [vmem:[%s3447_s6 + $0x550] sm:$0xff] }
 0x1aa   : > { %v575_v16 = vld [vmem:[%s3447_s6 + $0x948] sm:$0xff]  ;;  %2201 = vmatpush.msrb.mxu1 %v591_v41  ;;  %2226 = vmatpush.msrb.mxu2 %v815_v14  ;;  %v944_v45 = vld [vmem:[%s3447_s6 + $0x14d0] sm:$0xff] }
 0x1ab   : > { %v799_v52 = vld [vmem:[%s3447_s6 + $0x1048] sm:$0xff]  ;;  %2248 = vmatpush.msrb.mxu3 %v1087_v15  ;;  %2180 = vmatpush.msrb.mxu0 %v303_v46  ;;  %v720_v49 = vld [vmem:[%s3447_s6 + $0xdd0] sm:$0xff] }
 0x1ac   : > { %v1071_v17 = vld [vmem:[%s3447_s6 + $0x18c8] sm:$0xff]  ;;  %2202 = vmatpush.msrb.mxu1 %v575_v16  ;;  %2227 = vmatpush.msrb.mxu2 %v799_v52  ;;  %v1216_v50 = vld [vmem:[%s3447_s6 + $0x1d50] sm:$0xff] }
 0x1ad   : > { %v287_v18 = vld [vmem:[%s3447_s6 + $0x48] sm:$0xff]  ;;  %2249 = vmatpush.msrb.mxu3 %v1071_v17  ;;  %2136 = vmatmul.f32.vlgmr.msra.gmra.mxu2 %v4233_v21  ;;  %v432_v56 = vld [vmem:[%s3447_s6 + $0x4d0] sm:$0xff] }
 0x1ae   : > { %v559_v20 = vld [vmem:[%s3447_s6 + $0x8c8] sm:$0xff]  ;;  %2181 = vmatpush.msrb.mxu0 %v287_v18  ;;  %2304 = vmatpush.msra.mxu2 %v1040_v47  ;;  %v928_v57 = vld [vmem:[%s3447_s6 + $0x1450] sm:$0xff] }
 0x1af   : > { %v1055_v61 = vld [vmem:[%s3447_s6 + $0x1848] sm:$0xff]  ;;  %2203 = vmatpush.msrb.mxu1 %v559_v20  ;;  %2090 = vmatmul.f32.vlgmr.msra.gmra.mxu0 %v4239_v26  ;;  %v704_v63 = vld [vmem:[%s3447_s6 + $0xd50] sm:$0xff] }
 0x1b0   : > { %2250 = vmatpush.msrb.mxu3 %v1055_v61  ;;  %v543_v27 = vld [vmem:[%s3447_s6 + $0x848] sm:$0xff]  ;;  %2258 = vmatpush.msra.mxu0 %v528_v23  ;;  %v1200_v0 = vld [vmem:[%s3447_s6 + $0x1cd0] sm:$0xff] }
 0x1b1   : > { %2159 = vmatmul.f32.vlgmr.msra.gmra.mxu3 %v4244_v29  ;;  %2305 = vmatpush.msra.mxu2 %v1024_v24  ;;  %v4252_v32 = vld [vmem:[#allocation2 + $0x8] sm:$0xff]  ;;  %v416_v3 = vld [vmem:[%s3447_s6 + $0x450] sm:$0xff] }
 0x1b2   : > { %2327 = vmatpush.msra.mxu3 %v1296_v25  ;;  %2204 = vmatpush.msrb.mxu1 %v543_v27  ;;  %v912_v4 = vld [vmem:[%s3447_s6 + $0x13d0] sm:$0xff] }
 0x1b3   : > { %2259 = vmatpush.msra.mxu0 %v512_v28  ;;  %2113 = vmatmul.f32.vlgmr.msra.gmra.mxu1 %v4252_v32  ;;  %v688_v6 = vld [vmem:[%s3447_s6 + $0xcd0] sm:$0xff] }
 0x1b4   : > { %2306 = vmatpush.msra.mxu2 %v1008_v48  ;;  %2281 = vmatpush.msra.mxu1 %v784_v30  ;;  %v1184_v7 = vld [vmem:[%s3447_s6 + $0x1c50] sm:$0xff] }
 0x1b5   : > { %2328 = vmatpush.msra.mxu3 %v1280_v51  ;;  %2260 = vmatpush.msra.mxu0 %v496_v19  ;;  %v1726_v37 = vpop.f32.mrf.mxu0  ;;  %v400_v44 = vld [vmem:[%s3447_s6 + $0x3d0] sm:$0xff] }
 0x1b6   : > { %2307 = vmatpush.msra.mxu2 %v992_v31  ;;  %2282 = vmatpush.msra.mxu1 %v768_v53  ;;  %v1727_v42 = vadd.f32 %v1726_v37, %v1310_v59  ;;  %v896_v11 = vld [vmem:[%s3447_s6 + $0x1350] sm:$0xff]  ;;  %v4305_v31 = vld [vmem:[#allocation2 + $0x20] sm:$0xff] }
 0x1b7   : > { %2329 = vmatpush.msra.mxu3 %v1264_v54  ;;  %2261 = vmatpush.msra.mxu0 %v480_v60  ;;  %v672_v12 = vld [vmem:[%s3447_s6 + $0xc50] sm:$0xff]  ;;  %v4309_v60 = vld [vmem:[#allocation2 + $0x38] sm:$0xff] }
 0x1b8   : > { %2308 = vmatpush.msra.mxu2 %v976_v33  ;;  %2283 = vmatpush.msra.mxu1 %v752_v34  ;;  %v1749_v55 = vpop.f32.mrf.mxu1  ;;  %v1772_v58 = vpop.f32.mrf.mxu2  ;;  %v1168_v62 = vld [vmem:[%s3447_s6 + $0x1bd0] sm:$0xff] }
 0x1b9   : > { %2330 = vmatpush.msra.mxu3 %v1248_v22  ;;  %2262 = vmatpush.msra.mxu0 %v464_v1  ;;  %v1750_v59 = vadd.f32 %v1749_v55, %v1727_v42  ;;  %v384_v13 = vld [vmem:[%s3447_s6 + $0x350] sm:$0xff]  ;;  %v529_v55 = vld [vmem:[%s3447_s6 + $0x7d8] sm:$0xff] }
 0x1ba   : > { %2309 = vmatpush.msra.mxu2 %v960_v36  ;;  %2284 = vmatpush.msra.mxu1 %v736_v38  ;;  %v880_v39 = vld [vmem:[%s3447_s6 + $0x12d0] sm:$0xff]  ;;  %v4317_v36 = vld [vmem:[#allocation2 + $0x28] sm:$0xff] }
 0x1bb   : > { %2331 = vmatpush.msra.mxu3 %v1232_v8  ;;  %2263 = vmatpush.msra.mxu0 %v448_v43  ;;  %v1773_v5 = vadd.f32 %v1772_v58, %v1750_v59  ;;  %v1795_v9 = vpop.f32.mrf.mxu3  ;;  %v656_v41 = vld [vmem:[%s3447_s6 + $0xbd0] sm:$0xff]  ;;  %v513_v58 = vld [vmem:[%s3447_s6 + $0x758] sm:$0xff] }
 0x1bc   : > { %2310 = vmatpush.msra.mxu2 %v944_v45  ;;  %2285 = vmatpush.msra.mxu1 %v720_v49  ;;  %v1152_v14 = vld [vmem:[%s3447_s6 + $0x1b50] sm:$0xff]  ;;  %v1041_v45 = vld [vmem:[%s3447_s6 + $0x17d8] sm:$0xff] }
 0x1bd   : > { %2332 = vmatpush.msra.mxu3 %v1216_v50  ;;  %2264 = vmatpush.msra.mxu0 %v432_v56  ;;  %v1796_v2 = vadd.f32 %v1795_v9, %v1773_v5  ;;  %v368_v46 = vld [vmem:[%s3447_s6 + $0x2d0] sm:$0xff]  ;;  %v1025_v56 = vld [vmem:[%s3447_s6 + $0x1758] sm:$0xff] }
 0x1be   : > { %2311 = vmatpush.msra.mxu2 %v928_v57  ;;  %2286 = vmatpush.msra.mxu1 %v704_v63  ;;  %v864_v16 = vld [vmem:[%s3447_s6 + $0x1250] sm:$0xff]  ;;  %v1297_v57 = vld [vmem:[%s3447_s6 + $0x1fd8] sm:$0xff] }
 0x1bf   : > { %2333 = vmatpush.msra.mxu3 %v1200_v0  ;;  %2265 = vmatpush.msra.mxu0 %v416_v3  ;;  %2830 = vst [vmem:[%s3886_s19 + $0xa0] sm:$0xff] %v1796_v2  ;;  %v1815_v40 = vpop.f32.mrf.mxu0  ;;  %v640_v52 = vld [vmem:[%s3447_s6 + $0xb50] sm:$0xff]  ;;  %v1009_v63 = vld [vmem:[%s3447_s6 + $0x16d8] sm:$0xff] }
 0x1c0   : > { %2312 = vmatpush.msra.mxu2 %v912_v4  ;;  %2287 = vmatpush.msra.mxu1 %v688_v6  ;;  %v1816_v15 = vadd.f32 %v1815_v40, %v1311_v10  ;;  %v1136_v17 = vld [vmem:[%s3447_s6 + $0x1ad0] sm:$0xff]  ;;  %v785_v0 = vld [vmem:[%s3447_s6 + $0xfd8] sm:$0xff] }
 0x1c1   : > { %2334 = vmatpush.msra.mxu3 %v1184_v7  ;;  %2266 = vmatpush.msra.mxu0 %v400_v44  ;;  %v352_v18 = vld [vmem:[%s3447_s6 + $0x250] sm:$0xff]  ;;  %v1281_v3 = vld [vmem:[%s3447_s6 + $0x1f58] sm:$0xff] }
 0x1c2   : > { %2313 = vmatpush.msra.mxu2 %v896_v11  ;;  %2288 = vmatpush.msra.mxu1 %v672_v12  ;;  %v1838_v47 = vpop.f32.mrf.mxu1  ;;  %v1861_v20 = vpop.f32.mrf.mxu2  ;;  %v624_v61 = vld [vmem:[%s3447_s6 + $0xad0] sm:$0xff]  ;;  %v497_v4 = vld [vmem:[%s3447_s6 + $0x6d8] sm:$0xff] }
 0x1c3   : > { %2335 = vmatpush.msra.mxu3 %v1168_v62  ;;  %2267 = vmatpush.msra.mxu0 %v384_v13  ;;  %v848_v23 = vld [vmem:[%s3447_s6 + $0x11d0] sm:$0xff]  ;;  %v1839_v24 = vadd.f32 %v1838_v47, %v1816_v15  ;;  %v993_v5 = vld [vmem:[%s3447_s6 + $0x1658] sm:$0xff] }
 0x1c4   : > { %2314 = vmatpush.msra.mxu2 %v880_v39  ;;  %2289 = vmatpush.msra.mxu1 %v656_v41  ;;  %v1120_v25 = vld [vmem:[%s3447_s6 + $0x1a50] sm:$0xff]  ;;  %v769_v6 = vld [vmem:[%s3447_s6 + $0xf58] sm:$0xff] }
 0x1c5   : > { %2336 = vmatpush.msra.mxu3 %v1152_v14  ;;  %2268 = vmatpush.msra.mxu0 %v368_v46  ;;  %v4299_v27 = vld [vmem:[#allocation2 + $0x30] sm:$0xff]  ;;  %v1862_v48 = vadd.f32 %v1861_v20, %v1839_v24  ;;  %v1884_v30 = vpop.f32.mrf.mxu3  ;;  %v1265_v7 = vld [vmem:[%s3447_s6 + $0x1ed8] sm:$0xff] }
 0x1c6   : > { %2315 = vmatpush.msra.mxu2 %v864_v16  ;;  %2290 = vmatpush.msra.mxu1 %v640_v52  ;;  %v336_v28 = vld [vmem:[%s3447_s6 + $0x1d0] sm:$0xff]  ;;  %v481_v9 = vld [vmem:[%s3447_s6 + $0x658] sm:$0xff] }
 0x1c7   : > { %2337 = vmatpush.msra.mxu3 %v1136_v17  ;;  %2139 = vmatmul.f32.gmra.mxu2 %v4299_v27  ;;  %v608_v51 = vld [vmem:[%s3447_s6 + $0xa50] sm:$0xff]  ;;  %v1885_v54 = vadd.f32 %v1884_v30, %v1862_v48  ;;  %v977_v44 = vld [vmem:[%s3447_s6 + $0x15d8] sm:$0xff] }
 0x1c8   : > { %2269 = vmatpush.msra.mxu0 %v352_v18  ;;  %2291 = vmatpush.msra.mxu1 %v624_v61  ;;  %v832_v19 = vld [vmem:[%s3447_s6 + $0x1150] sm:$0xff]  ;;  %v753_v11 = vld [vmem:[%s3447_s6 + $0xed8] sm:$0xff] }
 0x1c9   : > { %2316 = vmatpush.msra.mxu2 %v848_v23  ;;  %2338 = vmatpush.msra.mxu3 %v1120_v25  ;;  %v1104_v53 = vld [vmem:[%s3447_s6 + $0x19d0] sm:$0xff]  ;;  %2815 = vst [vmem:[%s3886_s19 + $0x28] sm:$0xff] %v1885_v54  ;;  %v1249_v2 = vld [vmem:[%s3447_s6 + $0x1e58] sm:$0xff] }
 0x1ca   : > { %2093 = vmatmul.f32.gmra.mxu0 %v4305_v31  ;;  %2162 = vmatmul.f32.gmra.mxu3 %v4309_v60  ;;  %v320_v33 = vld [vmem:[%s3447_s6 + $0x150] sm:$0xff]  ;;  %v465_v12 = vld [vmem:[%s3447_s6 + $0x5d8] sm:$0xff] }
 0x1cb   : > { %2270 = vmatpush.msra.mxu0 %v336_v28  ;;  %v592_v34 = vld [vmem:[%s3447_s6 + $0x9d0] sm:$0xff]  ;;  %2292 = vmatpush.msra.mxu1 %v608_v51  ;;  %v961_v62 = vld [vmem:[%s3447_s6 + $0x1558] sm:$0xff]  ;;  %v1312_v51 = vperm.slane %v4190_v35, 6 }
 0x1cc   : > { %2317 = vmatpush.msra.mxu2 %v832_v19  ;;  %v816_v22 = vld [vmem:[%s3447_s6 + $0x10d0] sm:$0xff]  ;;  %2339 = vmatpush.msra.mxu3 %v1104_v53  ;;  %v737_v39 = vld [vmem:[%s3447_s6 + $0xe58] sm:$0xff] }
 0x1cd   : > { %v1088_v1 = vld [vmem:[%s3447_s6 + $0x1950] sm:$0xff]  ;;  %2116 = vmatmul.f32.gmra.mxu1 %v4317_v36  ;;  %2271 = vmatpush.msra.mxu0 %v320_v33  ;;  %v1233_v40 = vld [vmem:[%s3447_s6 + $0x1dd8] sm:$0xff] }
 0x1ce   : > { %v304_v37 = vld [vmem:[%s3447_s6 + $0xd0] sm:$0xff]  ;;  %2293 = vmatpush.msra.mxu1 %v592_v34  ;;  %2318 = vmatpush.msra.mxu2 %v816_v22  ;;  %v449_v14 = vld [vmem:[%s3447_s6 + $0x558] sm:$0xff] }
 0x1cf   : > { %v576_v38 = vld [vmem:[%s3447_s6 + $0x950] sm:$0xff]  ;;  %2340 = vmatpush.msra.mxu3 %v1088_v1  ;;  %2272 = vmatpush.msra.mxu0 %v304_v37  ;;  %v945_v15 = vld [vmem:[%s3447_s6 + $0x14d8] sm:$0xff] }
 0x1d0   : > { %v800_v8 = vld [vmem:[%s3447_s6 + $0x1050] sm:$0xff]  ;;  %2294 = vmatpush.msra.mxu1 %v576_v38  ;;  %2228 = vmatmul.f32.vlgmr.msrb.gmra.mxu2 %v4233_v21  ;;  %v721_v46 = vld [vmem:[%s3447_s6 + $0xdd8] sm:$0xff] }
 0x1d1   : > { %v1072_v42 = vld [vmem:[%s3447_s6 + $0x18d0] sm:$0xff]  ;;  %2319 = vmatpush.msra.mxu2 %v800_v8  ;;  %v1217_v16 = vld [vmem:[%s3447_s6 + $0x1d58] sm:$0xff] }
 0x1d2   : > { %v288_v43 = vld [vmem:[%s3447_s6 + $0x50] sm:$0xff]  ;;  %2341 = vmatpush.msra.mxu3 %v1072_v42  ;;  %2182 = vmatmul.f32.vlgmr.msrb.gmra.mxu0 %v4239_v26  ;;  %v433_v17 = vld [vmem:[%s3447_s6 + $0x4d8] sm:$0xff] }
 0x1d3   : > { %v560_v49 = vld [vmem:[%s3447_s6 + $0x8d0] sm:$0xff]  ;;  %2273 = vmatpush.msra.mxu0 %v288_v43  ;;  %2396 = vmatpush.msrb.mxu2 %v1041_v45  ;;  %v929_v18 = vld [vmem:[%s3447_s6 + $0x1458] sm:$0xff] }
 0x1d4   : > { %v1056_v50 = vld [vmem:[%s3447_s6 + $0x1850] sm:$0xff]  ;;  %2295 = vmatpush.msra.mxu1 %v560_v49  ;;  %2251 = vmatmul.f32.vlgmr.msrb.gmra.mxu3 %v4244_v29  ;;  %v705_v20 = vld [vmem:[%s3447_s6 + $0xd58] sm:$0xff] }
 0x1d5   : > { %2342 = vmatpush.msra.mxu3 %v1056_v50  ;;  %v544_v59 = vld [vmem:[%s3447_s6 + $0x850] sm:$0xff]  ;;  %2350 = vmatpush.msrb.mxu0 %v529_v55  ;;  %v1201_v61 = vld [vmem:[%s3447_s6 + $0x1cd8] sm:$0xff] }
 0x1d6   : > { %2397 = vmatpush.msrb.mxu2 %v1025_v56  ;;  %2296 = vmatpush.msra.mxu1 %v544_v59  ;;  %v417_v23 = vld [vmem:[%s3447_s6 + $0x458] sm:$0xff] }
 0x1d7   : > { %2419 = vmatpush.msrb.mxu3 %v1297_v57  ;;  %2351 = vmatpush.msrb.mxu0 %v513_v58  ;;  %v913_v24 = vld [vmem:[%s3447_s6 + $0x13d8] sm:$0xff] }
 0x1d8   : > { %2205 = vmatmul.f32.vlgmr.msrb.gmra.mxu1 %v4252_v32  ;;  %2398 = vmatpush.msrb.mxu2 %v1009_v63  ;;  %v689_v28 = vld [vmem:[%s3447_s6 + $0xcd8] sm:$0xff] }
 0x1d9   : > { %2373 = vmatpush.msrb.mxu1 %v785_v0  ;;  %2420 = vmatpush.msrb.mxu3 %v1281_v3  ;;  %v1818_v13 = vpop.f32.mrf.mxu0  ;;  %v1185_v48 = vld [vmem:[%s3447_s6 + $0x1c58] sm:$0xff] }
 0x1da   : > { %2352 = vmatpush.msrb.mxu0 %v497_v4  ;;  %2399 = vmatpush.msrb.mxu2 %v993_v5  ;;  %v1819_v41 = vadd.f32 %v1818_v13, %v1311_v10  ;;  %v401_v19 = vld [vmem:[%s3447_s6 + $0x3d8] sm:$0xff] }
 0x1db   : > { %2374 = vmatpush.msrb.mxu1 %v769_v6  ;;  %2421 = vmatpush.msrb.mxu3 %v1265_v7  ;;  %v897_v53 = vld [vmem:[%s3447_s6 + $0x1358] sm:$0xff] }
 0x1dc   : > { %2353 = vmatpush.msrb.mxu0 %v481_v9  ;;  %2400 = vmatpush.msrb.mxu2 %v977_v44  ;;  %v1841_v52 = vpop.f32.mrf.mxu1  ;;  %v1864_v47 = vpop.f32.mrf.mxu2  ;;  %v673_v33 = vld [vmem:[%s3447_s6 + $0xc58] sm:$0xff] }
 0x1dd   : > { %2375 = vmatpush.msrb.mxu1 %v753_v11  ;;  %2422 = vmatpush.msrb.mxu3 %v1249_v2  ;;  %v1842_v10 = vadd.f32 %v1841_v52, %v1819_v41  ;;  %v1169_v34 = vld [vmem:[%s3447_s6 + $0x1bd8] sm:$0xff]  ;;  %v530_v52 = vld [vmem:[%s3447_s6 + $0x7e0] sm:$0xff] }
 0x1de   : > { %2354 = vmatpush.msrb.mxu0 %v465_v12  ;;  %2401 = vmatpush.msrb.mxu2 %v961_v62  ;;  %v385_v22 = vld [vmem:[%s3447_s6 + $0x358] sm:$0xff] }
 0x1df   : > { %2376 = vmatpush.msrb.mxu1 %v737_v39  ;;  %2423 = vmatpush.msrb.mxu3 %v1233_v40  ;;  %v1865_v25 = vadd.f32 %v1864_v47, %v1842_v10  ;;  %v1887_v30 = vpop.f32.mrf.mxu3  ;;  %v881_v1 = vld [vmem:[%s3447_s6 + $0x12d8] sm:$0xff]  ;;  %v514_v47 = vld [vmem:[%s3447_s6 + $0x760] sm:$0xff] }
 0x1e0   : > { %2355 = vmatpush.msrb.mxu0 %v449_v14  ;;  %2402 = vmatpush.msrb.mxu2 %v945_v15  ;;  %v657_v38 = vld [vmem:[%s3447_s6 + $0xbd8] sm:$0xff]  ;;  %v1042_v15 = vld [vmem:[%s3447_s6 + $0x17e0] sm:$0xff] }
 0x1e1   : > { %2377 = vmatpush.msrb.mxu1 %v721_v46  ;;  %2424 = vmatpush.msrb.mxu3 %v1217_v16  ;;  %v1888_v54 = vadd.f32 %v1887_v30, %v1865_v25  ;;  %v1907_v37 = vpop.f32.mrf.mxu0  ;;  %v1153_v8 = vld [vmem:[%s3447_s6 + $0x1b58] sm:$0xff]  ;;  %v994_v25 = vld [vmem:[%s3447_s6 + $0x1660] sm:$0xff] }
 0x1e2   : > { %2356 = vmatpush.msrb.mxu0 %v433_v17  ;;  %2403 = vmatpush.msrb.mxu2 %v929_v18  ;;  %v1908_v42 = vadd.f32 %v1907_v37, %v1312_v51  ;;  %v369_v43 = vld [vmem:[%s3447_s6 + $0x2d8] sm:$0xff]  ;;  %v1026_v17 = vld [vmem:[%s3447_s6 + $0x1760] sm:$0xff] }
 0x1e3   : > { %2378 = vmatpush.msrb.mxu1 %v705_v20  ;;  %2425 = vmatpush.msrb.mxu3 %v1201_v61  ;;  %2831 = vst [vmem:[%s3886_s19 + $0xa8] sm:$0xff] %v1888_v54  ;;  %v865_v45 = vld [vmem:[%s3447_s6 + $0x1258] sm:$0xff]  ;;  %v1298_v18 = vld [vmem:[%s3447_s6 + $0x1fe0] sm:$0xff] }
 0x1e4   : > { %2357 = vmatpush.msrb.mxu0 %v417_v23  ;;  %2404 = vmatpush.msrb.mxu2 %v913_v24  ;;  %v641_v49 = vld [vmem:[%s3447_s6 + $0xb58] sm:$0xff]  ;;  %v1953_v57 = vpop.f32.mrf.mxu2  ;;  %v1010_v20 = vld [vmem:[%s3447_s6 + $0x16e0] sm:$0xff] }
 0x1e5   : > { %2379 = vmatpush.msrb.mxu1 %v689_v28  ;;  %2426 = vmatpush.msrb.mxu3 %v1185_v48  ;;  %v1137_v50 = vld [vmem:[%s3447_s6 + $0x1ad8] sm:$0xff]  ;;  %v786_v61 = vld [vmem:[%s3447_s6 + $0xfe0] sm:$0xff] }
 0x1e6   : > { %2358 = vmatpush.msrb.mxu0 %v401_v19  ;;  %2405 = vmatpush.msrb.mxu2 %v897_v53  ;;  %v353_v55 = vld [vmem:[%s3447_s6 + $0x258] sm:$0xff]  ;;  %v1282_v23 = vld [vmem:[%s3447_s6 + $0x1f60] sm:$0xff] }
 0x1e7   : > { %2380 = vmatpush.msrb.mxu1 %v673_v33  ;;  %2427 = vmatpush.msrb.mxu3 %v1169_v34  ;;  %v625_v59 = vld [vmem:[%s3447_s6 + $0xad8] sm:$0xff]  ;;  %v498_v24 = vld [vmem:[%s3447_s6 + $0x6e0] sm:$0xff] }
 0x1e8   : > { %2359 = vmatpush.msrb.mxu0 %v385_v22  ;;  %2406 = vmatpush.msrb.mxu2 %v881_v1  ;;  %v1930_v56 = vpop.f32.mrf.mxu1  ;;  %v849_v58 = vld [vmem:[%s3447_s6 + $0x11d8] sm:$0xff]  ;;  %v770_v28 = vld [vmem:[%s3447_s6 + $0xf60] sm:$0xff] }
 0x1e9   : > { %2381 = vmatpush.msrb.mxu1 %v657_v38  ;;  %2428 = vmatpush.msrb.mxu3 %v1153_v8  ;;  %v1931_v63 = vadd.f32 %v1930_v56, %v1908_v42  ;;  %v1121_v0 = vld [vmem:[%s3447_s6 + $0x1a58] sm:$0xff]  ;;  %v1266_v48 = vld [vmem:[%s3447_s6 + $0x1ee0] sm:$0xff] }
 0x1ea   : > { %2360 = vmatpush.msrb.mxu0 %v369_v43  ;;  %2407 = vmatpush.msrb.mxu2 %v865_v45  ;;  %v337_v3 = vld [vmem:[%s3447_s6 + $0x1d8] sm:$0xff]  ;;  %v1976_v5 = vpop.f32.mrf.mxu3  ;;  %v482_v30 = vld [vmem:[%s3447_s6 + $0x660] sm:$0xff] }
 0x1eb   : > { %2382 = vmatpush.msrb.mxu1 %v641_v49  ;;  %2429 = vmatpush.msrb.mxu3 %v1137_v50  ;;  %v1954_v4 = vadd.f32 %v1953_v57, %v1931_v63  ;;  %v609_v6 = vld [vmem:[%s3447_s6 + $0xa58] sm:$0xff]  ;;  %v978_v19 = vld [vmem:[%s3447_s6 + $0x15e0] sm:$0xff] }
 0x1ec   : > { %2231 = vmatmul.f32.gmra.mxu2 %v4299_v27  ;;  %2361 = vmatpush.msrb.mxu0 %v353_v55  ;;  %v833_v7 = vld [vmem:[%s3447_s6 + $0x1158] sm:$0xff]  ;;  %v754_v53 = vld [vmem:[%s3447_s6 + $0xee0] sm:$0xff] }
 0x1ed   : > { %2383 = vmatpush.msrb.mxu1 %v625_v59  ;;  %2408 = vmatpush.msrb.mxu2 %v849_v58  ;;  %v1105_v9 = vld [vmem:[%s3447_s6 + $0x19d8] sm:$0xff]  ;;  %v1977_v44 = vadd.f32 %v1976_v5, %v1954_v4  ;;  %v1250_v54 = vld [vmem:[%s3447_s6 + $0x1e60] sm:$0xff] }
 0x1ee   : > { %2430 = vmatpush.msrb.mxu3 %v1121_v0  ;;  %2185 = vmatmul.f32.gmra.mxu0 %v4305_v31  ;;  %v321_v11 = vld [vmem:[%s3447_s6 + $0x158] sm:$0xff]  ;;  %v466_v33 = vld [vmem:[%s3447_s6 + $0x5e0] sm:$0xff] }
 0x1ef   : > { %2254 = vmatmul.f32.gmra.mxu3 %v4309_v60  ;;  %2362 = vmatpush.msrb.mxu0 %v337_v3  ;;  %v593_v2 = vld [vmem:[%s3447_s6 + $0x9d8] sm:$0xff]  ;;  %2816 = vst [vmem:[%s3886_s19 + $0x30] sm:$0xff] %v1977_v44  ;;  %v962_v34 = vld [vmem:[%s3447_s6 + $0x1560] sm:$0xff] }
 0x1f0   : > { %2384 = vmatpush.msrb.mxu1 %v609_v6  ;;  %2409 = vmatpush.msrb.mxu2 %v833_v7  ;;  %v817_v12 = vld [vmem:[%s3447_s6 + $0x10d8] sm:$0xff]  ;;  %v738_v1 = vld [vmem:[%s3447_s6 + $0xe60] sm:$0xff]  ;;  %v1313_v6 = vperm.slane %v4190_v35, 7  ;;  %v931_v35 = vld [vmem:[%s3447_s6 + $0x1468] sm:$0xff] }
 0x1f1   : > { %v1089_v62 = vld [vmem:[%s3447_s6 + $0x1958] sm:$0xff]  ;;  %2431 = vmatpush.msrb.mxu3 %v1105_v9  ;;  %2208 = vmatmul.f32.gmra.mxu1 %v4317_v36  ;;  %v1234_v37 = vld [vmem:[%s3447_s6 + $0x1de0] sm:$0xff] }
 0x1f2   : > { %v305_v13 = vld [vmem:[%s3447_s6 + $0xd8] sm:$0xff]  ;;  %2363 = vmatpush.msrb.mxu0 %v321_v11  ;;  %2385 = vmatpush.msrb.mxu1 %v593_v2  ;;  %v450_v8 = vld [vmem:[%s3447_s6 + $0x560] sm:$0xff] }
 0x1f3   : > { %v577_v39 = vld [vmem:[%s3447_s6 + $0x958] sm:$0xff]  ;;  %2410 = vmatpush.msrb.mxu2 %v817_v12  ;;  %2432 = vmatpush.msrb.mxu3 %v1089_v62  ;;  %v946_v42 = vld [vmem:[%s3447_s6 + $0x14e0] sm:$0xff] }
 0x1f4   : > { %v801_v40 = vld [vmem:[%s3447_s6 + $0x1058] sm:$0xff]  ;;  %2364 = vmatpush.msrb.mxu0 %v305_v13  ;;  %2386 = vmatpush.msrb.mxu1 %v577_v39  ;;  %v722_v43 = vld [vmem:[%s3447_s6 + $0xde0] sm:$0xff] }
 0x1f5   : > { %v1073_v41 = vld [vmem:[%s3447_s6 + $0x18d8] sm:$0xff]  ;;  %2411 = vmatpush.msrb.mxu2 %v801_v40  ;;  %v1218_v45 = vld [vmem:[%s3447_s6 + $0x1d60] sm:$0xff] }
 0x1f6   : > { %v289_v14 = vld [vmem:[%s3447_s6 + $0x58] sm:$0xff]  ;;  %2433 = vmatpush.msrb.mxu3 %v1073_v41  ;;  %2320 = vmatmul.f32.vlgmr.msra.gmra.mxu2 %v4233_v21  ;;  %v434_v50 = vld [vmem:[%s3447_s6 + $0x4e0] sm:$0xff] }
 0x1f7   : > { %v561_v46 = vld [vmem:[%s3447_s6 + $0x8d8] sm:$0xff]  ;;  %2365 = vmatpush.msrb.mxu0 %v289_v14  ;;  %2488 = vmatpush.msra.mxu2 %v1042_v15  ;;  %v930_v55 = vld [vmem:[%s3447_s6 + $0x1460] sm:$0xff] }
 0x1f8   : > { %v1057_v16 = vld [vmem:[%s3447_s6 + $0x1858] sm:$0xff]  ;;  %2387 = vmatpush.msrb.mxu1 %v561_v46  ;;  %2274 = vmatmul.f32.vlgmr.msra.gmra.mxu0 %v4239_v26  ;;  %v706_v57 = vld [vmem:[%s3447_s6 + $0xd60] sm:$0xff] }
 0x1f9   : > { %2434 = vmatpush.msrb.mxu3 %v1057_v16  ;;  %v545_v10 = vld [vmem:[%s3447_s6 + $0x858] sm:$0xff]  ;;  %2442 = vmatpush.msra.mxu0 %v530_v52  ;;  %v1202_v59 = vld [vmem:[%s3447_s6 + $0x1ce0] sm:$0xff] }
 0x1fa   : > { %2343 = vmatmul.f32.vlgmr.msra.gmra.mxu3 %v4244_v29  ;;  %2489 = vmatpush.msra.mxu2 %v1026_v17  ;;  %v418_v58 = vld [vmem:[%s3447_s6 + $0x460] sm:$0xff] }
 0x1fb   : > { %2511 = vmatpush.msra.mxu3 %v1298_v18  ;;  %2388 = vmatpush.msrb.mxu1 %v545_v10  ;;  %v914_v63 = vld [vmem:[%s3447_s6 + $0x13e0] sm:$0xff] }
 0x1fc   : > { %2443 = vmatpush.msra.mxu0 %v514_v47  ;;  %2297 = vmatmul.f32.vlgmr.msra.gmra.mxu1 %v4252_v32  ;;  %v690_v3 = vld [vmem:[%s3447_s6 + $0xce0] sm:$0xff] }
 0x1fd   : > { %2490 = vmatpush.msra.mxu2 %v1010_v20  ;;  %2465 = vmatpush.msra.mxu1 %v786_v61  ;;  %v1186_v4 = vld [vmem:[%s3447_s6 + $0x1c60] sm:$0xff] }
 0x1fe   : > { %2512 = vmatpush.msra.mxu3 %v1282_v23  ;;  %2444 = vmatpush.msra.mxu0 %v498_v24  ;;  %v1910_v22 = vpop.f32.mrf.mxu0  ;;  %v402_v7 = vld [vmem:[%s3447_s6 + $0x3e0] sm:$0xff] }
 0x1ff   : > { %2491 = vmatpush.msra.mxu2 %v994_v25  ;;  %2466 = vmatpush.msra.mxu1 %v770_v28  ;;  %v1911_v38 = vadd.f32 %v1910_v22, %v1312_v51  ;;  %v898_v9 = vld [vmem:[%s3447_s6 + $0x1360] sm:$0xff] }
 0x200   : > { %2513 = vmatpush.msra.mxu3 %v1266_v48  ;;  %2445 = vmatpush.msra.mxu0 %v482_v30  ;;  %v674_v11 = vld [vmem:[%s3447_s6 + $0xc60] sm:$0xff] }
 0x201   : > { %2492 = vmatpush.msra.mxu2 %v978_v19  ;;  %2467 = vmatpush.msra.mxu1 %v754_v53  ;;  %v1933_v49 = vpop.f32.mrf.mxu1  ;;  %v1170_v2 = vld [vmem:[%s3447_s6 + $0x1be0] sm:$0xff] }
 0x202   : > { %2514 = vmatpush.msra.mxu3 %v1250_v54  ;;  %2446 = vmatpush.msra.mxu0 %v466_v33  ;;  %v1934_v51 = vadd.f32 %v1933_v49, %v1911_v38  ;;  %v1956_v56 = vpop.f32.mrf.mxu2  ;;  %v386_v12 = vld [vmem:[%s3447_s6 + $0x360] sm:$0xff]  ;;  %v531_v49 = vld [vmem:[%s3447_s6 + $0x7e8] sm:$0xff] }
 0x203   : > { %2493 = vmatpush.msra.mxu2 %v962_v34  ;;  %2468 = vmatpush.msra.mxu1 %v738_v1  ;;  %v882_v62 = vld [vmem:[%s3447_s6 + $0x12e0] sm:$0xff] }
 0x204   : > { %2515 = vmatpush.msra.mxu3 %v1234_v37  ;;  %2447 = vmatpush.msra.mxu0 %v450_v8  ;;  %v1957_v0 = vadd.f32 %v1956_v56, %v1934_v51  ;;  %v658_v39 = vld [vmem:[%s3447_s6 + $0xbe0] sm:$0xff]  ;;  %v515_v56 = vld [vmem:[%s3447_s6 + $0x768] sm:$0xff] }
 0x205   : > { %2494 = vmatpush.msra.mxu2 %v946_v42  ;;  %2469 = vmatpush.msra.mxu1 %v722_v43  ;;  %v1979_v5 = vpop.f32.mrf.mxu3  ;;  %v1154_v40 = vld [vmem:[%s3447_s6 + $0x1b60] sm:$0xff]  ;;  %v1043_v42 = vld [vmem:[%s3447_s6 + $0x17e8] sm:$0xff] }
 0x206   : > { %2516 = vmatpush.msra.mxu3 %v1218_v45  ;;  %2448 = vmatpush.msra.mxu0 %v434_v50  ;;  %v1980_v44 = vadd.f32 %v1979_v5, %v1957_v0  ;;  %v370_v14 = vld [vmem:[%s3447_s6 + $0x2e0] sm:$0xff]  ;;  %v1027_v50 = vld [vmem:[%s3447_s6 + $0x1768] sm:$0xff] }
 0x207   : > { %2495 = vmatpush.msra.mxu2 %v930_v55  ;;  %2470 = vmatpush.msra.mxu1 %v706_v57  ;;  %v866_v15 = vld [vmem:[%s3447_s6 + $0x1260] sm:$0xff]  ;;  %v1299_v55 = vld [vmem:[%s3447_s6 + $0x1fe8] sm:$0xff] }
 0x208   : > { %2517 = vmatpush.msra.mxu3 %v1202_v59  ;;  %2449 = vmatpush.msra.mxu0 %v418_v58  ;;  %2832 = vst [vmem:[%s3886_s19 + $0xb0] sm:$0xff] %v1980_v44  ;;  %v1999_v13 = vpop.f32.mrf.mxu0  ;;  %v642_v46 = vld [vmem:[%s3447_s6 + $0xb60] sm:$0xff]  ;;  %v787_v57 = vld [vmem:[%s3447_s6 + $0xfe8] sm:$0xff] }
 0x209   : > { %2496 = vmatpush.msra.mxu2 %v914_v63  ;;  %2471 = vmatpush.msra.mxu1 %v690_v3  ;;  %v2000_v41 = vadd.f32 %v1999_v13, %v1313_v6  ;;  %v1138_v16 = vld [vmem:[%s3447_s6 + $0x1ae0] sm:$0xff]  ;;  %v1283_v59 = vld [vmem:[%s3447_s6 + $0x1f68] sm:$0xff] }
 0x20a   : > { %2518 = vmatpush.msra.mxu3 %v1186_v4  ;;  %2450 = vmatpush.msra.mxu0 %v402_v7  ;;  %v354_v52 = vld [vmem:[%s3447_s6 + $0x260] sm:$0xff]  ;;  %v499_v58 = vld [vmem:[%s3447_s6 + $0x6e8] sm:$0xff] }
 0x20b   : > { %2497 = vmatpush.msra.mxu2 %v898_v9  ;;  %2472 = vmatpush.msra.mxu1 %v674_v11  ;;  %v626_v10 = vld [vmem:[%s3447_s6 + $0xae0] sm:$0xff]  ;;  %v1267_v63 = vld [vmem:[%s3447_s6 + $0x1ee8] sm:$0xff] }
 0x20c   : > { %2519 = vmatpush.msra.mxu3 %v1170_v2  ;;  %2451 = vmatpush.msra.mxu0 %v386_v12  ;;  %v2022_v17 = vpop.f32.mrf.mxu1  ;;  %v2045_v18 = vpop.f32.mrf.mxu2  ;;  %v850_v47 = vld [vmem:[%s3447_s6 + $0x11e0] sm:$0xff]  ;;  %v483_v0 = vld [vmem:[%s3447_s6 + $0x668] sm:$0xff] }
 0x20d   : > { %2498 = vmatpush.msra.mxu2 %v882_v62  ;;  %2473 = vmatpush.msra.mxu1 %v658_v39  ;;  %v2023_v20 = vadd.f32 %v2022_v17, %v2000_v41  ;;  %v1122_v61 = vld [vmem:[%s3447_s6 + $0x1a60] sm:$0xff]  ;;  %v979_v3 = vld [vmem:[%s3447_s6 + $0x15e8] sm:$0xff] }
 0x20e   : > { %2520 = vmatpush.msra.mxu3 %v1154_v40  ;;  %2452 = vmatpush.msra.mxu0 %v370_v14  ;;  %v338_v23 = vld [vmem:[%s3447_s6 + $0x1e0] sm:$0xff]  ;;  %v755_v4 = vld [vmem:[%s3447_s6 + $0xee8] sm:$0xff] }
 0x20f   : > { %2499 = vmatpush.msra.mxu2 %v866_v15  ;;  %2474 = vmatpush.msra.mxu1 %v642_v46  ;;  %v2046_v24 = vadd.f32 %v2045_v18, %v2023_v20  ;;  %v610_v28 = vld [vmem:[%s3447_s6 + $0xa60] sm:$0xff]  ;;  %v1251_v5 = vld [vmem:[%s3447_s6 + $0x1e68] sm:$0xff] }
 0x210   : > { %2521 = vmatpush.msra.mxu3 %v1138_v16  ;;  %2323 = vmatmul.f32.gmra.mxu2 %v4299_v27  ;;  %v2068_v25 = vpop.f32.mrf.mxu3  ;;  %v834_v48 = vld [vmem:[%s3447_s6 + $0x1160] sm:$0xff]  ;;  %v963_v7 = vld [vmem:[%s3447_s6 + $0x1568] sm:$0xff] }
 0x211   : > { %2453 = vmatpush.msra.mxu0 %v354_v52  ;;  %2475 = vmatpush.msra.mxu1 %v626_v10  ;;  %v1106_v30 = vld [vmem:[%s3447_s6 + $0x19e0] sm:$0xff]  ;;  %v2069_v19 = vadd.f32 %v2068_v25, %v2046_v24  ;;  %v739_v44 = vld [vmem:[%s3447_s6 + $0xe68] sm:$0xff] }
 0x212   : > { %2500 = vmatpush.msra.mxu2 %v850_v47  ;;  %2522 = vmatpush.msra.mxu3 %v1122_v61  ;;  %v322_v53 = vld [vmem:[%s3447_s6 + $0x160] sm:$0xff]  ;;  %v1235_v11 = vld [vmem:[%s3447_s6 + $0x1de8] sm:$0xff] }
 0x213   : > { %2277 = vmatmul.f32.gmra.mxu0 %v4305_v31  ;;  %2346 = vmatmul.f32.gmra.mxu3 %v4309_v60  ;;  %v594_v54 = vld [vmem:[%s3447_s6 + $0x9e0] sm:$0xff]  ;;  %2817 = vst [vmem:[%s3886_s19 + $0x38] sm:$0xff] %v2069_v19  ;;  %v451_v12 = vld [vmem:[%s3447_s6 + $0x568] sm:$0xff] }
 0x214   : > { %2454 = vmatpush.msra.mxu0 %v338_v23  ;;  %2476 = vmatpush.msra.mxu1 %v610_v28  ;;  %v818_v33 = vld [vmem:[%s3447_s6 + $0x10e0] sm:$0xff]  ;;  %v947_v62 = vld [vmem:[%s3447_s6 + $0x14e8] sm:$0xff] }
 0x215   : > { %2501 = vmatpush.msra.mxu2 %v834_v48  ;;  %v1090_v34 = vld [vmem:[%s3447_s6 + $0x1960] sm:$0xff]  ;;  %2523 = vmatpush.msra.mxu3 %v1106_v30  ;;  %v723_v13 = vld [vmem:[%s3447_s6 + $0xde8] sm:$0xff] }
 0x216   : > { %2300 = vmatmul.f32.gmra.mxu1 %v4317_v36  ;;  %v306_v22 = vld [vmem:[%s3447_s6 + $0xe0] sm:$0xff]  ;;  %2455 = vmatpush.msra.mxu0 %v322_v53  ;;  %v1219_v39 = vld [vmem:[%s3447_s6 + $0x1d68] sm:$0xff] }
 0x217   : > { %v578_v1 = vld [vmem:[%s3447_s6 + $0x960] sm:$0xff]  ;;  %2477 = vmatpush.msra.mxu1 %v594_v54  ;;  %2502 = vmatpush.msra.mxu2 %v818_v33  ;;  %v435_v41 = vld [vmem:[%s3447_s6 + $0x4e8] sm:$0xff] }
 0x218   : > { %v802_v37 = vld [vmem:[%s3447_s6 + $0x1060] sm:$0xff]  ;;  %2524 = vmatpush.msra.mxu3 %v1090_v34  ;;  %2456 = vmatpush.msra.mxu0 %v306_v22  ;;  %v4519_v15 = vld [vmem:[%s3844_s7 + $0x8] sm:$0xff] }
 0x219   : > { %v1074_v38 = vld [vmem:[%s3447_s6 + $0x18e0] sm:$0xff]  ;;  %2478 = vmatpush.msra.mxu1 %v578_v1  ;;  %2503 = vmatpush.msra.mxu2 %v802_v37  ;;  %v707_v46 = vld [vmem:[%s3447_s6 + $0xd68] sm:$0xff]  ;;  %v1314_v61 = vperm.slane %v4519_v15, 0 }
 0x21a   : > { %v290_v8 = vld [vmem:[%s3447_s6 + $0x60] sm:$0xff]  ;;  %2525 = vmatpush.msra.mxu3 %v1074_v38  ;;  %2412 = vmatmul.f32.vlgmr.msrb.gmra.mxu2 %v4233_v21  ;;  %v1011_v21 = vld [vmem:[%s3447_s6 + $0x16e8] sm:$0xff] }
 0x21b   : > { %v562_v43 = vld [vmem:[%s3447_s6 + $0x8e0] sm:$0xff]  ;;  %2457 = vmatpush.msra.mxu0 %v290_v8  ;;  %2580 = vmatpush.msrb.mxu2 %v1043_v42  ;;  %v1203_v16 = vld [vmem:[%s3447_s6 + $0x1ce8] sm:$0xff] }
 0x21c   : > { %v1058_v45 = vld [vmem:[%s3447_s6 + $0x1860] sm:$0xff]  ;;  %2479 = vmatpush.msra.mxu1 %v562_v43  ;;  %2366 = vmatmul.f32.vlgmr.msrb.gmra.mxu0 %v4239_v26  ;;  %v995_v26 = vld [vmem:[%s3447_s6 + $0x1668] sm:$0xff] }
 0x21d   : > { %2526 = vmatpush.msra.mxu3 %v1058_v45  ;;  %v546_v51 = vld [vmem:[%s3447_s6 + $0x860] sm:$0xff]  ;;  %2534 = vmatpush.msrb.mxu0 %v531_v49  ;;  %v419_v52 = vld [vmem:[%s3447_s6 + $0x468] sm:$0xff] }
 0x21e   : > { %2435 = vmatmul.f32.vlgmr.msrb.gmra.mxu3 %v4244_v29  ;;  %2581 = vmatpush.msrb.mxu2 %v1027_v50  ;;  %v771_v29 = vld [vmem:[%s3447_s6 + $0xf68] sm:$0xff] }
 0x21f   : > { %2603 = vmatpush.msrb.mxu3 %v1299_v55  ;;  %2480 = vmatpush.msra.mxu1 %v546_v51  ;;  %v915_v17 = vld [vmem:[%s3447_s6 + $0x13e8] sm:$0xff] }
 0x220   : > { %2535 = vmatpush.msrb.mxu0 %v515_v56  ;;  %2389 = vmatmul.f32.vlgmr.msrb.gmra.mxu1 %v4252_v32  ;;  %v467_v32 = vld [vmem:[%s3447_s6 + $0x5e8] sm:$0xff] }
 0x221   : > { %2582 = vmatpush.msrb.mxu2 %v1011_v21  ;;  %2557 = vmatpush.msrb.mxu1 %v787_v57  ;;  %v691_v10 = vld [vmem:[%s3447_s6 + $0xce8] sm:$0xff] }
 0x222   : > { %2604 = vmatpush.msrb.mxu3 %v1283_v59  ;;  %2536 = vmatpush.msrb.mxu0 %v499_v58  ;;  %v1187_v47 = vld [vmem:[%s3447_s6 + $0x1c68] sm:$0xff] }
 0x223   : > { %2583 = vmatpush.msrb.mxu2 %v995_v26  ;;  %2558 = vmatpush.msrb.mxu1 %v771_v29  ;;  %v2002_v9 = vpop.f32.mrf.mxu0  ;;  %v403_v23 = vld [vmem:[%s3447_s6 + $0x3e8] sm:$0xff] }
 0x224   : > { %2605 = vmatpush.msrb.mxu3 %v1267_v63  ;;  %2537 = vmatpush.msrb.mxu0 %v483_v0  ;;  %v2003_v2 = vadd.f32 %v2002_v9, %v1313_v6  ;;  %v899_v24 = vld [vmem:[%s3447_s6 + $0x1368] sm:$0xff]  ;;  %v4568_v9 = vld [vmem:[#allocation2 + $0x10] sm:$0xff] }
 0x225   : > { %2584 = vmatpush.msrb.mxu2 %v979_v3  ;;  %2559 = vmatpush.msrb.mxu1 %v755_v4  ;;  %v675_v28 = vld [vmem:[%s3447_s6 + $0xc68] sm:$0xff] }
 0x226   : > { %2606 = vmatpush.msrb.mxu3 %v1251_v5  ;;  %2538 = vmatpush.msrb.mxu0 %v467_v32  ;;  %v2025_v40 = vpop.f32.mrf.mxu1  ;;  %v2048_v14 = vpop.f32.mrf.mxu2  ;;  %v1171_v48 = vld [vmem:[%s3447_s6 + $0x1be8] sm:$0xff]  ;;  %v1044_v32 = vld [vmem:[%s3447_s6 + $0x17f0] sm:$0xff] }
 0x227   : > { %2585 = vmatpush.msrb.mxu2 %v963_v7  ;;  %2560 = vmatpush.msrb.mxu1 %v739_v44  ;;  %v2026_v6 = vadd.f32 %v2025_v40, %v2003_v2  ;;  %v387_v30 = vld [vmem:[%s3447_s6 + $0x368] sm:$0xff]  ;;  %v532_v44 = vld [vmem:[%s3447_s6 + $0x7f0] sm:$0xff] }
 0x228   : > { %2607 = vmatpush.msrb.mxu3 %v1235_v11  ;;  %2539 = vmatpush.msrb.mxu0 %v451_v12  ;;  %v883_v19 = vld [vmem:[%s3447_s6 + $0x12e8] sm:$0xff]  ;;  %v1028_v11 = vld [vmem:[%s3447_s6 + $0x1770] sm:$0xff]  ;;  %v4574_v12 = vld [vmem:[#allocation2] sm:$0xff] }
 0x229   : > { %2586 = vmatpush.msrb.mxu2 %v947_v62  ;;  %2561 = vmatpush.msrb.mxu1 %v723_v13  ;;  %v2049_v18 = vadd.f32 %v2048_v14, %v2026_v6  ;;  %v2071_v20 = vpop.f32.mrf.mxu3  ;;  %v659_v54 = vld [vmem:[%s3447_s6 + $0xbe8] sm:$0xff]  ;;  %v1300_v2 = vld [vmem:[%s3447_s6 + $0x1ff0] sm:$0xff] }
 0x22a   : > { %2608 = vmatpush.msrb.mxu3 %v1219_v39  ;;  %2540 = vmatpush.msrb.mxu0 %v435_v41  ;;  %v1155_v33 = vld [vmem:[%s3447_s6 + $0x1b68] sm:$0xff]  ;;  %v516_v13 = vld [vmem:[%s3447_s6 + $0x770] sm:$0xff]  ;;  %v4579_v39 = vld [vmem:[#allocation2 + $0x18] sm:$0xff] }
 0x22b   : > { %2587 = vmatpush.msrb.mxu2 %v931_v35  ;;  %2562 = vmatpush.msrb.mxu1 %v707_v46  ;;  %v2072_v25 = vadd.f32 %v2071_v20, %v2049_v18  ;;  %v371_v22 = vld [vmem:[%s3447_s6 + $0x2e8] sm:$0xff]  ;;  %v1012_v40 = vld [vmem:[%s3447_s6 + $0x16f0] sm:$0xff] }
 0x22c   : > { %2609 = vmatpush.msrb.mxu3 %v1203_v16  ;;  %2541 = vmatpush.msrb.mxu0 %v419_v52  ;;  %v2091_v53 = vpop.f32.mrf.mxu0  ;;  %v867_v1 = vld [vmem:[%s3447_s6 + $0x1268] sm:$0xff]  ;;  %v788_v41 = vld [vmem:[%s3447_s6 + $0xff0] sm:$0xff] }
 0x22d   : > { %2588 = vmatpush.msrb.mxu2 %v915_v17  ;;  %2563 = vmatpush.msrb.mxu1 %v691_v10  ;;  %2833 = vst [vmem:[%s3886_s19 + $0xb8] sm:$0xff] %v2072_v25  ;;  %v2092_v34 = vadd.f32 %v2091_v53, %v1314_v61  ;;  %v643_v37 = vld [vmem:[%s3447_s6 + $0xb68] sm:$0xff]  ;;  %v1284_v35 = vld [vmem:[%s3447_s6 + $0x1f70] sm:$0xff] }
 0x22e   : > { %2610 = vmatpush.msrb.mxu3 %v1187_v47  ;;  %2542 = vmatpush.msrb.mxu0 %v403_v23  ;;  %v1139_v38 = vld [vmem:[%s3447_s6 + $0x1ae8] sm:$0xff]  ;;  %v500_v6 = vld [vmem:[%s3447_s6 + $0x6f0] sm:$0xff] }
 0x22f   : > { %2589 = vmatpush.msrb.mxu2 %v899_v24  ;;  %2564 = vmatpush.msrb.mxu1 %v675_v28  ;;  %v355_v8 = vld [vmem:[%s3447_s6 + $0x268] sm:$0xff]  ;;  %v996_v14 = vld [vmem:[%s3447_s6 + $0x1670] sm:$0xff] }
 0x230   : > { %2611 = vmatpush.msrb.mxu3 %v1171_v48  ;;  %2543 = vmatpush.msrb.mxu0 %v387_v30  ;;  %v2114_v42 = vpop.f32.mrf.mxu1  ;;  %v2137_v43 = vpop.f32.mrf.mxu2  ;;  %v627_v45 = vld [vmem:[%s3447_s6 + $0xae8] sm:$0xff]  ;;  %v772_v16 = vld [vmem:[%s3447_s6 + $0xf70] sm:$0xff] }
 0x231   : > { %2590 = vmatpush.msrb.mxu2 %v883_v19  ;;  %2565 = vmatpush.msrb.mxu1 %v659_v54  ;;  %v851_v49 = vld [vmem:[%s3447_s6 + $0x11e8] sm:$0xff]  ;;  %v2115_v50 = vadd.f32 %v2114_v42, %v2092_v34  ;;  %v1268_v52 = vld [vmem:[%s3447_s6 + $0x1ef0] sm:$0xff] }
 0x232   : > { %2612 = vmatpush.msrb.mxu3 %v1155_v33  ;;  %2544 = vmatpush.msrb.mxu0 %v371_v22  ;;  %v1123_v55 = vld [vmem:[%s3447_s6 + $0x1a68] sm:$0xff]  ;;  %v484_v17 = vld [vmem:[%s3447_s6 + $0x670] sm:$0xff] }
 0x233   : > { %2591 = vmatpush.msrb.mxu2 %v867_v1  ;;  %2566 = vmatpush.msrb.mxu1 %v643_v37  ;;  %v339_v51 = vld [vmem:[%s3447_s6 + $0x1e8] sm:$0xff]  ;;  %v2138_v56 = vadd.f32 %v2137_v43, %v2115_v50  ;;  %v980_v18 = vld [vmem:[%s3447_s6 + $0x15f0] sm:$0xff] }
 0x234   : > { %2613 = vmatpush.msrb.mxu3 %v1139_v38  ;;  %2415 = vmatmul.f32.gmra.mxu2 %v4299_v27  ;;  %v2160_v21 = vpop.f32.mrf.mxu3  ;;  %v611_v57 = vld [vmem:[%s3447_s6 + $0xa68] sm:$0xff]  ;;  %v756_v10 = vld [vmem:[%s3447_s6 + $0xef0] sm:$0xff] }
 0x235   : > { %2545 = vmatpush.msrb.mxu0 %v355_v8  ;;  %2567 = vmatpush.msrb.mxu1 %v627_v45  ;;  %v835_v59 = vld [vmem:[%s3447_s6 + $0x1168] sm:$0xff]  ;;  %v2161_v26 = vadd.f32 %v2160_v21, %v2138_v56  ;;  %v1252_v47 = vld [vmem:[%s3447_s6 + $0x1e70] sm:$0xff] }
 0x236   : > { %2592 = vmatpush.msrb.mxu2 %v851_v49  ;;  %2614 = vmatpush.msrb.mxu3 %v1123_v55  ;;  %v1107_v58 = vld [vmem:[%s3447_s6 + $0x19e8] sm:$0xff]  ;;  %v468_v20 = vld [vmem:[%s3447_s6 + $0x5f0] sm:$0xff]  ;;  %v1315_v55 = vperm.slane %v4519_v15, 1 }
 0x237   : > { %2369 = vmatmul.f32.gmra.mxu0 %v4305_v31  ;;  %2438 = vmatmul.f32.gmra.mxu3 %v4309_v60  ;;  %v323_v27 = vld [vmem:[%s3447_s6 + $0x168] sm:$0xff]  ;;  %2818 = vst [vmem:[%s3886_s19 + $0x40] sm:$0xff] %v2161_v26  ;;  %v964_v23 = vld [vmem:[%s3447_s6 + $0x1570] sm:$0xff] }
 0x238   : > { %2546 = vmatpush.msrb.mxu0 %v339_v51  ;;  %v595_v29 = vld [vmem:[%s3447_s6 + $0x9e8] sm:$0xff]  ;;  %2568 = vmatpush.msrb.mxu1 %v611_v57  ;;  %v740_v25 = vld [vmem:[%s3447_s6 + $0xe70] sm:$0xff] }
 0x239   : > { %2593 = vmatpush.msrb.mxu2 %v835_v59  ;;  %v819_v63 = vld [vmem:[%s3447_s6 + $0x10e8] sm:$0xff]  ;;  %2615 = vmatpush.msrb.mxu3 %v1107_v58  ;;  %v1236_v28 = vld [vmem:[%s3447_s6 + $0x1df0] sm:$0xff] }
 0x23a   : > { %v1091_v0 = vld [vmem:[%s3447_s6 + $0x1968] sm:$0xff]  ;;  %2392 = vmatmul.f32.gmra.mxu1 %v4317_v36  ;;  %2547 = vmatpush.msrb.mxu0 %v323_v27  ;;  %v452_v30 = vld [vmem:[%s3447_s6 + $0x570] sm:$0xff] }
 0x23b   : > { %v307_v31 = vld [vmem:[%s3447_s6 + $0xe8] sm:$0xff]  ;;  %2569 = vmatpush.msrb.mxu1 %v595_v29  ;;  %2594 = vmatpush.msrb.mxu2 %v819_v63  ;;  %v948_v19 = vld [vmem:[%s3447_s6 + $0x14f0] sm:$0xff] }
 0x23c   : > { %v579_v3 = vld [vmem:[%s3447_s6 + $0x968] sm:$0xff]  ;;  %2616 = vmatpush.msrb.mxu3 %v1091_v0  ;;  %2548 = vmatpush.msrb.mxu0 %v307_v31  ;;  %v724_v53 = vld [vmem:[%s3447_s6 + $0xdf0] sm:$0xff] }
 0x23d   : > { %v803_v60 = vld [vmem:[%s3447_s6 + $0x1068] sm:$0xff]  ;;  %2570 = vmatpush.msrb.mxu1 %v579_v3  ;;  %2504 = vmatmul.f32.vlgmr.msra.gmra.mxu2 %v4568_v9  ;;  %v1220_v54 = vld [vmem:[%s3447_s6 + $0x1d70] sm:$0xff] }
 0x23e   : > { %v1075_v4 = vld [vmem:[%s3447_s6 + $0x18e8] sm:$0xff]  ;;  %2595 = vmatpush.msrb.mxu2 %v803_v60  ;;  %v436_v34 = vld [vmem:[%s3447_s6 + $0x4f0] sm:$0xff] }
 0x23f   : > { %v291_v5 = vld [vmem:[%s3447_s6 + $0x68] sm:$0xff]  ;;  %2617 = vmatpush.msrb.mxu3 %v1075_v4  ;;  %2458 = vmatmul.f32.vlgmr.msra.gmra.mxu0 %v4574_v12  ;;  %v932_v22 = vld [vmem:[%s3447_s6 + $0x1470] sm:$0xff] }
 0x240   : > { %v563_v7 = vld [vmem:[%s3447_s6 + $0x8e8] sm:$0xff]  ;;  %2549 = vmatpush.msrb.mxu0 %v291_v5  ;;  %2672 = vmatpush.msra.mxu2 %v1044_v32  ;;  %v708_v37 = vld [vmem:[%s3447_s6 + $0xd70] sm:$0xff] }
 0x241   : > { %v1059_v36 = vld [vmem:[%s3447_s6 + $0x1868] sm:$0xff]  ;;  %2571 = vmatpush.msrb.mxu1 %v563_v7  ;;  %2527 = vmatmul.f32.vlgmr.msra.gmra.mxu3 %v4579_v39  ;;  %v1204_v38 = vld [vmem:[%s3447_s6 + $0x1cf0] sm:$0xff] }
 0x242   : > { %2618 = vmatpush.msrb.mxu3 %v1059_v36  ;;  %v547_v62 = vld [vmem:[%s3447_s6 + $0x868] sm:$0xff]  ;;  %2626 = vmatpush.msra.mxu0 %v532_v44  ;;  %v420_v8 = vld [vmem:[%s3447_s6 + $0x470] sm:$0xff] }
 0x243   : > { %2673 = vmatpush.msra.mxu2 %v1028_v11  ;;  %2572 = vmatpush.msrb.mxu1 %v547_v62  ;;  %v4587_v46 = vld [vmem:[#allocation2 + $0x8] sm:$0xff]  ;;  %v916_v42 = vld [vmem:[%s3447_s6 + $0x13f0] sm:$0xff]  ;;  %v4636_v62 = vld [vmem:[#allocation2 + $0x20] sm:$0xff] }
 0x244   : > { %2695 = vmatpush.msra.mxu3 %v1300_v2  ;;  %2627 = vmatpush.msra.mxu0 %v516_v13  ;;  %v692_v45 = vld [vmem:[%s3447_s6 + $0xcf0] sm:$0xff] }
 0x245   : > { %2481 = vmatmul.f32.vlgmr.msra.gmra.mxu1 %v4587_v46  ;;  %2674 = vmatpush.msra.mxu2 %v1012_v40  ;;  %v1188_v49 = vld [vmem:[%s3447_s6 + $0x1c70] sm:$0xff] }
 0x246   : > { %2649 = vmatpush.msra.mxu1 %v788_v41  ;;  %2696 = vmatpush.msra.mxu3 %v1284_v35  ;;  %v404_v51 = vld [vmem:[%s3447_s6 + $0x3f0] sm:$0xff]  ;;  %v4640_v35 = vld [vmem:[#allocation2 + $0x38] sm:$0xff] }
 0x247   : > { %2628 = vmatpush.msra.mxu0 %v500_v6  ;;  %2675 = vmatpush.msra.mxu2 %v996_v14  ;;  %v2094_v24 = vpop.f32.mrf.mxu0  ;;  %v900_v56 = vld [vmem:[%s3447_s6 + $0x1370] sm:$0xff] }
 0x248   : > { %2650 = vmatpush.msra.mxu1 %v772_v16  ;;  %2697 = vmatpush.msra.mxu3 %v1268_v52  ;;  %v2095_v48 = vadd.f32 %v2094_v24, %v1314_v61  ;;  %v676_v57 = vld [vmem:[%s3447_s6 + $0xc70] sm:$0xff] }
 0x249   : > { %2629 = vmatpush.msra.mxu0 %v484_v17  ;;  %2676 = vmatpush.msra.mxu2 %v980_v18  ;;  %v1172_v59 = vld [vmem:[%s3447_s6 + $0x1bf0] sm:$0xff]  ;;  %v4647_v18 = vld [vmem:[#allocation2 + $0x28] sm:$0xff] }
 0x24a   : > { %2651 = vmatpush.msra.mxu1 %v756_v10  ;;  %2698 = vmatpush.msra.mxu3 %v1252_v47  ;;  %v2117_v33 = vpop.f32.mrf.mxu1  ;;  %v2140_v1 = vpop.f32.mrf.mxu2  ;;  %v388_v58 = vld [vmem:[%s3447_s6 + $0x370] sm:$0xff] }
 0x24b   : > { %2630 = vmatpush.msra.mxu0 %v468_v20  ;;  %2677 = vmatpush.msra.mxu2 %v964_v23  ;;  %v2118_v61 = vadd.f32 %v2117_v33, %v2095_v48  ;;  %v884_v26 = vld [vmem:[%s3447_s6 + $0x12f0] sm:$0xff]  ;;  %v533_v33 = vld [vmem:[%s3447_s6 + $0x7f8] sm:$0xff] }
 0x24c   : > { %2652 = vmatpush.msra.mxu1 %v740_v25  ;;  %2699 = vmatpush.msra.mxu3 %v1236_v28  ;;  %v660_v29 = vld [vmem:[%s3447_s6 + $0xbf0] sm:$0xff] }
 0x24d   : > { %2631 = vmatpush.msra.mxu0 %v452_v30  ;;  %2678 = vmatpush.msra.mxu2 %v948_v19  ;;  %v2141_v43 = vadd.f32 %v2140_v1, %v2118_v61  ;;  %v2163_v50 = vpop.f32.mrf.mxu3  ;;  %v1156_v63 = vld [vmem:[%s3447_s6 + $0x1b70] sm:$0xff]  ;;  %v1045_v30 = vld [vmem:[%s3447_s6 + $0x17f8] sm:$0xff] }
 0x24e   : > { %2653 = vmatpush.msra.mxu1 %v724_v53  ;;  %2700 = vmatpush.msra.mxu3 %v1220_v54  ;;  %v372_v31 = vld [vmem:[%s3447_s6 + $0x2f0] sm:$0xff]  ;;  %v517_v61 = vld [vmem:[%s3447_s6 + $0x778] sm:$0xff] }
 0x24f   : > { %2632 = vmatpush.msra.mxu0 %v436_v34  ;;  %2679 = vmatpush.msra.mxu2 %v932_v22  ;;  %v2164_v21 = vadd.f32 %v2163_v50, %v2141_v43  ;;  %v2183_v27 = vpop.f32.mrf.mxu0  ;;  %v644_v3 = vld [vmem:[%s3447_s6 + $0xb70] sm:$0xff]  ;;  %v1029_v34 = vld [vmem:[%s3447_s6 + $0x1778] sm:$0xff] }
 0x250   : > { %2654 = vmatpush.msra.mxu1 %v708_v37  ;;  %2701 = vmatpush.msra.mxu3 %v1204_v38  ;;  %v2184_v0 = vadd.f32 %v2183_v27, %v1315_v55  ;;  %v868_v60 = vld [vmem:[%s3447_s6 + $0x1270] sm:$0xff]  ;;  %v1301_v22 = vld [vmem:[%s3447_s6 + $0x1ff8] sm:$0xff] }
 0x251   : > { %2633 = vmatpush.msra.mxu0 %v420_v8  ;;  %2680 = vmatpush.msra.mxu2 %v916_v42  ;;  %2834 = vst [vmem:[%s3886_s19 + $0xc0] sm:$0xff] %v2164_v21  ;;  %v1140_v4 = vld [vmem:[%s3447_s6 + $0x1af0] sm:$0xff]  ;;  %v1013_v37 = vld [vmem:[%s3447_s6 + $0x16f8] sm:$0xff] }
 0x252   : > { %2655 = vmatpush.msra.mxu1 %v692_v45  ;;  %2702 = vmatpush.msra.mxu3 %v1188_v49  ;;  %v4630_v7 = vld [vmem:[#allocation2 + $0x30] sm:$0xff]  ;;  %v789_v38 = vld [vmem:[%s3447_s6 + $0xff8] sm:$0xff] }
 0x253   : > { %2634 = vmatpush.msra.mxu0 %v404_v51  ;;  %2681 = vmatpush.msra.mxu2 %v900_v56  ;;  %v2229_v32 = vpop.f32.mrf.mxu2  ;;  %v356_v36 = vld [vmem:[%s3447_s6 + $0x270] sm:$0xff]  ;;  %v1285_v8 = vld [vmem:[%s3447_s6 + $0x1f78] sm:$0xff] }
 0x254   : > { %2656 = vmatpush.msra.mxu1 %v676_v57  ;;  %2703 = vmatpush.msra.mxu3 %v1172_v59  ;;  %v628_v11 = vld [vmem:[%s3447_s6 + $0xaf0] sm:$0xff]  ;;  %v501_v42 = vld [vmem:[%s3447_s6 + $0x6f8] sm:$0xff] }
 0x255   : > { %2635 = vmatpush.msra.mxu0 %v388_v58  ;;  %2682 = vmatpush.msra.mxu2 %v884_v26  ;;  %v2206_v5 = vpop.f32.mrf.mxu1  ;;  %v852_v2 = vld [vmem:[%s3447_s6 + $0x11f0] sm:$0xff]  ;;  %v997_v43 = vld [vmem:[%s3447_s6 + $0x1678] sm:$0xff] }
 0x256   : > { %2657 = vmatpush.msra.mxu1 %v660_v29  ;;  %2704 = vmatpush.msra.mxu3 %v1156_v63  ;;  %v2207_v44 = vadd.f32 %v2206_v5, %v2184_v0  ;;  %v1124_v13 = vld [vmem:[%s3447_s6 + $0x1a70] sm:$0xff]  ;;  %v773_v45 = vld [vmem:[%s3447_s6 + $0xf78] sm:$0xff] }
 0x257   : > { %2507 = vmatmul.f32.gmra.mxu2 %v4630_v7  ;;  %2636 = vmatpush.msra.mxu0 %v372_v31  ;;  %v2252_v41 = vpop.f32.mrf.mxu3  ;;  %v340_v6 = vld [vmem:[%s3447_s6 + $0x1f0] sm:$0xff]  ;;  %v1269_v49 = vld [vmem:[%s3447_s6 + $0x1ef8] sm:$0xff] }
 0x258   : > { %2658 = vmatpush.msra.mxu1 %v644_v3  ;;  %2683 = vmatpush.msra.mxu2 %v868_v60  ;;  %v2230_v40 = vadd.f32 %v2229_v32, %v2207_v44  ;;  %v612_v14 = vld [vmem:[%s3447_s6 + $0xa70] sm:$0xff]  ;;  %v485_v50 = vld [vmem:[%s3447_s6 + $0x678] sm:$0xff] }
 0x259   : > { %2705 = vmatpush.msra.mxu3 %v1140_v4  ;;  %2461 = vmatmul.f32.gmra.mxu0 %v4636_v62  ;;  %v836_v16 = vld [vmem:[%s3447_s6 + $0x1170] sm:$0xff]  ;;  %v757_v51 = vld [vmem:[%s3447_s6 + $0xef8] sm:$0xff] }
 0x25a   : > { %2530 = vmatmul.f32.gmra.mxu3 %v4640_v35  ;;  %2637 = vmatpush.msra.mxu0 %v356_v36  ;;  %v1108_v52 = vld [vmem:[%s3447_s6 + $0x19f0] sm:$0xff]  ;;  %v2253_v17 = vadd.f32 %v2252_v41, %v2230_v40  ;;  %v981_v56 = vld [vmem:[%s3447_s6 + $0x15f8] sm:$0xff] }
 0x25b   : > { %2659 = vmatpush.msra.mxu1 %v628_v11  ;;  %2684 = vmatpush.msra.mxu2 %v852_v2  ;;  %v324_v10 = vld [vmem:[%s3447_s6 + $0x170] sm:$0xff]  ;;  %v1253_v21 = vld [vmem:[%s3447_s6 + $0x1e78] sm:$0xff] }
 0x25c   : > { %2706 = vmatpush.msra.mxu3 %v1124_v13  ;;  %2484 = vmatmul.f32.gmra.mxu1 %v4647_v18  ;;  %v596_v47 = vld [vmem:[%s3447_s6 + $0x9f0] sm:$0xff]  ;;  %2819 = vst [vmem:[%s3886_s19 + $0x48] sm:$0xff] %v2253_v17  ;;  %v469_v59 = vld [vmem:[%s3447_s6 + $0x5f8] sm:$0xff]  ;;  %v1316_v13 = vperm.slane %v4519_v15, 2 }
 0x25d   : > { %2638 = vmatpush.msra.mxu0 %v340_v6  ;;  %2660 = vmatpush.msra.mxu1 %v612_v14  ;;  %v820_v20 = vld [vmem:[%s3447_s6 + $0x10f0] sm:$0xff]  ;;  %v741_v26 = vld [vmem:[%s3447_s6 + $0xe78] sm:$0xff] }
 0x25e   : > { %v1092_v23 = vld [vmem:[%s3447_s6 + $0x1970] sm:$0xff]  ;;  %2685 = vmatpush.msra.mxu2 %v836_v16  ;;  %2707 = vmatpush.msra.mxu3 %v1108_v52  ;;  %v965_v27 = vld [vmem:[%s3447_s6 + $0x1578] sm:$0xff] }
 0x25f   : > { %v308_v24 = vld [vmem:[%s3447_s6 + $0xf0] sm:$0xff]  ;;  %2639 = vmatpush.msra.mxu0 %v324_v10  ;;  %2661 = vmatpush.msra.mxu1 %v596_v47  ;;  %v1237_v29 = vld [vmem:[%s3447_s6 + $0x1df8] sm:$0xff] }
 0x260   : > { %v580_v25 = vld [vmem:[%s3447_s6 + $0x970] sm:$0xff]  ;;  %2686 = vmatpush.msra.mxu2 %v820_v20  ;;  %2708 = vmatpush.msra.mxu3 %v1092_v23  ;;  %v453_v0 = vld [vmem:[%s3447_s6 + $0x578] sm:$0xff] }
 0x261   : > { %v804_v28 = vld [vmem:[%s3447_s6 + $0x1070] sm:$0xff]  ;;  %2596 = vmatmul.f32.vlgmr.msrb.gmra.mxu2 %v4568_v9  ;;  %2640 = vmatpush.msra.mxu0 %v308_v24  ;;  %v949_v60 = vld [vmem:[%s3447_s6 + $0x14f8] sm:$0xff] }
 0x262   : > { %v1076_v48 = vld [vmem:[%s3447_s6 + $0x18f0] sm:$0xff]  ;;  %2662 = vmatpush.msra.mxu1 %v580_v25  ;;  %2687 = vmatpush.msra.mxu2 %v804_v28  ;;  %v1221_v4 = vld [vmem:[%s3447_s6 + $0x1d78] sm:$0xff] }
 0x263   : > { %v292_v19 = vld [vmem:[%s3447_s6 + $0x70] sm:$0xff]  ;;  %2709 = vmatpush.msra.mxu3 %v1076_v48  ;;  %2550 = vmatmul.f32.vlgmr.msrb.gmra.mxu0 %v4574_v12  ;;  %v437_v5 = vld [vmem:[%s3447_s6 + $0x4f8] sm:$0xff] }
 0x264   : > { %v564_v53 = vld [vmem:[%s3447_s6 + $0x8f0] sm:$0xff]  ;;  %2764 = vmatpush.msrb.mxu2 %v1045_v30  ;;  %2619 = vmatmul.f32.vlgmr.msrb.gmra.mxu3 %v4579_v39  ;;  %v709_v32 = vld [vmem:[%s3447_s6 + $0xd78] sm:$0xff] }
 0x265   : > { %v1060_v54 = vld [vmem:[%s3447_s6 + $0x1870] sm:$0xff]  ;;  %2641 = vmatpush.msra.mxu0 %v292_v19  ;;  %2663 = vmatpush.msra.mxu1 %v564_v53  ;;  %v933_v44 = vld [vmem:[%s3447_s6 + $0x1478] sm:$0xff] }
 0x266   : > { %2710 = vmatpush.msra.mxu3 %v1060_v54  ;;  %v548_v1 = vld [vmem:[%s3447_s6 + $0x870] sm:$0xff]  ;;  %2765 = vmatpush.msrb.mxu2 %v1029_v34  ;;  %v1205_v11 = vld [vmem:[%s3447_s6 + $0x1cf8] sm:$0xff] }
 0x267   : > { %2718 = vmatpush.msrb.mxu0 %v533_v33  ;;  %2573 = vmatmul.f32.vlgmr.msrb.gmra.mxu1 %v4587_v46  ;;  %v421_v40 = vld [vmem:[%s3447_s6 + $0x478] sm:$0xff] }
 0x268   : > { %2787 = vmatpush.msrb.mxu3 %v1301_v22  ;;  %2664 = vmatpush.msra.mxu1 %v548_v1  ;;  %v693_v6 = vld [vmem:[%s3447_s6 + $0xcf8] sm:$0xff] }
 0x269   : > { %2719 = vmatpush.msrb.mxu0 %v517_v61  ;;  %2766 = vmatpush.msrb.mxu2 %v1013_v37  ;;  %v917_v14 = vld [vmem:[%s3447_s6 + $0x13f8] sm:$0xff] }
 0x26a   : > { %2741 = vmatpush.msrb.mxu1 %v789_v38  ;;  %2788 = vmatpush.msrb.mxu3 %v1285_v8  ;;  %v1189_v16 = vld [vmem:[%s3447_s6 + $0x1c78] sm:$0xff] }
 0x26b   : > { %2720 = vmatpush.msrb.mxu0 %v501_v42  ;;  %2767 = vmatpush.msrb.mxu2 %v997_v43  ;;  %v2186_v57 = vpop.f32.mrf.mxu0  ;;  %v405_v17 = vld [vmem:[%s3447_s6 + $0x3f8] sm:$0xff] }
 0x26c   : > { %2742 = vmatpush.msrb.mxu1 %v773_v45  ;;  %2789 = vmatpush.msrb.mxu3 %v1269_v49  ;;  %v2187_v58 = vadd.f32 %v2186_v57, %v1315_v55  ;;  %v725_v55 = vld [vmem:[%s3447_s6 + $0xdf8] sm:$0xff] }
 0x26d   : > { %2599 = vmatmul.f32.gmra.mxu2 %v4630_v7  ;;  %2721 = vmatpush.msrb.mxu0 %v485_v50  ;;  %v677_v47 = vld [vmem:[%s3447_s6 + $0xc78] sm:$0xff] }
 0x26e   : > { %2743 = vmatpush.msrb.mxu1 %v757_v51  ;;  %2768 = vmatpush.msrb.mxu2 %v981_v56  ;;  %v2209_v63 = vpop.f32.mrf.mxu1  ;;  %v901_v20 = vld [vmem:[%s3447_s6 + $0x1378] sm:$0xff] }
 0x26f   : > { %2790 = vmatpush.msrb.mxu3 %v1253_v21  ;;  %2553 = vmatmul.f32.gmra.mxu0 %v4636_v62  ;;  %v2210_v31 = vadd.f32 %v2209_v63, %v2187_v58  ;;  %v2232_v3 = vpop.f32.mrf.mxu2  ;;  %v1173_v23 = vld [vmem:[%s3447_s6 + $0x1bf8] sm:$0xff] }
 0x270   : > { %2622 = vmatmul.f32.gmra.mxu3 %v4640_v35  ;;  %2722 = vmatpush.msrb.mxu0 %v469_v59  ;;  %v389_v24 = vld [vmem:[%s3447_s6 + $0x378] sm:$0xff] }
 0x271   : > { %2744 = vmatpush.msrb.mxu1 %v741_v26  ;;  %2769 = vmatpush.msrb.mxu2 %v965_v27  ;;  %v2233_v36 = vadd.f32 %v2232_v3, %v2210_v31  ;;  %v661_v25 = vld [vmem:[%s3447_s6 + $0xbf8] sm:$0xff] }
 0x272   : > { %2791 = vmatpush.msrb.mxu3 %v1237_v29  ;;  %2576 = vmatmul.f32.gmra.mxu1 %v4647_v18  ;;  %v2255_v2 = vpop.f32.mrf.mxu3  ;;  %v885_v30 = vld [vmem:[%s3447_s6 + $0x12f8] sm:$0xff] }
 0x273   : > { %2723 = vmatpush.msrb.mxu0 %v453_v0  ;;  %2745 = vmatpush.msrb.mxu1 %v725_v55  ;;  %v2256_v41 = vadd.f32 %v2255_v2, %v2233_v36  ;;  %v1157_v19 = vld [vmem:[%s3447_s6 + $0x1b78] sm:$0xff] }
 0x274   : > { %2770 = vmatpush.msrb.mxu2 %v949_v60  ;;  %2792 = vmatpush.msrb.mxu3 %v1221_v4  ;;  %v373_v54 = vld [vmem:[%s3447_s6 + $0x2f8] sm:$0xff] }
 0x275   : > { %2724 = vmatpush.msrb.mxu0 %v437_v5  ;;  %2746 = vmatpush.msrb.mxu1 %v709_v32  ;;  %2835 = vst [vmem:[%s3886_s19 + $0xc8] sm:$0xff] %v2256_v41  ;;  %v2275_v52 = vpop.f32.mrf.mxu0  ;;  %v645_v33 = vld [vmem:[%s3447_s6 + $0xb78] sm:$0xff] }
 0x276   : > { %2771 = vmatpush.msrb.mxu2 %v933_v44  ;;  %2793 = vmatpush.msrb.mxu3 %v1205_v11  ;;  %v2276_v10 = vadd.f32 %v2275_v52, %v1316_v13  ;;  %v869_v34 = vld [vmem:[%s3447_s6 + $0x1278] sm:$0xff] }
 0x277   : > { %2688 = vmatmul.f32.vlgmr.msra.gmra.mxu2 %v4568_v9  ;;  %2725 = vmatpush.msrb.mxu0 %v421_v40  ;;  %v1141_v22 = vld [vmem:[%s3447_s6 + $0x1af8] sm:$0xff] }
 0x278   : > { %2747 = vmatpush.msrb.mxu1 %v693_v6  ;;  %2772 = vmatpush.msrb.mxu2 %v917_v14  ;;  %v357_v37 = vld [vmem:[%s3447_s6 + $0x278] sm:$0xff] }
 0x279   : > { %2794 = vmatpush.msrb.mxu3 %v1189_v16  ;;  %2642 = vmatmul.f32.vlgmr.msra.gmra.mxu0 %v4574_v12  ;;  %v2298_v28 = vpop.f32.mrf.mxu1  ;;  %v2321_v48 = vpop.f32.mrf.mxu2  ;;  %v629_v38 = vld [vmem:[%s3447_s6 + $0xaf8] sm:$0xff] }
 0x27a   : > { %2711 = vmatmul.f32.vlgmr.msra.gmra.mxu3 %v4579_v39  ;;  %2726 = vmatpush.msrb.mxu0 %v405_v17  ;;  %v2299_v53 = vadd.f32 %v2298_v28, %v2276_v10  ;;  %v853_v8 = vld [vmem:[%s3447_s6 + $0x11f8] sm:$0xff]  ;;  %v1318_v17 = vperm.slane %v4519_v15, 4 }
 0x27b   : > { %2748 = vmatpush.msrb.mxu1 %v677_v47  ;;  %2773 = vmatpush.msrb.mxu2 %v901_v20  ;;  %v1125_v43 = vld [vmem:[%s3447_s6 + $0x1a78] sm:$0xff] }
 0x27c   : > { %2795 = vmatpush.msrb.mxu3 %v1173_v23  ;;  %2665 = vmatmul.f32.vlgmr.msra.gmra.mxu1 %v4587_v46  ;;  %v2322_v61 = vadd.f32 %v2321_v48, %v2299_v53  ;;  %v341_v45 = vld [vmem:[%s3447_s6 + $0x1f8] sm:$0xff] }
 0x27d   : > { %2727 = vmatpush.msrb.mxu0 %v389_v24  ;;  %2749 = vmatpush.msrb.mxu1 %v661_v25  ;;  %v2344_v1 = vpop.f32.mrf.mxu3  ;;  %v613_v49 = vld [vmem:[%s3447_s6 + $0xa78] sm:$0xff] }
 0x27e   : > { %2774 = vmatpush.msrb.mxu2 %v885_v30  ;;  %2796 = vmatpush.msrb.mxu3 %v1157_v19  ;;  %v2345_v42 = vadd.f32 %v2344_v1, %v2322_v61  ;;  %v837_v50 = vld [vmem:[%s3447_s6 + $0x1178] sm:$0xff] }
 0x27f   : > { %2728 = vmatpush.msrb.mxu0 %v373_v54  ;;  %2750 = vmatpush.msrb.mxu1 %v645_v33  ;;  %v1109_v51 = vld [vmem:[%s3447_s6 + $0x19f8] sm:$0xff] }
 0x280   : > { %2775 = vmatpush.msrb.mxu2 %v869_v34  ;;  %2797 = vmatpush.msrb.mxu3 %v1141_v22  ;;  %2820 = vst [vmem:[%s3886_s19 + $0x50] sm:$0xff] %v2345_v42  ;;  %v325_v56 = vld [vmem:[%s3447_s6 + $0x178] sm:$0xff] }
 0x281   : > { %2691 = vmatmul.f32.gmra.mxu2 %v4630_v7  ;;  %2729 = vmatpush.msrb.mxu0 %v357_v37  ;;  %v597_v21 = vld [vmem:[%s3447_s6 + $0x9f8] sm:$0xff]  ;;  %v1319_v37 = vperm.slane %v4519_v15, 5 }
 0x282   : > { %2751 = vmatpush.msrb.mxu1 %v629_v38  ;;  %2776 = vmatpush.msrb.mxu2 %v853_v8  ;;  %v821_v57 = vld [vmem:[%s3447_s6 + $0x10f8] sm:$0xff] }
 0x283   : > { %2798 = vmatpush.msrb.mxu3 %v1125_v43  ;;  %2645 = vmatmul.f32.gmra.mxu0 %v4636_v62  ;;  %v1093_v59 = vld [vmem:[%s3447_s6 + $0x1978] sm:$0xff] }
 0x284   : > { %2714 = vmatmul.f32.gmra.mxu3 %v4640_v35  ;;  %2730 = vmatpush.msrb.mxu0 %v341_v45  ;;  %v309_v58 = vld [vmem:[%s3447_s6 + $0xf8] sm:$0xff] }
 0x285   : > { %2752 = vmatpush.msrb.mxu1 %v613_v49  ;;  %2777 = vmatpush.msrb.mxu2 %v837_v50  ;;  %v581_v26 = vld [vmem:[%s3447_s6 + $0x978] sm:$0xff] }
 0x286   : > { %2799 = vmatpush.msrb.mxu3 %v1109_v51  ;;  %2668 = vmatmul.f32.gmra.mxu1 %v4647_v18  ;;  %v805_v27 = vld [vmem:[%s3447_s6 + $0x1078] sm:$0xff] }
 0x287   : > { %2731 = vmatpush.msrb.mxu0 %v325_v56  ;;  %2753 = vmatpush.msrb.mxu1 %v597_v21  ;;  %v1077_v29 = vld [vmem:[%s3447_s6 + $0x18f8] sm:$0xff] }
 0x288   : > { %2778 = vmatpush.msrb.mxu2 %v821_v57  ;;  %2800 = vmatpush.msrb.mxu3 %v1093_v59  ;;  %v293_v63 = vld [vmem:[%s3447_s6 + $0x78] sm:$0xff] }
 0x289   : > { %2732 = vmatpush.msrb.mxu0 %v309_v58  ;;  %2754 = vmatpush.msrb.mxu1 %v581_v26  ;;  %v565_v0 = vld [vmem:[%s3447_s6 + $0x8f8] sm:$0xff] }
 0x28a   : > { %v1061_v55 = vld [vmem:[%s3447_s6 + $0x1878] sm:$0xff]  ;;  %2779 = vmatpush.msrb.mxu2 %v805_v27  ;;  %2801 = vmatpush.msrb.mxu3 %v1077_v29  ;;  %v1320_v29 = vperm.slane %v4519_v15, 6 }
 0x28b   : > { %2780 = vmatmul.f32.vlgmr.msrb.gmra.mxu2 %v4568_v9  ;;  %2733 = vmatpush.msrb.mxu0 %v293_v63  ;;  %v549_v31 = vld [vmem:[%s3447_s6 + $0x878] sm:$0xff] }
 0x28c   : > { %2755 = vmatpush.msrb.mxu1 %v565_v0  ;;  %2802 = vmatpush.msrb.mxu3 %v1061_v55 }
 0x28d   : > { %2734 = vmatmul.f32.vlgmr.msrb.gmra.mxu0 %v4574_v12  ;;  %2803 = vmatmul.f32.vlgmr.msrb.gmra.mxu3 %v4579_v39 }
 0x28e   : > { %2756 = vmatpush.msrb.mxu1 %v549_v31 }
 0x28f   : > { %2757 = vmatmul.f32.vlgmr.msrb.gmra.mxu1 %v4587_v46  ;;  %v1317_v46 = vperm.slane %v4519_v15, 3 }
 0x290   : > { %v2278_v3 = vpop.f32.mrf.mxu0 }
 0x291   : > { %v2279_v60 = vadd.f32 %v2278_v3, %v1316_v13 }
 0x293   : > { %2783 = vmatmul.f32.gmra.mxu2 %v4630_v7  ;;  %v2301_v4 = vpop.f32.mrf.mxu1  ;;  %v2324_v5 = vpop.f32.mrf.mxu2 }
 0x294   : > { %v2302_v9 = vadd.f32 %v2301_v4, %v2279_v60 }
 0x295   : > { %2737 = vmatmul.f32.gmra.mxu0 %v4636_v62  ;;  %2806 = vmatmul.f32.gmra.mxu3 %v4640_v35 }
 0x296   : > { %v2325_v12 = vadd.f32 %v2324_v5, %v2302_v9  ;;  %v2347_v39 = vpop.f32.mrf.mxu3 }
 0x297   : > { %2760 = vmatmul.f32.gmra.mxu1 %v4647_v18 }
 0x298   : > { %v2348_v32 = vadd.f32 %v2347_v39, %v2325_v12 }
 0x299   : > { %v2367_v36 = vpop.f32.mrf.mxu0 }
 0x29a   : > { %2836 = vst [vmem:[%s3886_s19 + $0xd0] sm:$0xff] %v2348_v32  ;;  %v2368_v44 = vadd.f32 %v2367_v36, %v1317_v46 }
 0x29d   : > { %v2390_v11 = vpop.f32.mrf.mxu1  ;;  %v2413_v7 = vpop.f32.mrf.mxu2 }
 0x29e   : > { %v2391_v2 = vadd.f32 %v2390_v11, %v2368_v44 }
 0x2a0   : > { %v2414_v13 = vadd.f32 %v2413_v7, %v2391_v2  ;;  %v1321_v7 = vperm.slane %v4519_v15, 7 }
 0x2a1   : > { %v2436_v40 = vpop.f32.mrf.mxu3 }
 0x2a2   : > { %v2437_v62 = vadd.f32 %v2436_v40, %v2414_v13 }
 0x2a4   : > { %2821 = vst [vmem:[%s3886_s19 + $0x58] sm:$0xff] %v2437_v62 }
 0x2b4   : > { %v2370_v41 = vpop.f32.mrf.mxu0 }
 0x2b5   : > { %v2371_v35 = vadd.f32 %v2370_v41, %v1317_v46 }
 0x2b7   : > { %v2393_v6 = vpop.f32.mrf.mxu1  ;;  %v2416_v14 = vpop.f32.mrf.mxu2 }
 0x2b8   : > { %v2394_v18 = vadd.f32 %v2393_v6, %v2371_v35 }
 0x2ba   : > { %v2417_v16 = vadd.f32 %v2416_v14, %v2394_v18  ;;  %v2439_v52 = vpop.f32.mrf.mxu3 }
 0x2bc   : > { %v2440_v10 = vadd.f32 %v2439_v52, %v2417_v16  ;;  %v2459_v47 = vpop.f32.mrf.mxu0 }
 0x2bd   : > { %v2460_v20 = vadd.f32 %v2459_v47, %v1318_v17 }
 0x2be   : > { %2837 = vst [vmem:[%s3886_s19 + $0xd8] sm:$0xff] %v2440_v10 }
 0x2c0   : > { %v2505_v24 = vpop.f32.mrf.mxu2 }
 0x2c2   : > { %v2482_v23 = vpop.f32.mrf.mxu1 }
 0x2c3   : > { %v2483_v25 = vadd.f32 %v2482_v23, %v2460_v20 }
 0x2c4   : > { %v2528_v48 = vpop.f32.mrf.mxu3 }
 0x2c5   : > { %v2506_v28 = vadd.f32 %v2505_v24, %v2483_v25 }
 0x2c7   : > { %v2529_v30 = vadd.f32 %v2528_v48, %v2506_v28 }
 0x2c9   : > { %2822 = vst [vmem:[%s3886_s19 + $0x60] sm:$0xff] %v2529_v30 }
 0x2d6   : > { %v2462_v19 = vpop.f32.mrf.mxu0 }
 0x2d7   : > { %v2463_v53 = vadd.f32 %v2462_v19, %v1318_v17 }
 0x2d9   : > { %v2485_v54 = vpop.f32.mrf.mxu1 }
 0x2da   : > { %v2486_v33 = vadd.f32 %v2485_v54, %v2463_v53  ;;  %v2508_v34 = vpop.f32.mrf.mxu2 }
 0x2dc   : > { %v2509_v22 = vadd.f32 %v2508_v34, %v2486_v33 }
 0x2dd   : > { %v2531_v61 = vpop.f32.mrf.mxu3 }
 0x2de   : > { %v2532_v1 = vadd.f32 %v2531_v61, %v2509_v22 }
 0x2e0   : > { %2838 = vst [vmem:[%s3886_s19 + $0xe0] sm:$0xff] %v2532_v1  ;;  %v2551_v38 = vpop.f32.mrf.mxu0 }
 0x2e1   : > { %v2552_v8 = vadd.f32 %v2551_v38, %v1319_v37 }
 0x2e4   : > { %v2574_v42 = vpop.f32.mrf.mxu1  ;;  %v2597_v43 = vpop.f32.mrf.mxu2 }
 0x2e5   : > { %v2575_v45 = vadd.f32 %v2574_v42, %v2552_v8 }
 0x2e7   : > { %v2620_v49 = vpop.f32.mrf.mxu3  ;;  %v2598_v50 = vadd.f32 %v2597_v43, %v2575_v45 }
 0x2e9   : > { %v2621_v51 = vadd.f32 %v2620_v49, %v2598_v50 }
 0x2eb   : > { %2823 = vst [vmem:[%s3886_s19 + $0x68] sm:$0xff] %v2621_v51 }
 0x2ec   : > { %v2554_v56 = vpop.f32.mrf.mxu0 }
 0x2ed   : > { %v2555_v21 = vadd.f32 %v2554_v56, %v1319_v37 }
 0x2ef   : > { %v2577_v57 = vpop.f32.mrf.mxu1 }
 0x2f0   : > { %v2578_v59 = vadd.f32 %v2577_v57, %v2555_v21  ;;  %v2600_v58 = vpop.f32.mrf.mxu2 }
 0x2f2   : > { %v2601_v26 = vadd.f32 %v2600_v58, %v2578_v59 }
 0x2f3   : > { %v2623_v27 = vpop.f32.mrf.mxu3 }
 0x2f4   : > { %v2624_v63 = vadd.f32 %v2623_v27, %v2601_v26 }
 0x2f6   : > { %2839 = vst [vmem:[%s3886_s19 + $0xe8] sm:$0xff] %v2624_v63  ;;  %v2643_v0 = vpop.f32.mrf.mxu0 }
 0x2f7   : > { %v2644_v55 = vadd.f32 %v2643_v0, %v1320_v29 }
 0x2f9   : > { %v2666_v31 = vpop.f32.mrf.mxu1 }
 0x2fa   : > { %v2667_v3 = vadd.f32 %v2666_v31, %v2644_v55  ;;  %v2689_v60 = vpop.f32.mrf.mxu2 }
 0x2fc   : > { %v2690_v4 = vadd.f32 %v2689_v60, %v2667_v3 }
 0x2fd   : > { %v2712_v9 = vpop.f32.mrf.mxu3 }
 0x2fe   : > { %v2713_v5 = vadd.f32 %v2712_v9, %v2690_v4 }
 0x300   : > { %2824 = vst [vmem:[%s3886_s19 + $0x70] sm:$0xff] %v2713_v5  ;;  %v2646_v12 = vpop.f32.mrf.mxu0 }
 0x301   : > { %v2647_v39 = vadd.f32 %v2646_v12, %v1320_v29 }
 0x303   : > { %v2669_v46 = vpop.f32.mrf.mxu1 }
 0x304   : > { %v2670_v32 = vadd.f32 %v2669_v46, %v2647_v39  ;;  %v2692_v36 = vpop.f32.mrf.mxu2 }
 0x306   : > { %v2693_v44 = vadd.f32 %v2692_v36, %v2670_v32 }
 0x307   : > { %v2715_v11 = vpop.f32.mrf.mxu3 }
 0x308   : > { %v2716_v2 = vadd.f32 %v2715_v11, %v2693_v44 }
 0x30a   : > { %2840 = vst [vmem:[%s3886_s19 + $0xf0] sm:$0xff] %v2716_v2  ;;  %v2735_v13 = vpop.f32.mrf.mxu0 }
 0x30b   : > { %v2736_v40 = vadd.f32 %v2735_v13, %v1321_v7 }
 0x30c   : > { %v2758_v62 = vpop.f32.mrf.mxu1 }
 0x30d   : > { %v2759_v41 = vadd.f32 %v2758_v62, %v2736_v40 }
 0x30e   : > { %v2781_v35 = vpop.f32.mrf.mxu2 }
 0x30f   : > { %v2782_v6 = vadd.f32 %v2781_v35, %v2759_v41 }
 0x310   : > { %v2804_v18 = vpop.f32.mrf.mxu3 }
 0x311   : > { %v2805_v14 = vadd.f32 %v2804_v18, %v2782_v6 }
 0x312   : > { %v2738_v16 = vpop.f32.mrf.mxu0 }
 0x313   : > { %2825 = vst [vmem:[%s3886_s19 + $0x78] sm:$0xff] %v2805_v14  ;;  %v2739_v15 = vadd.f32 %v2738_v16, %v1321_v7 }
 0x314   : > { %v2761_v52 = vpop.f32.mrf.mxu1 }
 0x315   : > { %v2762_v17 = vadd.f32 %v2761_v52, %v2739_v15 }
 0x316   : > { %v2784_v10 = vpop.f32.mrf.mxu2 }
 0x317   : > { %v2785_v47 = vadd.f32 %v2784_v10, %v2762_v17 }
 0x318   : > { %v2807_v20 = vpop.f32.mrf.mxu3 }
 0x319   : > { %v2808_v23 = vadd.f32 %v2807_v20, %v2785_v47 }
 0x31b   : > { %2841 = vst [vmem:[%s3886_s19 + $0xf8] sm:$0xff] %v2808_v23 }
 0x31c   : > { %3228 = shalt.err (!%p3225_p13)
}
 0x31d   : > { %s3294_s26 = smov 2048   ;;  %s3295_s6 = smov 4096  }
 0x31e   : > { %s3296_s1 = smov 128  }
 0x31f   : > { %3009 = dma.vmem_to_hbm [thread:$0]  (%p3407_p0), %s2859_s5, 4096, %s2861_s8, %s2843_s15, %s3294_s26, %s3295_s6, %s3296_s1  }
 0x320 PF: > { %s2875_s7 = sand.u32 1, %s3267_s12   ;;  %p3023_p4 = pnand %p2983_p3, %p3411_p2 }
 0x321   : > { %s2876_s10 = scalar_lea.sflag [#allocation4], %s2875_s7 }
 0x322   : > { %p3024_p5 = pneg %p3023_p4 }
 0x324   : > { %3262 = dma.done.wait (%p3024_p5), %s2876_s10, 4096  }
 0x325   : > { %3264 = vsyncadd (%p3024_p5), %s2876_s10, 4294963200  ;;  %s20_s17 = sadd.s32 1, %s3287_s17   ;;  %s4829_s12 = smov %s3271_s13 }
 0x326   : > { %p17_p1 = scmp.ge.s32.totalorder %s20_s17, 4   ;;  %s4830_s13 = smov %s3275_s14 }
 0x327   : > { %s4831_s14 = smov %s3369_s25  ;;  %s4832_s15 = smov %s3283_s16 }
 0x328   : > { %s4833_s16 = smov %s4835_s18  ;;  %19 = sbr.rel (!%p17_p1) target bundleno = 10 (0xa), region = 94 }
 0x32d   :  { %2882 = vsyncpa [#allocation3], 1 }
 0x32e   :  { %2884 = vsyncpa [#allocation3 + $0x1], 1 }
 0x32f   :  { %2885 = vsyncpa [#allocation6], 1 }
 0x330   :  { %2887 = vsyncpa [#allocation6 + $0x1], 1 }
 0x331   :  { %2888 = vsyncpa [#allocation4], 1 }
 0x332   :  { %2890 = vsyncpa [#allocation4 + $0x1], 1 }

</bundles_post_ra>
